<compile_context>
chip_gen: v7x
topology: tpu7x:2x2x1
jax: 0.10.0
libtpu: 0.0.40
codegen_flags: <defaults>
</compile_context>

<pallas_src>
import jax
import jax.numpy as jnp
from jax import lax
from jax.experimental import pallas as pl
from jax.experimental.pallas import tpu as pltpu

# ---- config mirroring `opt` -------------------------------------------------
N_SAMPLES = 8            # opt.N_samples
WIDTH = 32               # opt.width -> feature_out_size
INPUT_CH = 3
INPUT_CH_VIEWS = 3       # opt.input_ch_views
HIDDEN = 32              # synthetic SDF-network hidden width
OUT_CH = 3 + 1 + WIDTH   # rgb + sdf + features
INF = 1e10

LANE = 128
MAX_TM = 2048            # rays per grid step (cap; actual tile chosen per N)

# feature-major packed output row layout: one (PACK_ROWS, Np) slab, rays on lanes
R_RGB = 0                      # 3 rows
R_MASK = 3                     # 1 row
R_XYZ = 4                      # 3 rows
#        7                     # 1 pad row (keeps feat/sdf sublane-aligned)
R_FEAT = 8                     # 32 rows
R_SDF = R_FEAT + WIDTH         # 40, 8 rows
PACK_ROWS = R_SDF + N_SAMPLES  # 48


# ---- Pallas kernel ----------------------------------------------------------
def _renderer_kernel(rays_ref, w1c_ref, b1_ref, w2t_ref, b2_ref, beta_ref,
                     out_ref):
    """Feature-major layout: rays on the lane axis.

    rays_ref : (11, tm)   rows = [o(3); d(3); near; far; viewdirs(3)]
    w1c_ref  : (2H, 9)    combined layer-1 weights (see wrapper)
    b1_ref   : (H, 1)
    w2t_ref  : (OUT_CH, H)
    b2_ref   : (OUT_CH, 1)
    beta_ref : (1, 1)
    out_ref  : (48, tm)   rows = [rgb(3) | mask | xyz(3) | pad | feat(32) | sdf(8)]
    """
    f32 = jnp.float32
    tm = rays_ref.shape[1]

    rays = rays_ref[...]
    rays_o = rays[0:3, :]
    rays_d = rays[3:6, :]
    near = rays[6:7, :]
    far = rays[7:8, :]
    viewdirs = rays[8:11, :]

    b1 = b1_ref[...]                      # (H, 1)
    w2t = w2t_ref[...]                    # (OUT_CH, H)
    b2 = b2_ref[...]                      # (OUT_CH, 1)
    inv_beta = 1.0 / beta_ref[...]        # (1, 1), hoisted

    span = far - near                     # (1, tm)
    inv_fn = 2.0 / span                   # z_normalize scale

    # ---- layer 1, hoisted out of the sample loop (linear in the point) -------
    # x = [o*inv_fn ; d*inv_fn ; viewdirs]; one small-K MXU dot yields both the
    # base pre-activation and the per-unit-z direction projection:
    #   h_pre(s) = h_base + z_s * dir_proj
    x9 = jnp.concatenate([rays[0:6, :] * inv_fn, viewdirs], axis=0)   # (9, tm)
    hb_dp = jnp.dot(w1c_ref[...], x9, preferred_element_type=f32)     # (2H, tm)
    h_base = hb_dp[0:HIDDEN, :] + b1                                  # (H, tm)
    dir_proj = hb_dp[HIDDEN:, :]                                      # (H, tm)

    # offset sampling (linspace(0, 1-1/S, S)) -> uniform spacing dz = span/S,
    # so the per-sample dist is the same for samples 0..S-2; the last sample's
    # sigma is never needed (force_background overwrites its weight).
    rd_norm = jnp.sqrt(rays_d[0:1, :] ** 2 + rays_d[1:2, :] ** 2
                       + rays_d[2:3, :] ** 2)                         # (1, tm)
    dist = (span * (1.0 / N_SAMPLES)) * rd_norm                       # (1, tm)

    # ---- fused per-sample MLP layer-2 + compositing (short unrolled loop) -----
    trans = jnp.ones((1, tm), f32)        # running transmittance (cumprod)
    wsum = jnp.zeros((1, tm), f32)
    w_cur = jnp.zeros((1, tm), f32)
    rgb_acc = jnp.zeros((3, tm), f32)
    feat_acc = jnp.zeros((WIDTH, tm), f32)
    wz_acc = jnp.zeros((1, tm), f32)      # sum_s w_s * z_s  (for xyz hoist)
    sdf_rows = []

    for s in range(N_SAMPLES):
        z_s = near + span * (s / N_SAMPLES)                           # (1, tm)
        act = jnp.maximum(h_base + z_s * dir_proj, 0.0)               # (H, tm)
        raw = jnp.dot(w2t, act, preferred_element_type=f32) + b2      # (OUT, tm)
        rgb_s = raw[0:3, :]
        sdf_s = raw[3:4, :]
        feat_s = raw[4:4 + WIDTH, :]
        sdf_rows.append(sdf_s)

        if s < N_SAMPLES - 1:
            sig = jax.nn.sigmoid(-sdf_s * inv_beta) * inv_beta
            sigma_s = 1.0 - jnp.exp(-sig * dist)
            w_cur = sigma_s * trans
            trans = trans * (1.0 - sigma_s + 1e-10)
        else:
            # force_background: last weight = 1 - sum of previous weights
            w_cur = 1.0 - wsum
        wsum = wsum + w_cur

        rgb_acc = rgb_acc + w_cur * jax.nn.sigmoid(rgb_s)
        feat_acc = feat_acc + w_cur * feat_s
        wz_acc = wz_acc + w_cur * z_s

    rgb_map = -1.0 + 2.0 * rgb_acc
    # sum(weights) == 1 under force_background, hence
    # xyz = sum_s w_s*(o + d*z_s) = o + d * sum_s(w_s*z_s)
    xyz = rays_o + rays_d * wz_acc
    pad = jnp.zeros((1, tm), f32)

    # three sublane-aligned, lane-dense stores
    out_ref[0:R_FEAT, :] = jnp.concatenate([rgb_map, w_cur, xyz, pad], axis=0)
    out_ref[R_FEAT:R_SDF, :] = feat_acc
    out_ref[R_SDF:PACK_ROWS, :] = jnp.concatenate(sdf_rows, axis=0)


# ---- wrapper ----------------------------------------------------------------
def voxel_sdf_render(rays, params, max_tm=MAX_TM):
    """rays: (B, H, W, 11) = [rays_o, rays_d, near, far, viewdirs]."""
    B, H, W, C = rays.shape
    assert C == 11, "rays last dim must be 11 (o, d, near, far, viewdirs)"
    N = B * H * W

    # feature-major staging: rays on the lane axis
    rays_t = rays.reshape(N, C).astype(jnp.float32).T                # (11, N)

    # tile choice: lane-aligned tm, minimal padding, even grid >= 2 when possible
    chunks = pl.cdiv(N, LANE)
    max_chunks = max(1, max_tm // LANE)
    grid_n = pl.cdiv(chunks, max_chunks)
    if chunks >= 2:
        grid_n = max(grid_n, 2)            # keep both v7x TensorCores fed
    if grid_n > 1 and grid_n % 2 == 1:
        grid_n += 1                        # even grid -> balanced megacore split
    tm = pl.cdiv(chunks, grid_n) * LANE
    Np = grid_n * tm
    if Np != N:
        rays_t = jnp.pad(rays_t, ((0, 0), (0, Np - N)), mode="edge")

    # combined layer-1 weights so one small-K dot gives [h_base ; dir_proj]:
    #   rows 0:H   <- W1_pos^T on x[0:3] (o*s)  +  W1_dir^T on x[6:9] (viewdirs)
    #   rows H:2H  <- W1_pos^T on x[3:6] (d*s)
    w1 = params["w1"].astype(jnp.float32)                 # (6, H)
    w1pos_t, w1dir_t = w1[0:3, :].T, w1[3:6, :].T         # (H, 3) each
    w1c = jnp.zeros((2 * HIDDEN, 9), jnp.float32)
    w1c = w1c.at[0:HIDDEN, 0:3].set(w1pos_t)
    w1c = w1c.at[0:HIDDEN, 6:9].set(w1dir_t)
    w1c = w1c.at[HIDDEN:, 3:6].set(w1pos_t)

    b1_col = params["b1"].reshape(HIDDEN, 1).astype(jnp.float32)
    w2t = params["w2"].T.astype(jnp.float32)              # (OUT_CH, H)
    b2_col = params["b2"].reshape(OUT_CH, 1).astype(jnp.float32)
    beta = params["beta"].reshape(1, 1).astype(jnp.float32)

    full = lambda shape: pl.BlockSpec(shape, lambda i: (0, 0))

    out = pl.pallas_call(
        _renderer_kernel,
        out_shape=jax.ShapeDtypeStruct((PACK_ROWS, Np), jnp.float32),
        grid_spec=pltpu.PrefetchScalarGridSpec(
            num_scalar_prefetch=0,
            grid=(grid_n,),
            in_specs=[
                pl.BlockSpec((11, tm), lambda i: (0, i)),
                full((2 * HIDDEN, 9)),
                full((HIDDEN, 1)),
                full((OUT_CH, HIDDEN)),
                full((OUT_CH, 1)),
                full((1, 1)),
            ],
            out_specs=pl.BlockSpec((PACK_ROWS, tm), lambda i: (0, i)),
        ),
        compiler_params=pltpu.CompilerParams(
            dimension_semantics=("parallel",),
        ),
    )(rays_t, w1c, b1_col, w2t, b2_col, beta)

    # feature-major slab -> consumer layout (channel-first, as in the module)
    rgb = out[R_RGB:R_RGB + 3, :N].reshape(3, B, H, W).transpose(1, 0, 2, 3)
    mask = out[R_MASK:R_MASK + 1, :N].reshape(1, B, H, W).transpose(1, 0, 2, 3)
    xyz = out[R_XYZ:R_XYZ + 3, :N].reshape(3, B, H, W).transpose(1, 0, 2, 3)
    feat = out[R_FEAT:R_FEAT + WIDTH, :N].reshape(WIDTH, B, H, W).transpose(1, 0, 2, 3)
    sdf = out[R_SDF:R_SDF + N_SAMPLES, :N].reshape(N_SAMPLES, B, H, W)
    sdf = sdf.transpose(1, 2, 3, 0)[..., None]
    # TODO(synk): eikonal_term requires autograd of sdf wrt pts (not a forward-only op).
    eikonal_term = None
    return rgb, feat, sdf, mask, xyz, eikonal_term


# ---- pure-JAX reference (mirrors the PyTorch code path) ----------------------
def _reference(rays, params):
    f32 = jnp.float32
    rays_o, rays_d = rays[..., 0:3], rays[..., 3:6]
    near, far = rays[..., 6:7], rays[..., 7:8]
    viewdirs = rays[..., 8:11]

    t_vals = (jnp.arange(N_SAMPLES, dtype=f32) / N_SAMPLES).reshape(1, 1, 1, -1)
    z_vals = near * (1.0 - t_vals) + far * t_vals                     # (B,H,W,S)
    pts = rays_o[..., None, :] + rays_d[..., None, :] * z_vals[..., None]
    npts = pts * 2.0 / (far - near)[..., None, :]
    dirs = jnp.broadcast_to(viewdirs[..., None, :], pts.shape)
    net_in = jnp.concatenate([npts, dirs], axis=-1)

    h = jax.nn.relu(net_in @ params["w1"] + params["b1"])
    raw = h @ params["w2"] + params["b2"]
    rgb, sdf, feats = raw[..., 0:3], raw[..., 3:4], raw[..., 4:]

    dists = z_vals[..., 1:] - z_vals[..., :-1]
    rd_norm = jnp.sqrt(jnp.sum(rays_d[..., None, :] ** 2, axis=-1))   # (B,H,W,1)
    dists = jnp.concatenate([dists, jnp.full(rd_norm.shape, INF, f32)], axis=-1)
    dists = dists * rd_norm

    beta = params["beta"][0, 0]
    sigma = jax.nn.sigmoid(-sdf / beta) / beta
    sigma = 1.0 - jnp.exp(-sigma * dists[..., None])
    ones = jnp.ones_like(sigma[..., :1, :])
    vis = jnp.cumprod(jnp.concatenate([ones, 1.0 - sigma + 1e-10], axis=-2),
                      axis=-2)[..., :-1, :]
    weights = sigma * vis
    w_last = 1.0 - jnp.sum(weights[..., :-1, :], axis=-2)
    weights = jnp.concatenate([weights[..., :-1, :], w_last[..., None, :]], axis=-2)

    rgb_map = -1.0 + 2.0 * jnp.sum(weights * jax.nn.sigmoid(rgb), axis=-2)
    feat_map = jnp.sum(weights * feats, axis=-2)
    xyz = jnp.sum(weights * pts, axis=-2)
    mask = weights[..., -1, :]
    return (rgb_map.transpose(0, 3, 1, 2), feat_map.transpose(0, 3, 1, 2), sdf,
            mask.transpose(0, 3, 1, 2), xyz.transpose(0, 3, 1, 2), None)


# ---- main --------------------------------------------------------------------
if __name__ == "__main__":
    B, H, W = 2, 16, 16
    key = jax.random.PRNGKey(0)
    k_o, k_d, k_n, k_f, k_w1, k_b1, k_w2, k_b2 = jax.random.split(key, 8)

    rays_o = jax.random.normal(k_o, (B, H, W, 3), jnp.float32)
    rays_d = jax.random.normal(k_d, (B, H, W, 3), jnp.float32)
    viewdirs = rays_d / jnp.linalg.norm(rays_d, axis=-1, keepdims=True)
    near = 1.0 + 0.1 * jax.random.uniform(k_n, (B, H, W, 1), jnp.float32)
    far = near + 1.0 + jax.random.uniform(k_f, (B, H, W, 1), jnp.float32)
    rays = jnp.concatenate([rays_o, rays_d, near, far, viewdirs], axis=-1)

    params = dict(
        w1=(0.5 * jax.random.normal(k_w1, (INPUT_CH + INPUT_CH_VIEWS, HIDDEN))
            ).astype(jnp.float32),
        b1=(0.1 * jax.random.normal(k_b1, (1, HIDDEN))).astype(jnp.float32),
        w2=(0.3 * jax.random.normal(k_w2, (HIDDEN, OUT_CH))).astype(jnp.float32),
        b2=(0.1 * jax.random.normal(k_b2, (1, OUT_CH))).astype(jnp.float32),
        beta=jnp.full((1, 1), 0.1, jnp.float32),   # sigmoid_beta = 0.1 * ones(1)
    )

    outs = voxel_sdf_render(rays, params)
    jax.block_until_ready(outs[:5])

    refs = _reference(rays, params)
    names = ["rgb", "features", "sdf", "mask", "xyz"]
    for name, got, want in zip(names, outs[:5], refs[:5]):
        assert got.shape == want.shape, (name, got.shape, want.shape)
        err = float(jnp.max(jnp.abs(got - want)))
        assert err < 1e-2, f"{name} mismatch, max abs err {err}"

    print("KERNEL_OK")
</pallas_src>

<mosaic_0001>
module attributes {stable_mosaic.version = 11 : i64} {
  func.func @_renderer_kernel(%arg0: i32, %arg1: memref<11x256xf32, #tpu.memory_space<vmem>>, %arg2: memref<64x9xf32, #tpu.memory_space<vmem>>, %arg3: memref<32x1xf32, #tpu.memory_space<vmem>>, %arg4: memref<36x32xf32, #tpu.memory_space<vmem>>, %arg5: memref<36x1xf32, #tpu.memory_space<vmem>>, %arg6: memref<1x1xf32, #tpu.memory_space<vmem>>, %arg7: memref<48x256xf32, #tpu.memory_space<vmem>>) attributes {dimension_semantics = [#tpu.dimension_semantics<parallel>], iteration_bounds = array<i64: 2>, scalar_prefetch = 0 : i64, scratch_operands = 0 : i64, tpu.core_type = #tpu.core_type<tc>, window_params = [{transform_indices = @transform_0, window_bounds = array<i64: 11, 256>}, {pipeline_mode = #tpu.pipeline_mode<synchronous>, transform_indices = @transform_1, window_bounds = array<i64: 64, 9>}, {pipeline_mode = #tpu.pipeline_mode<synchronous>, transform_indices = @transform_2, window_bounds = array<i64: 32, 1>}, {pipeline_mode = #tpu.pipeline_mode<synchronous>, transform_indices = @transform_3, window_bounds = array<i64: 36, 32>}, {pipeline_mode = #tpu.pipeline_mode<synchronous>, transform_indices = @transform_4, window_bounds = array<i64: 36, 1>}, {pipeline_mode = #tpu.pipeline_mode<synchronous>, transform_indices = @transform_5, window_bounds = array<i64: 1, 1>}, {transform_indices = @transform_6, window_bounds = array<i64: 48, 256>}]} {
    %c0 = arith.constant 0 : index
    %c0_0 = arith.constant 0 : index
    %0 = vector.load %arg1[%c0, %c0_0] : memref<11x256xf32, #tpu.memory_space<vmem>>, vector<11x256xf32>
    %1 = vector.extract_strided_slice %0 {offsets = [0, 0], sizes = [3, 256], strides = [1, 1]} : vector<11x256xf32> to vector<3x256xf32>
    %2 = vector.extract_strided_slice %0 {offsets = [3, 0], sizes = [3, 256], strides = [1, 1]} : vector<11x256xf32> to vector<3x256xf32>
    %3 = vector.extract_strided_slice %0 {offsets = [6, 0], sizes = [1, 256], strides = [1, 1]} : vector<11x256xf32> to vector<1x256xf32>
    %4 = vector.extract_strided_slice %0 {offsets = [7, 0], sizes = [1, 256], strides = [1, 1]} : vector<11x256xf32> to vector<1x256xf32>
    %5 = vector.extract_strided_slice %0 {offsets = [8, 0], sizes = [3, 256], strides = [1, 1]} : vector<11x256xf32> to vector<3x256xf32>
    %c0_1 = arith.constant 0 : index
    %c0_2 = arith.constant 0 : index
    %6 = vector.load %arg3[%c0_1, %c0_2] : memref<32x1xf32, #tpu.memory_space<vmem>>, vector<32x1xf32>
    %c0_3 = arith.constant 0 : index
    %c0_4 = arith.constant 0 : index
    %7 = vector.load %arg4[%c0_3, %c0_4] : memref<36x32xf32, #tpu.memory_space<vmem>>, vector<36x32xf32>
    %c0_5 = arith.constant 0 : index
    %c0_6 = arith.constant 0 : index
    %8 = vector.load %arg5[%c0_5, %c0_6] : memref<36x1xf32, #tpu.memory_space<vmem>>, vector<36x1xf32>
    %c0_7 = arith.constant 0 : index
    %c0_8 = arith.constant 0 : index
    %9 = vector.load %arg6[%c0_7, %c0_8] : memref<1x1xf32, #tpu.memory_space<vmem>>, vector<1x1xf32>
    %cst = arith.constant 1.000000e+00 : f32
    %10 = vector.broadcast %cst : f32 to vector<1x1xf32>
    %11 = arith.divf %10, %9 : vector<1x1xf32>
    %12 = arith.subf %4, %3 : vector<1x256xf32>
    %cst_9 = arith.constant 2.000000e+00 : f32
    %13 = vector.broadcast %cst_9 : f32 to vector<1x256xf32>
    %14 = arith.divf %13, %12 : vector<1x256xf32>
    %15 = vector.extract_strided_slice %0 {offsets = [0, 0], sizes = [6, 256], strides = [1, 1]} : vector<11x256xf32> to vector<6x256xf32>
    %16 = vector.broadcast %14 : vector<1x256xf32> to vector<6x256xf32>
    %17 = arith.mulf %15, %16 : vector<6x256xf32>
    %18 = tpu.concatenate %17, %5 in 0 : vector<6x256xf32>, vector<3x256xf32> -> vector<9x256xf32>
    %c0_10 = arith.constant 0 : index
    %c0_11 = arith.constant 0 : index
    %19 = vector.load %arg2[%c0_10, %c0_11] : memref<64x9xf32, #tpu.memory_space<vmem>>, vector<64x9xf32>
    %cst_12 = arith.constant dense<0.000000e+00> : vector<64x256xf32>
    %20 = tpu.matmul %19, %18, %cst_12 {dimension_numbers = #tpu.dot_dimension_numbers<[1], [0], [0], [1], [0, 0, 1, 1], [], []>} : vector<64x9xf32>, vector<9x256xf32>, vector<64x256xf32> -> vector<64x256xf32>
    %21 = vector.extract_strided_slice %20 {offsets = [0, 0], sizes = [32, 256], strides = [1, 1]} : vector<64x256xf32> to vector<32x256xf32>
    %22 = vector.broadcast %6 : vector<32x1xf32> to vector<32x256xf32>
    %23 = arith.addf %21, %22 : vector<32x256xf32>
    %24 = vector.extract_strided_slice %20 {offsets = [32, 0], sizes = [32, 256], strides = [1, 1]} : vector<64x256xf32> to vector<32x256xf32>
    %25 = vector.extract_strided_slice %2 {offsets = [0, 0], sizes = [1, 256], strides = [1, 1]} : vector<3x256xf32> to vector<1x256xf32>
    %26 = arith.mulf %25, %25 : vector<1x256xf32>
    %27 = vector.extract_strided_slice %2 {offsets = [1, 0], sizes = [1, 256], strides = [1, 1]} : vector<3x256xf32> to vector<1x256xf32>
    %28 = arith.mulf %27, %27 : vector<1x256xf32>
    %29 = arith.addf %26, %28 : vector<1x256xf32>
    %30 = vector.extract_strided_slice %2 {offsets = [2, 0], sizes = [1, 256], strides = [1, 1]} : vector<3x256xf32> to vector<1x256xf32>
    %31 = arith.mulf %30, %30 : vector<1x256xf32>
    %32 = arith.addf %29, %31 : vector<1x256xf32>
    %33 = math.sqrt %32 : vector<1x256xf32>
    %cst_13 = arith.constant 1.250000e-01 : f32
    %34 = vector.broadcast %cst_13 : f32 to vector<1x256xf32>
    %35 = arith.mulf %12, %34 : vector<1x256xf32>
    %36 = arith.mulf %35, %33 : vector<1x256xf32>
    %cst_14 = arith.constant 1.000000e+00 : f32
    %37 = vector.broadcast %cst_14 : f32 to vector<1x256xf32>
    %cst_15 = arith.constant 0.000000e+00 : f32
    %38 = vector.broadcast %cst_15 : f32 to vector<1x256xf32>
    %cst_16 = arith.constant 0.000000e+00 : f32
    %39 = vector.broadcast %cst_16 : f32 to vector<3x256xf32>
    %cst_17 = arith.constant 0.000000e+00 : f32
    %40 = vector.broadcast %cst_17 : f32 to vector<32x256xf32>
    %cst_18 = arith.constant 0.000000e+00 : f32
    %41 = vector.broadcast %cst_18 : f32 to vector<1x256xf32>
    %cst_19 = arith.constant 0.000000e+00 : f32
    %42 = vector.broadcast %cst_19 : f32 to vector<1x256xf32>
    %43 = arith.mulf %12, %42 : vector<1x256xf32>
    %44 = arith.addf %3, %43 : vector<1x256xf32>
    %45 = vector.broadcast %44 : vector<1x256xf32> to vector<32x256xf32>
    %46 = arith.mulf %45, %24 : vector<32x256xf32>
    %47 = arith.addf %23, %46 : vector<32x256xf32>
    %cst_20 = arith.constant 0.000000e+00 : f32
    %48 = vector.broadcast %cst_20 : f32 to vector<32x256xf32>
    %49 = arith.maximumf %47, %48 : vector<32x256xf32>
    %cst_21 = arith.constant dense<0.000000e+00> : vector<36x256xf32>
    %50 = tpu.matmul %7, %49, %cst_21 {dimension_numbers = #tpu.dot_dimension_numbers<[1], [0], [0], [1], [0, 0, 1, 1], [], []>} : vector<36x32xf32>, vector<32x256xf32>, vector<36x256xf32> -> vector<36x256xf32>
    %51 = vector.broadcast %8 : vector<36x1xf32> to vector<36x256xf32>
    %52 = arith.addf %50, %51 : vector<36x256xf32>
    %53 = vector.extract_strided_slice %52 {offsets = [0, 0], sizes = [3, 256], strides = [1, 1]} : vector<36x256xf32> to vector<3x256xf32>
    %54 = vector.extract_strided_slice %52 {offsets = [3, 0], sizes = [1, 256], strides = [1, 1]} : vector<36x256xf32> to vector<1x256xf32>
    %55 = vector.extract_strided_slice %52 {offsets = [4, 0], sizes = [32, 256], strides = [1, 1]} : vector<36x256xf32> to vector<32x256xf32>
    %cst_22 = arith.constant 0.000000e+00 : f32
    %56 = vector.broadcast %cst_22 : f32 to vector<1x256xf32>
    %57 = arith.subf %56, %54 : vector<1x256xf32>
    %58 = vector.broadcast %11 : vector<1x1xf32> to vector<1x256xf32>
    %59 = arith.mulf %57, %58 : vector<1x256xf32>
    %60 = arith.negf %59 : vector<1x256xf32>
    %61 = math.exp %60 : vector<1x256xf32>
    %cst_23 = arith.constant 1.000000e+00 : f32
    %62 = vector.broadcast %cst_23 : f32 to vector<1x256xf32>
    %63 = arith.addf %62, %61 : vector<1x256xf32>
    %64 = arith.divf %62, %63 : vector<1x256xf32>
    %65 = vector.broadcast %11 : vector<1x1xf32> to vector<1x256xf32>
    %66 = arith.mulf %64, %65 : vector<1x256xf32>
    %cst_24 = arith.constant 0.000000e+00 : f32
    %67 = vector.broadcast %cst_24 : f32 to vector<1x256xf32>
    %68 = arith.subf %67, %66 : vector<1x256xf32>
    %69 = arith.mulf %68, %36 : vector<1x256xf32>
    %70 = math.exp %69 : vector<1x256xf32>
    %cst_25 = arith.constant 1.000000e+00 : f32
    %71 = vector.broadcast %cst_25 : f32 to vector<1x256xf32>
    %72 = arith.subf %71, %70 : vector<1x256xf32>
    %73 = arith.mulf %72, %37 : vector<1x256xf32>
    %cst_26 = arith.constant 1.000000e+00 : f32
    %74 = vector.broadcast %cst_26 : f32 to vector<1x256xf32>
    %75 = arith.subf %74, %72 : vector<1x256xf32>
    %cst_27 = arith.constant 1.000000e-10 : f32
    %76 = vector.broadcast %cst_27 : f32 to vector<1x256xf32>
    %77 = arith.addf %75, %76 : vector<1x256xf32>
    %78 = arith.mulf %37, %77 : vector<1x256xf32>
    %79 = arith.addf %38, %73 : vector<1x256xf32>
    %80 = arith.negf %53 : vector<3x256xf32>
    %81 = math.exp %80 : vector<3x256xf32>
    %cst_28 = arith.constant 1.000000e+00 : f32
    %82 = vector.broadcast %cst_28 : f32 to vector<3x256xf32>
    %83 = arith.addf %82, %81 : vector<3x256xf32>
    %84 = arith.divf %82, %83 : vector<3x256xf32>
    %85 = vector.broadcast %73 : vector<1x256xf32> to vector<3x256xf32>
    %86 = arith.mulf %85, %84 : vector<3x256xf32>
    %87 = arith.addf %39, %86 : vector<3x256xf32>
    %88 = vector.broadcast %73 : vector<1x256xf32> to vector<32x256xf32>
    %89 = arith.mulf %88, %55 : vector<32x256xf32>
    %90 = arith.addf %40, %89 : vector<32x256xf32>
    %91 = arith.mulf %73, %44 : vector<1x256xf32>
    %92 = arith.addf %41, %91 : vector<1x256xf32>
    %cst_29 = arith.constant 1.250000e-01 : f32
    %93 = vector.broadcast %cst_29 : f32 to vector<1x256xf32>
    %94 = arith.mulf %12, %93 : vector<1x256xf32>
    %95 = arith.addf %3, %94 : vector<1x256xf32>
    %96 = vector.broadcast %95 : vector<1x256xf32> to vector<32x256xf32>
    %97 = arith.mulf %96, %24 : vector<32x256xf32>
    %98 = arith.addf %23, %97 : vector<32x256xf32>
    %cst_30 = arith.constant 0.000000e+00 : f32
    %99 = vector.broadcast %cst_30 : f32 to vector<32x256xf32>
    %100 = arith.maximumf %98, %99 : vector<32x256xf32>
    %cst_31 = arith.constant dense<0.000000e+00> : vector<36x256xf32>
    %101 = tpu.matmul %7, %100, %cst_31 {dimension_numbers = #tpu.dot_dimension_numbers<[1], [0], [0], [1], [0, 0, 1, 1], [], []>} : vector<36x32xf32>, vector<32x256xf32>, vector<36x256xf32> -> vector<36x256xf32>
    %102 = vector.broadcast %8 : vector<36x1xf32> to vector<36x256xf32>
    %103 = arith.addf %101, %102 : vector<36x256xf32>
    %104 = vector.extract_strided_slice %103 {offsets = [0, 0], sizes = [3, 256], strides = [1, 1]} : vector<36x256xf32> to vector<3x256xf32>
    %105 = vector.extract_strided_slice %103 {offsets = [3, 0], sizes = [1, 256], strides = [1, 1]} : vector<36x256xf32> to vector<1x256xf32>
    %106 = vector.extract_strided_slice %103 {offsets = [4, 0], sizes = [32, 256], strides = [1, 1]} : vector<36x256xf32> to vector<32x256xf32>
    %cst_32 = arith.constant 0.000000e+00 : f32
    %107 = vector.broadcast %cst_32 : f32 to vector<1x256xf32>
    %108 = arith.subf %107, %105 : vector<1x256xf32>
    %109 = vector.broadcast %11 : vector<1x1xf32> to vector<1x256xf32>
    %110 = arith.mulf %108, %109 : vector<1x256xf32>
    %111 = arith.negf %110 : vector<1x256xf32>
    %112 = math.exp %111 : vector<1x256xf32>
    %cst_33 = arith.constant 1.000000e+00 : f32
    %113 = vector.broadcast %cst_33 : f32 to vector<1x256xf32>
    %114 = arith.addf %113, %112 : vector<1x256xf32>
    %115 = arith.divf %113, %114 : vector<1x256xf32>
    %116 = vector.broadcast %11 : vector<1x1xf32> to vector<1x256xf32>
    %117 = arith.mulf %115, %116 : vector<1x256xf32>
    %cst_34 = arith.constant 0.000000e+00 : f32
    %118 = vector.broadcast %cst_34 : f32 to vector<1x256xf32>
    %119 = arith.subf %118, %117 : vector<1x256xf32>
    %120 = arith.mulf %119, %36 : vector<1x256xf32>
    %121 = math.exp %120 : vector<1x256xf32>
    %cst_35 = arith.constant 1.000000e+00 : f32
    %122 = vector.broadcast %cst_35 : f32 to vector<1x256xf32>
    %123 = arith.subf %122, %121 : vector<1x256xf32>
    %124 = arith.mulf %123, %78 : vector<1x256xf32>
    %cst_36 = arith.constant 1.000000e+00 : f32
    %125 = vector.broadcast %cst_36 : f32 to vector<1x256xf32>
    %126 = arith.subf %125, %123 : vector<1x256xf32>
    %cst_37 = arith.constant 1.000000e-10 : f32
    %127 = vector.broadcast %cst_37 : f32 to vector<1x256xf32>
    %128 = arith.addf %126, %127 : vector<1x256xf32>
    %129 = arith.mulf %78, %128 : vector<1x256xf32>
    %130 = arith.addf %79, %124 : vector<1x256xf32>
    %131 = arith.negf %104 : vector<3x256xf32>
    %132 = math.exp %131 : vector<3x256xf32>
    %cst_38 = arith.constant 1.000000e+00 : f32
    %133 = vector.broadcast %cst_38 : f32 to vector<3x256xf32>
    %134 = arith.addf %133, %132 : vector<3x256xf32>
    %135 = arith.divf %133, %134 : vector<3x256xf32>
    %136 = vector.broadcast %124 : vector<1x256xf32> to vector<3x256xf32>
    %137 = arith.mulf %136, %135 : vector<3x256xf32>
    %138 = arith.addf %87, %137 : vector<3x256xf32>
    %139 = vector.broadcast %124 : vector<1x256xf32> to vector<32x256xf32>
    %140 = arith.mulf %139, %106 : vector<32x256xf32>
    %141 = arith.addf %90, %140 : vector<32x256xf32>
    %142 = arith.mulf %124, %95 : vector<1x256xf32>
    %143 = arith.addf %92, %142 : vector<1x256xf32>
    %cst_39 = arith.constant 2.500000e-01 : f32
    %144 = vector.broadcast %cst_39 : f32 to vector<1x256xf32>
    %145 = arith.mulf %12, %144 : vector<1x256xf32>
    %146 = arith.addf %3, %145 : vector<1x256xf32>
    %147 = vector.broadcast %146 : vector<1x256xf32> to vector<32x256xf32>
    %148 = arith.mulf %147, %24 : vector<32x256xf32>
    %149 = arith.addf %23, %148 : vector<32x256xf32>
    %cst_40 = arith.constant 0.000000e+00 : f32
    %150 = vector.broadcast %cst_40 : f32 to vector<32x256xf32>
    %151 = arith.maximumf %149, %150 : vector<32x256xf32>
    %cst_41 = arith.constant dense<0.000000e+00> : vector<36x256xf32>
    %152 = tpu.matmul %7, %151, %cst_41 {dimension_numbers = #tpu.dot_dimension_numbers<[1], [0], [0], [1], [0, 0, 1, 1], [], []>} : vector<36x32xf32>, vector<32x256xf32>, vector<36x256xf32> -> vector<36x256xf32>
    %153 = vector.broadcast %8 : vector<36x1xf32> to vector<36x256xf32>
    %154 = arith.addf %152, %153 : vector<36x256xf32>
    %155 = vector.extract_strided_slice %154 {offsets = [0, 0], sizes = [3, 256], strides = [1, 1]} : vector<36x256xf32> to vector<3x256xf32>
    %156 = vector.extract_strided_slice %154 {offsets = [3, 0], sizes = [1, 256], strides = [1, 1]} : vector<36x256xf32> to vector<1x256xf32>
    %157 = vector.extract_strided_slice %154 {offsets = [4, 0], sizes = [32, 256], strides = [1, 1]} : vector<36x256xf32> to vector<32x256xf32>
    %cst_42 = arith.constant 0.000000e+00 : f32
    %158 = vector.broadcast %cst_42 : f32 to vector<1x256xf32>
    %159 = arith.subf %158, %156 : vector<1x256xf32>
    %160 = vector.broadcast %11 : vector<1x1xf32> to vector<1x256xf32>
    %161 = arith.mulf %159, %160 : vector<1x256xf32>
    %162 = arith.negf %161 : vector<1x256xf32>
    %163 = math.exp %162 : vector<1x256xf32>
    %cst_43 = arith.constant 1.000000e+00 : f32
    %164 = vector.broadcast %cst_43 : f32 to vector<1x256xf32>
    %165 = arith.addf %164, %163 : vector<1x256xf32>
    %166 = arith.divf %164, %165 : vector<1x256xf32>
    %167 = vector.broadcast %11 : vector<1x1xf32> to vector<1x256xf32>
    %168 = arith.mulf %166, %167 : vector<1x256xf32>
    %cst_44 = arith.constant 0.000000e+00 : f32
    %169 = vector.broadcast %cst_44 : f32 to vector<1x256xf32>
    %170 = arith.subf %169, %168 : vector<1x256xf32>
    %171 = arith.mulf %170, %36 : vector<1x256xf32>
    %172 = math.exp %171 : vector<1x256xf32>
    %cst_45 = arith.constant 1.000000e+00 : f32
    %173 = vector.broadcast %cst_45 : f32 to vector<1x256xf32>
    %174 = arith.subf %173, %172 : vector<1x256xf32>
    %175 = arith.mulf %174, %129 : vector<1x256xf32>
    %cst_46 = arith.constant 1.000000e+00 : f32
    %176 = vector.broadcast %cst_46 : f32 to vector<1x256xf32>
    %177 = arith.subf %176, %174 : vector<1x256xf32>
    %cst_47 = arith.constant 1.000000e-10 : f32
    %178 = vector.broadcast %cst_47 : f32 to vector<1x256xf32>
    %179 = arith.addf %177, %178 : vector<1x256xf32>
    %180 = arith.mulf %129, %179 : vector<1x256xf32>
    %181 = arith.addf %130, %175 : vector<1x256xf32>
    %182 = arith.negf %155 : vector<3x256xf32>
    %183 = math.exp %182 : vector<3x256xf32>
    %cst_48 = arith.constant 1.000000e+00 : f32
    %184 = vector.broadcast %cst_48 : f32 to vector<3x256xf32>
    %185 = arith.addf %184, %183 : vector<3x256xf32>
    %186 = arith.divf %184, %185 : vector<3x256xf32>
    %187 = vector.broadcast %175 : vector<1x256xf32> to vector<3x256xf32>
    %188 = arith.mulf %187, %186 : vector<3x256xf32>
    %189 = arith.addf %138, %188 : vector<3x256xf32>
    %190 = vector.broadcast %175 : vector<1x256xf32> to vector<32x256xf32>
    %191 = arith.mulf %190, %157 : vector<32x256xf32>
    %192 = arith.addf %141, %191 : vector<32x256xf32>
    %193 = arith.mulf %175, %146 : vector<1x256xf32>
    %194 = arith.addf %143, %193 : vector<1x256xf32>
    %cst_49 = arith.constant 3.750000e-01 : f32
    %195 = vector.broadcast %cst_49 : f32 to vector<1x256xf32>
    %196 = arith.mulf %12, %195 : vector<1x256xf32>
    %197 = arith.addf %3, %196 : vector<1x256xf32>
    %198 = vector.broadcast %197 : vector<1x256xf32> to vector<32x256xf32>
    %199 = arith.mulf %198, %24 : vector<32x256xf32>
    %200 = arith.addf %23, %199 : vector<32x256xf32>
    %cst_50 = arith.constant 0.000000e+00 : f32
    %201 = vector.broadcast %cst_50 : f32 to vector<32x256xf32>
    %202 = arith.maximumf %200, %201 : vector<32x256xf32>
    %cst_51 = arith.constant dense<0.000000e+00> : vector<36x256xf32>
    %203 = tpu.matmul %7, %202, %cst_51 {dimension_numbers = #tpu.dot_dimension_numbers<[1], [0], [0], [1], [0, 0, 1, 1], [], []>} : vector<36x32xf32>, vector<32x256xf32>, vector<36x256xf32> -> vector<36x256xf32>
    %204 = vector.broadcast %8 : vector<36x1xf32> to vector<36x256xf32>
    %205 = arith.addf %203, %204 : vector<36x256xf32>
    %206 = vector.extract_strided_slice %205 {offsets = [0, 0], sizes = [3, 256], strides = [1, 1]} : vector<36x256xf32> to vector<3x256xf32>
    %207 = vector.extract_strided_slice %205 {offsets = [3, 0], sizes = [1, 256], strides = [1, 1]} : vector<36x256xf32> to vector<1x256xf32>
    %208 = vector.extract_strided_slice %205 {offsets = [4, 0], sizes = [32, 256], strides = [1, 1]} : vector<36x256xf32> to vector<32x256xf32>
    %cst_52 = arith.constant 0.000000e+00 : f32
    %209 = vector.broadcast %cst_52 : f32 to vector<1x256xf32>
    %210 = arith.subf %209, %207 : vector<1x256xf32>
    %211 = vector.broadcast %11 : vector<1x1xf32> to vector<1x256xf32>
    %212 = arith.mulf %210, %211 : vector<1x256xf32>
    %213 = arith.negf %212 : vector<1x256xf32>
    %214 = math.exp %213 : vector<1x256xf32>
    %cst_53 = arith.constant 1.000000e+00 : f32
    %215 = vector.broadcast %cst_53 : f32 to vector<1x256xf32>
    %216 = arith.addf %215, %214 : vector<1x256xf32>
    %217 = arith.divf %215, %216 : vector<1x256xf32>
    %218 = vector.broadcast %11 : vector<1x1xf32> to vector<1x256xf32>
    %219 = arith.mulf %217, %218 : vector<1x256xf32>
    %cst_54 = arith.constant 0.000000e+00 : f32
    %220 = vector.broadcast %cst_54 : f32 to vector<1x256xf32>
    %221 = arith.subf %220, %219 : vector<1x256xf32>
    %222 = arith.mulf %221, %36 : vector<1x256xf32>
    %223 = math.exp %222 : vector<1x256xf32>
    %cst_55 = arith.constant 1.000000e+00 : f32
    %224 = vector.broadcast %cst_55 : f32 to vector<1x256xf32>
    %225 = arith.subf %224, %223 : vector<1x256xf32>
    %226 = arith.mulf %225, %180 : vector<1x256xf32>
    %cst_56 = arith.constant 1.000000e+00 : f32
    %227 = vector.broadcast %cst_56 : f32 to vector<1x256xf32>
    %228 = arith.subf %227, %225 : vector<1x256xf32>
    %cst_57 = arith.constant 1.000000e-10 : f32
    %229 = vector.broadcast %cst_57 : f32 to vector<1x256xf32>
    %230 = arith.addf %228, %229 : vector<1x256xf32>
    %231 = arith.mulf %180, %230 : vector<1x256xf32>
    %232 = arith.addf %181, %226 : vector<1x256xf32>
    %233 = arith.negf %206 : vector<3x256xf32>
    %234 = math.exp %233 : vector<3x256xf32>
    %cst_58 = arith.constant 1.000000e+00 : f32
    %235 = vector.broadcast %cst_58 : f32 to vector<3x256xf32>
    %236 = arith.addf %235, %234 : vector<3x256xf32>
    %237 = arith.divf %235, %236 : vector<3x256xf32>
    %238 = vector.broadcast %226 : vector<1x256xf32> to vector<3x256xf32>
    %239 = arith.mulf %238, %237 : vector<3x256xf32>
    %240 = arith.addf %189, %239 : vector<3x256xf32>
    %241 = vector.broadcast %226 : vector<1x256xf32> to vector<32x256xf32>
    %242 = arith.mulf %241, %208 : vector<32x256xf32>
    %243 = arith.addf %192, %242 : vector<32x256xf32>
    %244 = arith.mulf %226, %197 : vector<1x256xf32>
    %245 = arith.addf %194, %244 : vector<1x256xf32>
    %cst_59 = arith.constant 5.000000e-01 : f32
    %246 = vector.broadcast %cst_59 : f32 to vector<1x256xf32>
    %247 = arith.mulf %12, %246 : vector<1x256xf32>
    %248 = arith.addf %3, %247 : vector<1x256xf32>
    %249 = vector.broadcast %248 : vector<1x256xf32> to vector<32x256xf32>
    %250 = arith.mulf %249, %24 : vector<32x256xf32>
    %251 = arith.addf %23, %250 : vector<32x256xf32>
    %cst_60 = arith.constant 0.000000e+00 : f32
    %252 = vector.broadcast %cst_60 : f32 to vector<32x256xf32>
    %253 = arith.maximumf %251, %252 : vector<32x256xf32>
    %cst_61 = arith.constant dense<0.000000e+00> : vector<36x256xf32>
    %254 = tpu.matmul %7, %253, %cst_61 {dimension_numbers = #tpu.dot_dimension_numbers<[1], [0], [0], [1], [0, 0, 1, 1], [], []>} : vector<36x32xf32>, vector<32x256xf32>, vector<36x256xf32> -> vector<36x256xf32>
    %255 = vector.broadcast %8 : vector<36x1xf32> to vector<36x256xf32>
    %256 = arith.addf %254, %255 : vector<36x256xf32>
    %257 = vector.extract_strided_slice %256 {offsets = [0, 0], sizes = [3, 256], strides = [1, 1]} : vector<36x256xf32> to vector<3x256xf32>
    %258 = vector.extract_strided_slice %256 {offsets = [3, 0], sizes = [1, 256], strides = [1, 1]} : vector<36x256xf32> to vector<1x256xf32>
    %259 = vector.extract_strided_slice %256 {offsets = [4, 0], sizes = [32, 256], strides = [1, 1]} : vector<36x256xf32> to vector<32x256xf32>
    %cst_62 = arith.constant 0.000000e+00 : f32
    %260 = vector.broadcast %cst_62 : f32 to vector<1x256xf32>
    %261 = arith.subf %260, %258 : vector<1x256xf32>
    %262 = vector.broadcast %11 : vector<1x1xf32> to vector<1x256xf32>
    %263 = arith.mulf %261, %262 : vector<1x256xf32>
    %264 = arith.negf %263 : vector<1x256xf32>
    %265 = math.exp %264 : vector<1x256xf32>
    %cst_63 = arith.constant 1.000000e+00 : f32
    %266 = vector.broadcast %cst_63 : f32 to vector<1x256xf32>
    %267 = arith.addf %266, %265 : vector<1x256xf32>
    %268 = arith.divf %266, %267 : vector<1x256xf32>
    %269 = vector.broadcast %11 : vector<1x1xf32> to vector<1x256xf32>
    %270 = arith.mulf %268, %269 : vector<1x256xf32>
    %cst_64 = arith.constant 0.000000e+00 : f32
    %271 = vector.broadcast %cst_64 : f32 to vector<1x256xf32>
    %272 = arith.subf %271, %270 : vector<1x256xf32>
    %273 = arith.mulf %272, %36 : vector<1x256xf32>
    %274 = math.exp %273 : vector<1x256xf32>
    %cst_65 = arith.constant 1.000000e+00 : f32
    %275 = vector.broadcast %cst_65 : f32 to vector<1x256xf32>
    %276 = arith.subf %275, %274 : vector<1x256xf32>
    %277 = arith.mulf %276, %231 : vector<1x256xf32>
    %cst_66 = arith.constant 1.000000e+00 : f32
    %278 = vector.broadcast %cst_66 : f32 to vector<1x256xf32>
    %279 = arith.subf %278, %276 : vector<1x256xf32>
    %cst_67 = arith.constant 1.000000e-10 : f32
    %280 = vector.broadcast %cst_67 : f32 to vector<1x256xf32>
    %281 = arith.addf %279, %280 : vector<1x256xf32>
    %282 = arith.mulf %231, %281 : vector<1x256xf32>
    %283 = arith.addf %232, %277 : vector<1x256xf32>
    %284 = arith.negf %257 : vector<3x256xf32>
    %285 = math.exp %284 : vector<3x256xf32>
    %cst_68 = arith.constant 1.000000e+00 : f32
    %286 = vector.broadcast %cst_68 : f32 to vector<3x256xf32>
    %287 = arith.addf %286, %285 : vector<3x256xf32>
    %288 = arith.divf %286, %287 : vector<3x256xf32>
    %289 = vector.broadcast %277 : vector<1x256xf32> to vector<3x256xf32>
    %290 = arith.mulf %289, %288 : vector<3x256xf32>
    %291 = arith.addf %240, %290 : vector<3x256xf32>
    %292 = vector.broadcast %277 : vector<1x256xf32> to vector<32x256xf32>
    %293 = arith.mulf %292, %259 : vector<32x256xf32>
    %294 = arith.addf %243, %293 : vector<32x256xf32>
    %295 = arith.mulf %277, %248 : vector<1x256xf32>
    %296 = arith.addf %245, %295 : vector<1x256xf32>
    %cst_69 = arith.constant 6.250000e-01 : f32
    %297 = vector.broadcast %cst_69 : f32 to vector<1x256xf32>
    %298 = arith.mulf %12, %297 : vector<1x256xf32>
    %299 = arith.addf %3, %298 : vector<1x256xf32>
    %300 = vector.broadcast %299 : vector<1x256xf32> to vector<32x256xf32>
    %301 = arith.mulf %300, %24 : vector<32x256xf32>
    %302 = arith.addf %23, %301 : vector<32x256xf32>
    %cst_70 = arith.constant 0.000000e+00 : f32
    %303 = vector.broadcast %cst_70 : f32 to vector<32x256xf32>
    %304 = arith.maximumf %302, %303 : vector<32x256xf32>
    %cst_71 = arith.constant dense<0.000000e+00> : vector<36x256xf32>
    %305 = tpu.matmul %7, %304, %cst_71 {dimension_numbers = #tpu.dot_dimension_numbers<[1], [0], [0], [1], [0, 0, 1, 1], [], []>} : vector<36x32xf32>, vector<32x256xf32>, vector<36x256xf32> -> vector<36x256xf32>
    %306 = vector.broadcast %8 : vector<36x1xf32> to vector<36x256xf32>
    %307 = arith.addf %305, %306 : vector<36x256xf32>
    %308 = vector.extract_strided_slice %307 {offsets = [0, 0], sizes = [3, 256], strides = [1, 1]} : vector<36x256xf32> to vector<3x256xf32>
    %309 = vector.extract_strided_slice %307 {offsets = [3, 0], sizes = [1, 256], strides = [1, 1]} : vector<36x256xf32> to vector<1x256xf32>
    %310 = vector.extract_strided_slice %307 {offsets = [4, 0], sizes = [32, 256], strides = [1, 1]} : vector<36x256xf32> to vector<32x256xf32>
    %cst_72 = arith.constant 0.000000e+00 : f32
    %311 = vector.broadcast %cst_72 : f32 to vector<1x256xf32>
    %312 = arith.subf %311, %309 : vector<1x256xf32>
    %313 = vector.broadcast %11 : vector<1x1xf32> to vector<1x256xf32>
    %314 = arith.mulf %312, %313 : vector<1x256xf32>
    %315 = arith.negf %314 : vector<1x256xf32>
    %316 = math.exp %315 : vector<1x256xf32>
    %cst_73 = arith.constant 1.000000e+00 : f32
    %317 = vector.broadcast %cst_73 : f32 to vector<1x256xf32>
    %318 = arith.addf %317, %316 : vector<1x256xf32>
    %319 = arith.divf %317, %318 : vector<1x256xf32>
    %320 = vector.broadcast %11 : vector<1x1xf32> to vector<1x256xf32>
    %321 = arith.mulf %319, %320 : vector<1x256xf32>
    %cst_74 = arith.constant 0.000000e+00 : f32
    %322 = vector.broadcast %cst_74 : f32 to vector<1x256xf32>
    %323 = arith.subf %322, %321 : vector<1x256xf32>
    %324 = arith.mulf %323, %36 : vector<1x256xf32>
    %325 = math.exp %324 : vector<1x256xf32>
    %cst_75 = arith.constant 1.000000e+00 : f32
    %326 = vector.broadcast %cst_75 : f32 to vector<1x256xf32>
    %327 = arith.subf %326, %325 : vector<1x256xf32>
    %328 = arith.mulf %327, %282 : vector<1x256xf32>
    %cst_76 = arith.constant 1.000000e+00 : f32
    %329 = vector.broadcast %cst_76 : f32 to vector<1x256xf32>
    %330 = arith.subf %329, %327 : vector<1x256xf32>
    %cst_77 = arith.constant 1.000000e-10 : f32
    %331 = vector.broadcast %cst_77 : f32 to vector<1x256xf32>
    %332 = arith.addf %330, %331 : vector<1x256xf32>
    %333 = arith.mulf %282, %332 : vector<1x256xf32>
    %334 = arith.addf %283, %328 : vector<1x256xf32>
    %335 = arith.negf %308 : vector<3x256xf32>
    %336 = math.exp %335 : vector<3x256xf32>
    %cst_78 = arith.constant 1.000000e+00 : f32
    %337 = vector.broadcast %cst_78 : f32 to vector<3x256xf32>
    %338 = arith.addf %337, %336 : vector<3x256xf32>
    %339 = arith.divf %337, %338 : vector<3x256xf32>
    %340 = vector.broadcast %328 : vector<1x256xf32> to vector<3x256xf32>
    %341 = arith.mulf %340, %339 : vector<3x256xf32>
    %342 = arith.addf %291, %341 : vector<3x256xf32>
    %343 = vector.broadcast %328 : vector<1x256xf32> to vector<32x256xf32>
    %344 = arith.mulf %343, %310 : vector<32x256xf32>
    %345 = arith.addf %294, %344 : vector<32x256xf32>
    %346 = arith.mulf %328, %299 : vector<1x256xf32>
    %347 = arith.addf %296, %346 : vector<1x256xf32>
    %cst_79 = arith.constant 7.500000e-01 : f32
    %348 = vector.broadcast %cst_79 : f32 to vector<1x256xf32>
    %349 = arith.mulf %12, %348 : vector<1x256xf32>
    %350 = arith.addf %3, %349 : vector<1x256xf32>
    %351 = vector.broadcast %350 : vector<1x256xf32> to vector<32x256xf32>
    %352 = arith.mulf %351, %24 : vector<32x256xf32>
    %353 = arith.addf %23, %352 : vector<32x256xf32>
    %cst_80 = arith.constant 0.000000e+00 : f32
    %354 = vector.broadcast %cst_80 : f32 to vector<32x256xf32>
    %355 = arith.maximumf %353, %354 : vector<32x256xf32>
    %cst_81 = arith.constant dense<0.000000e+00> : vector<36x256xf32>
    %356 = tpu.matmul %7, %355, %cst_81 {dimension_numbers = #tpu.dot_dimension_numbers<[1], [0], [0], [1], [0, 0, 1, 1], [], []>} : vector<36x32xf32>, vector<32x256xf32>, vector<36x256xf32> -> vector<36x256xf32>
    %357 = vector.broadcast %8 : vector<36x1xf32> to vector<36x256xf32>
    %358 = arith.addf %356, %357 : vector<36x256xf32>
    %359 = vector.extract_strided_slice %358 {offsets = [0, 0], sizes = [3, 256], strides = [1, 1]} : vector<36x256xf32> to vector<3x256xf32>
    %360 = vector.extract_strided_slice %358 {offsets = [3, 0], sizes = [1, 256], strides = [1, 1]} : vector<36x256xf32> to vector<1x256xf32>
    %361 = vector.extract_strided_slice %358 {offsets = [4, 0], sizes = [32, 256], strides = [1, 1]} : vector<36x256xf32> to vector<32x256xf32>
    %cst_82 = arith.constant 0.000000e+00 : f32
    %362 = vector.broadcast %cst_82 : f32 to vector<1x256xf32>
    %363 = arith.subf %362, %360 : vector<1x256xf32>
    %364 = vector.broadcast %11 : vector<1x1xf32> to vector<1x256xf32>
    %365 = arith.mulf %363, %364 : vector<1x256xf32>
    %366 = arith.negf %365 : vector<1x256xf32>
    %367 = math.exp %366 : vector<1x256xf32>
    %cst_83 = arith.constant 1.000000e+00 : f32
    %368 = vector.broadcast %cst_83 : f32 to vector<1x256xf32>
    %369 = arith.addf %368, %367 : vector<1x256xf32>
    %370 = arith.divf %368, %369 : vector<1x256xf32>
    %371 = vector.broadcast %11 : vector<1x1xf32> to vector<1x256xf32>
    %372 = arith.mulf %370, %371 : vector<1x256xf32>
    %cst_84 = arith.constant 0.000000e+00 : f32
    %373 = vector.broadcast %cst_84 : f32 to vector<1x256xf32>
    %374 = arith.subf %373, %372 : vector<1x256xf32>
    %375 = arith.mulf %374, %36 : vector<1x256xf32>
    %376 = math.exp %375 : vector<1x256xf32>
    %cst_85 = arith.constant 1.000000e+00 : f32
    %377 = vector.broadcast %cst_85 : f32 to vector<1x256xf32>
    %378 = arith.subf %377, %376 : vector<1x256xf32>
    %379 = arith.mulf %378, %333 : vector<1x256xf32>
    %380 = arith.addf %334, %379 : vector<1x256xf32>
    %381 = arith.negf %359 : vector<3x256xf32>
    %382 = math.exp %381 : vector<3x256xf32>
    %cst_86 = arith.constant 1.000000e+00 : f32
    %383 = vector.broadcast %cst_86 : f32 to vector<3x256xf32>
    %384 = arith.addf %383, %382 : vector<3x256xf32>
    %385 = arith.divf %383, %384 : vector<3x256xf32>
    %386 = vector.broadcast %379 : vector<1x256xf32> to vector<3x256xf32>
    %387 = arith.mulf %386, %385 : vector<3x256xf32>
    %388 = arith.addf %342, %387 : vector<3x256xf32>
    %389 = vector.broadcast %379 : vector<1x256xf32> to vector<32x256xf32>
    %390 = arith.mulf %389, %361 : vector<32x256xf32>
    %391 = arith.addf %345, %390 : vector<32x256xf32>
    %392 = arith.mulf %379, %350 : vector<1x256xf32>
    %393 = arith.addf %347, %392 : vector<1x256xf32>
    %cst_87 = arith.constant 8.750000e-01 : f32
    %394 = vector.broadcast %cst_87 : f32 to vector<1x256xf32>
    %395 = arith.mulf %12, %394 : vector<1x256xf32>
    %396 = arith.addf %3, %395 : vector<1x256xf32>
    %397 = vector.broadcast %396 : vector<1x256xf32> to vector<32x256xf32>
    %398 = arith.mulf %397, %24 : vector<32x256xf32>
    %399 = arith.addf %23, %398 : vector<32x256xf32>
    %cst_88 = arith.constant 0.000000e+00 : f32
    %400 = vector.broadcast %cst_88 : f32 to vector<32x256xf32>
    %401 = arith.maximumf %399, %400 : vector<32x256xf32>
    %cst_89 = arith.constant dense<0.000000e+00> : vector<36x256xf32>
    %402 = tpu.matmul %7, %401, %cst_89 {dimension_numbers = #tpu.dot_dimension_numbers<[1], [0], [0], [1], [0, 0, 1, 1], [], []>} : vector<36x32xf32>, vector<32x256xf32>, vector<36x256xf32> -> vector<36x256xf32>
    %403 = vector.broadcast %8 : vector<36x1xf32> to vector<36x256xf32>
    %404 = arith.addf %402, %403 : vector<36x256xf32>
    %405 = vector.extract_strided_slice %404 {offsets = [0, 0], sizes = [3, 256], strides = [1, 1]} : vector<36x256xf32> to vector<3x256xf32>
    %406 = vector.extract_strided_slice %404 {offsets = [3, 0], sizes = [1, 256], strides = [1, 1]} : vector<36x256xf32> to vector<1x256xf32>
    %407 = vector.extract_strided_slice %404 {offsets = [4, 0], sizes = [32, 256], strides = [1, 1]} : vector<36x256xf32> to vector<32x256xf32>
    %cst_90 = arith.constant 1.000000e+00 : f32
    %408 = vector.broadcast %cst_90 : f32 to vector<1x256xf32>
    %409 = arith.subf %408, %380 : vector<1x256xf32>
    %410 = arith.negf %405 : vector<3x256xf32>
    %411 = math.exp %410 : vector<3x256xf32>
    %cst_91 = arith.constant 1.000000e+00 : f32
    %412 = vector.broadcast %cst_91 : f32 to vector<3x256xf32>
    %413 = arith.addf %412, %411 : vector<3x256xf32>
    %414 = arith.divf %412, %413 : vector<3x256xf32>
    %415 = vector.broadcast %409 : vector<1x256xf32> to vector<3x256xf32>
    %416 = arith.mulf %415, %414 : vector<3x256xf32>
    %417 = arith.addf %388, %416 : vector<3x256xf32>
    %418 = vector.broadcast %409 : vector<1x256xf32> to vector<32x256xf32>
    %419 = arith.mulf %418, %407 : vector<32x256xf32>
    %420 = arith.addf %391, %419 : vector<32x256xf32>
    %421 = arith.mulf %409, %396 : vector<1x256xf32>
    %422 = arith.addf %393, %421 : vector<1x256xf32>
    %cst_92 = arith.constant 2.000000e+00 : f32
    %423 = vector.broadcast %cst_92 : f32 to vector<3x256xf32>
    %424 = arith.mulf %423, %417 : vector<3x256xf32>
    %cst_93 = arith.constant -1.000000e+00 : f32
    %425 = vector.broadcast %cst_93 : f32 to vector<3x256xf32>
    %426 = arith.addf %425, %424 : vector<3x256xf32>
    %427 = vector.broadcast %422 : vector<1x256xf32> to vector<3x256xf32>
    %428 = arith.mulf %2, %427 : vector<3x256xf32>
    %429 = arith.addf %1, %428 : vector<3x256xf32>
    %cst_94 = arith.constant 0.000000e+00 : f32
    %430 = vector.broadcast %cst_94 : f32 to vector<1x256xf32>
    %431 = tpu.concatenate %426, %409, %429, %430 in 0 : vector<3x256xf32>, vector<1x256xf32>, vector<3x256xf32>, vector<1x256xf32> -> vector<8x256xf32>
    %c0_95 = arith.constant 0 : index
    %c0_96 = arith.constant 0 : index
    %432 = vector.load %arg7[%c0_95, %c0_96] : memref<48x256xf32, #tpu.memory_space<vmem>>, vector<8x256xf32>
    tpu.vector_store %arg7[%c0_95, %c0_96], %431 {strides = array<i32>} : memref<48x256xf32, #tpu.memory_space<vmem>>, vector<8x256xf32>,
    %c8 = arith.constant 8 : index
    %c0_97 = arith.constant 0 : index
    %433 = vector.load %arg7[%c8, %c0_97] : memref<48x256xf32, #tpu.memory_space<vmem>>, vector<32x256xf32>
    tpu.vector_store %arg7[%c8, %c0_97], %420 {strides = array<i32>} : memref<48x256xf32, #tpu.memory_space<vmem>>, vector<32x256xf32>,
    %434 = tpu.concatenate %54, %105, %156, %207, %258, %309, %360, %406 in 0 : vector<1x256xf32>, vector<1x256xf32>, vector<1x256xf32>, vector<1x256xf32>, vector<1x256xf32>, vector<1x256xf32>, vector<1x256xf32>, vector<1x256xf32> -> vector<8x256xf32>
    %c40 = arith.constant 40 : index
    %c0_98 = arith.constant 0 : index
    %435 = vector.load %arg7[%c40, %c0_98] : memref<48x256xf32, #tpu.memory_space<vmem>>, vector<8x256xf32>
    tpu.vector_store %arg7[%c40, %c0_98], %434 {strides = array<i32>} : memref<48x256xf32, #tpu.memory_space<vmem>>, vector<8x256xf32>,
    return
  }
  func.func @transform_0(%arg0: i32) -> (i32, i32) {
    %c0_i32 = arith.constant 0 : i32
    %c0_i32_0 = arith.constant 0 : i32
    return %c0_i32, %arg0 : i32, i32
  }
  func.func @transform_1(%arg0: i32) -> (i32, i32) {
    %c0_i32 = arith.constant 0 : i32
    %c0_i32_0 = arith.constant 0 : i32
    %c0_i32_1 = arith.constant 0 : i32
    return %c0_i32, %c0_i32_0 : i32, i32
  }
  func.func @transform_2(%arg0: i32) -> (i32, i32) {
    %c0_i32 = arith.constant 0 : i32
    %c0_i32_0 = arith.constant 0 : i32
    %c0_i32_1 = arith.constant 0 : i32
    return %c0_i32, %c0_i32_0 : i32, i32
  }
  func.func @transform_3(%arg0: i32) -> (i32, i32) {
    %c0_i32 = arith.constant 0 : i32
    %c0_i32_0 = arith.constant 0 : i32
    %c0_i32_1 = arith.constant 0 : i32
    return %c0_i32, %c0_i32_0 : i32, i32
  }
  func.func @transform_4(%arg0: i32) -> (i32, i32) {
    %c0_i32 = arith.constant 0 : i32
    %c0_i32_0 = arith.constant 0 : i32
    %c0_i32_1 = arith.constant 0 : i32
    return %c0_i32, %c0_i32_0 : i32, i32
  }
  func.func @transform_5(%arg0: i32) -> (i32, i32) {
    %c0_i32 = arith.constant 0 : i32
    %c0_i32_0 = arith.constant 0 : i32
    %c0_i32_1 = arith.constant 0 : i32
    return %c0_i32, %c0_i32_0 : i32, i32
  }
  func.func @transform_6(%arg0: i32) -> (i32, i32) {
    %c0_i32 = arith.constant 0 : i32
    %c0_i32_0 = arith.constant 0 : i32
    return %c0_i32, %arg0 : i32, i32
  }
}

</mosaic_0001>

<bundles_post_ra>
// kernel: tpu_custom_call.1
= control target key start
LH: loop header
LB: loop body
LE: loop exit
PB: predicated region body
PF: predicated region fallthrough
CT: control target
= control target key end

     0   :  { %s4908_s0 = inlined_call_operand.vmem [shape: f32[11,512], index: 0, kind: input, shape index: {}]   ;;  %s4909_s1 = inlined_call_operand.vmem [shape: f32[64,9], index: 1, kind: input, shape index: {}]   ;;  %s4910_s2 = inlined_call_operand.vmem [shape: f32[32,1], index: 2, kind: input, shape index: {}]   ;;  %s4911_s3 = inlined_call_operand.vmem [shape: f32[36,32], index: 3, kind: input, shape index: {}]   ;;  %s4912_s4 = inlined_call_operand.vmem [shape: f32[36,1], index: 4, kind: input, shape index: {}]   ;;  %s4913_s5 = inlined_call_operand.<no memory space> [shape: f32[1,1], index: 5, kind: input, shape index: {}]   ;;  %s4914_s6 = inlined_call_operand.hbm [shape: f32[48,512], index: 6, kind: output, shape index: {}]  }
   0x1   :  { %v11_v0 = vstv %s4913_s5 }
   0x2   :  { %12 = vst [vmem:[#allocation2] sm:$0x1] %v11_v0 }
   0x3   :  { %13 = vsyncpa [#allocation5], 0 }
   0x4   :  { %15 = vsyncpa [#allocation5 + $0x1], 0  ;;  %s3103_s23 = smov 0   ;;  %s3105_s24 = smov 0  }
   0x5   :  { %s3107_s25 = smov 0   ;;  %s3109_s26 = smov 0  }
   0x6 LB: > { %s2615_s5 = sadd.s32 4294967295, %s3056_s26   ;;  %s2616_s27 = sadd.s32 4294967294, %s3056_s26   ;;  %s3056_s26 = sphi %s3109_s26, %s5216_s26   ;;  %s3052_s25 = sphi %s3107_s25, %s5215_s25   ;;  %s3048_s24 = sphi %s3105_s24, %s5214_s24   ;;  %s3044_s23 = sphi %s3103_s23, %s5213_s23  }
   0x7   : > { %s3126_s28 = sadd.s32 1, %s3056_s26   ;;  %s28_s29 = sadd.s32 1, %s3052_s25 }
   0x8   : > { %s25_s30 = ssub.s32 %s3056_s26, %s3126_s28  ;;  %p35_p0 = scmp.ne.s32.totalorder %s3052_s25, %s3048_s24 }
   0x9   : > { %p26_p1 = scmp.eq.s32.totalorder %s25_s30, 0  ;;  %p36_p2 = scmp.eq.s32.totalorder %s3056_s26, 0 }
   0xa   : > { %p170_p3 = scmp.eq.s32.totalorder %s2615_s5, 1  ;;  %p175_p4 = scmp.ne.s32.totalorder %s3048_s24, %s3044_s23 }
   0xb   : > { %s3139_s7 = scalar_select %p26_p1, %s3052_s25, %s28_s29  }
   0xc   : > { %p37_p5 = por %p36_p2, %p35_p0  ;;  %p3141_p6 = por %p170_p3, %p35_p0 }
   0xd   : > { %p176_p7 = scmp.eq.s32.totalorder %s2616_s27, 1  ;;  %p2618_p9 = scmp.ge.s32.totalorder %s3056_s26, 2 }
   0xf   : > { %p3145_p8 = por %p176_p7, %p175_p4  ;;  %207 = sbr.rel (%p2618_p9) target bundleno = 29 (0x1d), region = 36 }
  0x16   : > { %210 = sbr.rel (!%p37_p5) target bundleno = 29 (0x1d), region = 40  ;;  %s212_s10 = sand.u32 (%p37_p5), 1, %s3052_s25  }
  0x17   : > { %s2708_s11 = sshll.u32 (%p37_p5), %s3056_s26, 4  ;;  %s2619_s12 = sshll.u32 (%p37_p5), %s212_s10, 5 }
  0x18   : > { %s217_s15 = scalar_lea.vmem (%p37_p5), %s4908_s0, %s2708_s11  ;;  %s214_s16 = scalar_lea.vmem (%p37_p5), [#allocation3], %s2619_s12 }
  0x19   : > { %v230_v1 = vld [vmem:[%s217_s15] sm:$0xff] (%p37_p5)  ;;  %v232_v2 = vld [vmem:[%s217_s15 + $0x8] sm:$0xff] (%p37_p5) }
  0x1a   : > { %v234_v3 = vld [vmem:[%s217_s15 + $0x20] sm:$0xff] (%p37_p5)  ;;  %231 = vst [vmem:[%s214_s16] sm:$0xff] (%p37_p5), %v230_v1  ;;  %233 = vst [vmem:[%s214_s16 + $0x8] sm:$0xff] (%p37_p5), %v232_v2  ;;  %v236_v4 = vld [vmem:[%s217_s15 + $0x28] sm:$0xff] (%p37_p5) }
  0x1b   : > { %235 = vst [vmem:[%s214_s16 + $0x10] sm:$0xff] (%p37_p5), %v234_v3  ;;  %237 = vst [vmem:[%s214_s16 + $0x18] sm:$0xff] (%p37_p5), %v236_v4 }
  0x1d PF: > { %p2622_p10 = scmp.ge.s32.totalorder %s3056_s26, 1  ;;  %p242_p11 = scmp.lt.s32.totalorder %s3056_s26, 3 }
  0x1f   : > { %p243_p12 = pnand %p2622_p10, %p242_p11 }
  0x21   : > { %246 = sbr.rel (%p243_p12) target bundleno = 741 (0x2e5), region = 63 }
  0x28   : > { %s3160_s17 = sand.u32 1, %s3048_s24   ;;  %v4915_v5 = vmov 0.0   ;;  %v3059_v9 = vmov 0   ;;  %v284_v11 = vld [vmem:[%s4910_s2] sm:$0xff]  ;;  %v286_v13 = vld [vmem:[%s4910_s2 + $0x10] sm:$0xff]  ;;  %v285_v15 = vld [vmem:[%s4910_s2 + $0x8] sm:$0xff]  ;;  %v313_v18 = vlaneseq }
  0x29   : > { %s2623_s18 = sshll.u32 %s3160_s17, 5  ;;  %434 = vmatprep.mubr.f32.mxu0 %v4915_v5  ;;  %698 = vmatprep.mubr.f32.mxu1 %v4915_v5  ;;  %v298_v16 = vld [vmem:[#allocation2] sm:$0x1]  ;;  %v287_v17 = vld [vmem:[%s4910_s2 + $0x18] sm:$0xff]  ;;  %v294_v21 = vld [vmem:[%s4912_s4 + $0x8] sm:$0xff]  ;;  %vm329_vm0 = vcmask 1045504  }
  0x2a   : > { %s3165_s19 = scalar_lea.vmem [#allocation3], %s2623_s18  ;;  %2830 = vset.pattern.permute.xlu0 %v3059_v9  ;;  %2831 = vset.pattern.permute.xlu1 %v3059_v9  ;;  %v293_v19 = vld [vmem:[%s4912_s4] sm:$0xff]  ;;  %v3198_v20 = vshrl.u32 %v313_v18, 7  ;;  %v296_v28 = vld [vmem:[%s4912_s4 + $0x18] sm:$0xff]  ;;  %vm365_vm1 = vcmask 1040384   ;;  %v295_v35 = vld [vmem:[%s4912_s4 + $0x10] sm:$0xff] }
  0x2b   : > { %v3168_v6 = vld [vmem:[%s3165_s19] sm:$0xff]  ;;  %v3171_v7 = vld [vmem:[%s3165_s19 + $0x8] sm:$0xff]  ;;  %485 = vperm.xlu0 %2830, %v284_v11   ;;  %495 = vperm.xlu1 %2831, %v286_v13   ;;  %v283_v24 = vld [vmem:[%s3165_s19 + $0x18] sm:$0x7]  ;;  %vm3060_vm2 = vmmov 1   ;;  %vm340_vm4 = vcmask 72704  }
  0x2c   : > { %v304_v8 = vrot.slane %v3171_v7, 7  ;;  %v303_v10 = vrot.slane %v3168_v6, 7  ;;  %v315_v22 = vsub.s32 7, %v3198_v20  ;;  %v282_v27 = vld [vmem:[%s3165_s19 + $0x10] sm:$0x7]  ;;  %v326_v32 = vrot.slane %v283_v24, 2  ;;  %vm2711_vm3 = vmpackc.low %vm365_vm1, %vm3060_vm2 }
  0x2d   : > { %v325_v34 = vrot.slane %v282_v27, 2  ;;  %v297_v41 = vld [vmem:[%s4912_s4 + $0x20] sm:$0xf]  ;;  %v333_v44 = vld [vmem:[%s4909_s1 + $0x8] sm:$0xff]  ;;  %v334_v45 = vld [vmem:[%s4909_s1 + $0x10] sm:$0xff]  ;;  %v3261_v51 = vsub.s32 6, %v3198_v20 }
  0x2e   : > { %v3179_v12 = vsub.f32 %v3171_v7, %v304_v8  ;;  %v3185_v14 = vsub.f32 %v3168_v6, %v303_v10  ;;  %v332_v43 = vld [vmem:[%s4909_s1] sm:$0xff]  ;;  %v335_v46 = vld [vmem:[%s4909_s1 + $0x18] sm:$0xff]  ;;  %v337_v48 = vld [vmem:[%s4909_s1 + $0x28] sm:$0xff]  ;;  %vm618_vm5 = vcmask 261120   ;;  %vm2518_vm10 = vcmask 1041408   ;;  %s2784_s22 = smul.u32 96, %s3160_s17 }
  0x2f   : > { %490 = vperm.xlu0 %2830, %v285_v15   ;;  %500 = vperm.xlu1 %2831, %v287_v17   ;;  %v336_v47 = vld [vmem:[%s4909_s1 + $0x20] sm:$0xff]  ;;  %v338_v49 = vld [vmem:[%s4909_s1 + $0x30] sm:$0xff]  ;;  %v339_v50 = vld [vmem:[%s4909_s1 + $0x38] sm:$0xff]  ;;  %vm2419_vm11 = vcmask 1042432   ;;  %vm2422_vm12 = vcmask 1043456   ;;  %vm2525_vm13 = vcmask 1044480  }
  0x30   : > { %2832 = vrcp.f32 %v3179_v12  ;;  %v552_v52 = vmul.f32 0.0, %v3179_v12  ;;  %v1060_v53 = vmul.f32 0.25, %v3179_v12  ;;  %v551_v54 = vmul.f32 0.0, %v3185_v14  ;;  %s4331_s27 = scalar_lea.vmem [#allocation4], %s2784_s22  ;;  %s2709_s29 = sshll.u32 %s2615_s5, 8 }
  0x31   : > { %2834 = vrcp.f32 %v3185_v14  ;;  %v1059_v55 = vmul.f32 0.25, %v3185_v14  ;;  %v3270_v57 = vmul.f32 0.125, %v3179_v12  ;;  %v1518_v58 = vmul.f32 0.5, %v3179_v12  ;;  %s4862_s11 = scalar_lea.hbm %s4914_s6, %s2709_s29  ;;  %s2535_s5 = scalar_lea.sflag [#allocation5], %s3160_s17 }
  0x32   : > { %2836 = vrcp.f32 %v298_v16  ;;  %v3274_v59 = vmul.f32 0.125, %v3185_v14  ;;  %v1517_v60 = vmul.f32 0.5, %v3185_v14  ;;  %v1289_v62 = vmul.f32 0.375, %v3179_v12  ;;  %s3061_s13 = smov [#allocation4]  }
  0x33   : > { %595 = vperm.xlu0 %2830, %v293_v19   ;;  %v1976_v63 = vmul.f32 0.75, %v3179_v12  ;;  %v1288_v0 = vmul.f32 0.375, %v3185_v14  ;;  %v1975_v1 = vmul.f32 0.75, %v3185_v14  ;;  %v1747_v2 = vmul.f32 0.625, %v3179_v12  ;;  %s2998_s14 = sshll.u32 %s3061_s13, 4  ;;  %s2999_s14 = int_to_ptr.vmem [resolvable:$false] %s2998_s14 }
  0x34   : > { %v2199_v3 = vmul.f32 0.875, %v3179_v12  ;;  %v1746_v4 = vmul.f32 0.625, %v3185_v14  ;;  %v2198_v8 = vmul.f32 0.875, %v3185_v14  ;;  %v556_v9 = vrot.slane %v552_v52, 1  ;;  %s3000_s15 = scalar_lea.vmem %s2999_s14, 3072 }
  0x35   : > { %v1064_v10 = vrot.slane %v1060_v53, 1  ;;  %v555_v11 = vrot.slane %v551_v54, 1  ;;  %v1063_v13 = vrot.slane %v1059_v55, 1  ;;  %v835_v16 = vrot.slane %v3270_v57, 1 }
  0x36   : > { %v1522_v17 = vrot.slane %v1518_v58, 1  ;;  %v834_v18 = vrot.slane %v3274_v59, 1  ;;  %v1521_v19 = vrot.slane %v1517_v60, 1  ;;  %v1292_v24 = vrot.slane %v1288_v0, 1 }
  0x37   : > { %600 = vperm.xlu0 %2830, %v294_v21   ;;  %v1979_v12 = vrot.slane %v1975_v1, 1  ;;  %v2203_v27 = vrot.slane %v2199_v3, 1  ;;  %v1750_v14 = vrot.slane %v1746_v4, 1  ;;  %vm2425_vm14 = vcmask 1046528  }
  0x3a   : > { %v2833_v23 = vpop.eup %2832 }
  0x3b   : > { %v2835_v25 = vpop.eup %2834  ;;  %v312_v26 = vmul.f32 2.0, %v2833_v23  ;;  %610 = vperm.xlu0 %2830, %v296_v28   ;;  %v1980_v23 = vrot.slane %v1976_v63, 1  ;;  %v2202_v28 = vrot.slane %v2198_v8, 1 }
  0x3c   : > { %v2837_v29 = vpop.eup %2836  ;;  %v310_v30 = vmul.f32 2.0, %v2835_v25 }
  0x3d   : > { %v320_v31 = vrot.slane %v312_v26, %v315_v22  ;;  %733 = vperm.xlu1 %2831, %v2837_v29   ;;  %v1751_v26 = vrot.slane %v1747_v2, 1 }
  0x3e   : > { %v316_v33 = vrot.slane %v310_v30, %v315_v22  ;;  %v1293_v22 = vrot.slane %v1289_v62, 1  ;;  %v3290_v30 = vadd.f32 %v556_v9, %v3171_v7 }
  0x3f   : > { %v322_v36 = vmul.f32 %v320_v31, %v3171_v7  ;;  %v3293_v31 = vadd.f32 %v1064_v10, %v3171_v7 }
  0x40   : > { %v321_v37 = vmul.f32 %v316_v33, %v3168_v6  ;;  %v3299_v33 = vadd.f32 %v1063_v13, %v3168_v6 }
  0x41   : > { %v331_v38 = vsel %vm329_vm0, %v322_v36, %v326_v32  ;;  %605 = vperm.xlu1 %2831, %v295_v35   ;;  %4967 = vst [vmem:[#allocation7_spill] sm:$0xff] %v3293_v31  ;;  %v3302_v35 = vadd.f32 %v835_v16, %v3171_v7  ;;  %v3305_v36 = vadd.f32 %v1522_v17, %v3171_v7 }
  0x42   : > { %v2710_v39 = vpack.c.bf16 %v326_v32, %v331_v38  ;;  %v330_v40 = vsel %vm329_vm0, %v321_v37, %v325_v34  ;;  %v3296_v32 = vadd.f32 %v555_v11, %v3168_v6  ;;  %4969 = vst [vmem:[#allocation9_spill] sm:$0xff] %v3299_v33  ;;  %v3308_v37 = vadd.f32 %v834_v18, %v3168_v6 }
  0x43   : > { %v2713_v42 = vpack.c.bf16 %v325_v34, %v330_v40  ;;  %4970 = vst [vmem:[#allocation10_spill] sm:$0xff] %v3302_v35  ;;  %4971 = vst [vmem:[#allocation11_spill] sm:$0xff] %v3305_v36  ;;  %v3311_v38 = vadd.f32 %v1521_v19, %v3168_v6  ;;  %v3314_v40 = vadd.f32 %v1293_v22, %v3171_v7 }
  0x44   : > { %2712 = vmatprep.subr.msk.bf16.mxu0 %vm2711_vm3, %v2710_v39  ;;  %4968 = vst [vmem:[#allocation8_spill] sm:$0xff] %v3296_v32  ;;  %4972 = vst [vmem:[#allocation12_spill] sm:$0xff] %v3308_v37  ;;  %v3359_v54 = vrot.slane %v3305_v36, %v3261_v51  ;;  %v3363_v55 = vrot.slane %v3308_v37, %v3261_v51 }
  0x45   : > { %2715 = vmatpush1.bf16.msk.msra.mxu0 %vm2711_vm3, %v2713_v42  ;;  %615 = vperm.xlu1 %2831, %v297_v41   ;;  %4973 = vst [vmem:[#allocation13_spill] sm:$0xff] %v3311_v38  ;;  %4974 = vst [vmem:[#allocation14_spill] sm:$0xff] %v3314_v40  ;;  %v3317_v41 = vadd.f32 %v1980_v23, %v3171_v7  ;;  %v3320_v42 = vadd.f32 %v1292_v24, %v3168_v6 }
  0x46   : > { %v3367_v58 = vrot.slane %v3311_v38, %v3261_v51  ;;  %v3371_v63 = vrot.slane %v3314_v40, %v3261_v51 }
  0x47   : > { %4975 = vst [vmem:[#allocation15_spill] sm:$0xff] %v3317_v41  ;;  %4976 = vst [vmem:[#allocation16_spill] sm:$0xff] %v3320_v42  ;;  %v3375_v0 = vrot.slane %v3317_v41, %v3261_v51  ;;  %v3379_v1 = vrot.slane %v3320_v42, %v3261_v51 }
  0x48   : > { %2626 = vmatmul.mubr.msk.f32.vlgmr.msra.gmra.mrb[0].mxu0 %vm340_vm4, %v332_v43  ;;  %v3323_v43 = vadd.f32 %v1979_v12, %v3168_v6 }
  0x49   : > { %440 = vmatprep.mubr.f32.mxu0 %v4915_v5 }
  0x4a   : > { %4977 = vst [vmem:[#allocation17_spill] sm:$0xff] %v3323_v43  ;;  %v3383_v2 = vrot.slane %v3323_v43, %v3261_v51 }
  0x4c   : > { %2627 = vmatmul.mubr.msk.f32.gmra.mrb[2].mxu0 %vm340_vm4, %v333_v44  ;;  %v3326_v44 = vadd.f32 %v1751_v26, %v3171_v7 }
  0x4d   : > { %446 = vmatprep.mubr.f32.mxu0 %v4915_v5 }
  0x4e   : > { %4978 = vst [vmem:[#allocation18_spill] sm:$0xff] %v3326_v44  ;;  %v3387_v3 = vrot.slane %v3326_v44, %v3261_v51 }
  0x50   : > { %2628 = vmatmul.mubr.msk.f32.gmra.mrb[4].mxu0 %vm340_vm4, %v334_v45  ;;  %v3329_v45 = vadd.f32 %v2203_v27, %v3171_v7  ;;  %v3351_v7 = vrot.slane %v3299_v33, %v3261_v51 }
  0x51   : > { %452 = vmatprep.mubr.f32.mxu0 %v4915_v5 }
  0x52   : > { %4979 = vst [vmem:[#allocation19_spill] sm:$0xff] %v3329_v45  ;;  %v3391_v4 = vrot.slane %v3329_v45, %v3261_v51 }
  0x54   : > { %2629 = vmatmul.mubr.msk.f32.gmra.mrb[6].mxu0 %vm340_vm4, %v335_v46  ;;  %v3332_v46 = vadd.f32 %v1750_v14, %v3168_v6 }
  0x55   : > { %458 = vmatprep.mubr.f32.mxu0 %v4915_v5 }
  0x56   : > { %4980 = vst [vmem:[#allocation20_spill] sm:$0xff] %v3332_v46  ;;  %v3395_v8 = vrot.slane %v3332_v46, %v3261_v51 }
  0x58   : > { %2630 = vmatmul.mubr.msk.f32.gmra.mrb[8].mxu0 %vm340_vm4, %v336_v47  ;;  %v3335_v47 = vadd.f32 %v2202_v28, %v3168_v6  ;;  %v3355_v6 = vrot.slane %v3302_v35, %v3261_v51 }
  0x59   : > { %464 = vmatprep.mubr.f32.mxu0 %v4915_v5 }
  0x5a   : > { %4981 = vst [vmem:[#allocation21_spill] sm:$0xff] %v3335_v47  ;;  %v3399_v9 = vrot.slane %v3335_v47, %v3261_v51 }
  0x5c   : > { %2631 = vmatmul.mubr.msk.f32.gmra.mrb[10].mxu0 %vm340_vm4, %v337_v48  ;;  %v3339_v48 = vrot.slane %v3290_v30, %v3261_v51 }
  0x5d   : > { %470 = vmatprep.mubr.f32.mxu0 %v4915_v5 }
  0x60   : > { %2632 = vmatmul.mubr.msk.f32.gmra.mrb[12].mxu0 %vm340_vm4, %v338_v49  ;;  %v3343_v49 = vrot.slane %v3293_v31, %v3261_v51 }
  0x61   : > { %476 = vmatprep.mubr.f32.mxu0 %v4915_v5 }
  0x64   : > { %2633 = vmatmul.mubr.msk.f32.gmra.mrb[14].mxu0 %vm340_vm4, %v339_v50  ;;  %v3347_v50 = vrot.slane %v3296_v32, %v3261_v51 }
  0x65   : > { %1165 = vmatprep.mubr.f32.mxu0 %v4915_v5 }
  0xaa   : > { %v486_v25 = vpop.permute.xlu0 %485  ;;  %v496_v29 = vpop.permute.xlu1 %495 }
  0xae   : > { %v491_v52 = vpop.permute.xlu0 %490  ;;  %v501_v60 = vpop.permute.xlu1 %500 }
 0x11b   : > { %v3267_v56 = vpop.f32.mrb[0].mxu0 }
 0x11c   : > { %v3277_v61 = vpop.f32.mrb[1].mxu0  ;;  %v3402_v10 = vadd.f32 %v486_v25, %v3267_v56 }
 0x11d   : > { %v3405_v11 = vadd.f32 %v486_v25, %v3277_v61 }
 0x11f   : > { %v442_v15 = vpop.f32.mrb[2].mxu0 }
 0x120   : > { %v444_v21 = vpop.f32.mrb[3].mxu0  ;;  %v3407_v13 = vadd.f32 %v491_v52, %v442_v15 }
 0x121   : > { %v3409_v16 = vadd.f32 %v491_v52, %v444_v21 }
 0x123   : > { %v448_v34 = vpop.f32.mrb[4].mxu0 }
 0x124   : > { %v450_v39 = vpop.f32.mrb[5].mxu0  ;;  %v3411_v17 = vadd.f32 %v496_v29, %v448_v34 }
 0x125   : > { %v3413_v18 = vadd.f32 %v496_v29, %v450_v39 }
 0x127   : > { %v454_v53 = vpop.f32.mrb[6].mxu0 }
 0x128   : > { %v456_v62 = vpop.f32.mrb[7].mxu0  ;;  %v3415_v19 = vadd.f32 %v501_v60, %v454_v53 }
 0x129   : > { %v3417_v22 = vadd.f32 %v501_v60, %v456_v62 }
 0x12b   : > { %v3419_v51 = vpop.f32.mrb[8].mxu0 }
 0x12c   : > { %v3421_v23 = vpop.f32.mrb[9].mxu0  ;;  %v569_v56 = vmul.f32 %v3347_v50, %v3419_v51  ;;  %v1077_v61 = vmul.f32 %v3351_v7, %v3419_v51  ;;  %v848_v15 = vmul.f32 %v3363_v55, %v3419_v51  ;;  %v1535_v21 = vmul.f32 %v3367_v58, %v3419_v51 }
 0x12d   : > { %v570_v24 = vmul.f32 %v3339_v48, %v3421_v23  ;;  %v1078_v12 = vmul.f32 %v3343_v49, %v3421_v23  ;;  %v849_v25 = vmul.f32 %v3355_v6, %v3421_v23  ;;  %v1536_v26 = vmul.f32 %v3359_v54, %v3421_v23 }
 0x12e   : > { %v577_v27 = vadd.f32 %v569_v56, %v3402_v10  ;;  %v1085_v14 = vadd.f32 %v1077_v61, %v3402_v10  ;;  %v3442_v28 = vadd.f32 %v848_v15, %v3402_v10  ;;  %v3445_v29 = vadd.f32 %v1535_v21, %v3402_v10 }
 0x12f   : > { %v3447_v34 = vpop.f32.mrb[10].mxu0  ;;  %v578_v39 = vadd.f32 %v570_v24, %v3405_v11  ;;  %v1086_v52 = vadd.f32 %v1078_v12, %v3405_v11  ;;  %v3452_v53 = vadd.f32 %v849_v25, %v3405_v11  ;;  %v3455_v60 = vadd.f32 %v1536_v26, %v3405_v11 }
 0x130   : > { %v3457_v62 = vpop.f32.mrb[11].mxu0  ;;  %v571_v56 = vmul.f32 %v3347_v50, %v3447_v34  ;;  %v585_v61 = vmax.f32 %v577_v27, 0.0  ;;  %v1079_v15 = vmul.f32 %v3351_v7, %v3447_v34  ;;  %v1093_v21 = vmax.f32 %v1085_v14, 0.0 }
 0x131   : > { %v572_v24 = vmul.f32 %v3339_v48, %v3457_v62  ;;  %v586_v12 = vmax.f32 %v578_v39, 0.0  ;;  %v1080_v25 = vmul.f32 %v3343_v49, %v3457_v62  ;;  %v1094_v5 = vmax.f32 %v1086_v52, 0.0 }
 0x132   : > { %v579_v26 = vadd.f32 %v571_v56, %v3407_v13  ;;  %v1087_v47 = vadd.f32 %v1079_v15, %v3407_v13  ;;  %v851_v46 = vmul.f32 %v3355_v6, %v3457_v62  ;;  %v865_v27 = vmax.f32 %v3452_v53, 0.0 }
 0x133   : > { %v3472_v45 = vpop.f32.mrb[12].mxu0  ;;  %v580_v14 = vadd.f32 %v572_v24, %v3409_v16  ;;  %v1088_v44 = vadd.f32 %v1080_v25, %v3409_v16  ;;  %v1538_v39 = vmul.f32 %v3359_v54, %v3457_v62  ;;  %v1552_v52 = vmax.f32 %v3455_v60, 0.0 }
 0x134   : > { %v3479_v43 = vpop.f32.mrb[13].mxu0  ;;  %v587_v56 = vmax.f32 %v579_v26, 0.0  ;;  %v1095_v15 = vmax.f32 %v1087_v47, 0.0  ;;  %v573_v42 = vmul.f32 %v3347_v50, %v3472_v45  ;;  %v1081_v53 = vmul.f32 %v3351_v7, %v3472_v45 }
 0x135   : > { %v588_v41 = vmax.f32 %v580_v14, 0.0  ;;  %v1096_v40 = vmax.f32 %v1088_v44, 0.0  ;;  %v574_v24 = vmul.f32 %v3339_v48, %v3479_v43  ;;  %v1082_v25 = vmul.f32 %v3343_v49, %v3479_v43 }
 0x136   : > { %v2718_v38 = vpack.c.bf16 %v587_v56, %v585_v61  ;;  %v2734_v60 = vpack.c.bf16 %v1095_v15, %v1093_v21  ;;  %v581_v37 = vadd.f32 %v573_v42, %v3411_v17  ;;  %v1089_v47 = vadd.f32 %v1081_v53, %v3411_v17 }
 0x137   : > { %v3491_v26 = vpop.f32.mrb[14].mxu0  ;;  %v2716_v36 = vpack.c.bf16 %v588_v41, %v586_v12  ;;  %v2732_v35 = vpack.c.bf16 %v1096_v40, %v1094_v5  ;;  %v582_v33 = vadd.f32 %v574_v24, %v3413_v18  ;;  %v1090_v44 = vadd.f32 %v1082_v25, %v3413_v18 }
 0x138   : > { %v3495_v14 = vpop.f32.mrb[15].mxu0  ;;  %v575_v32 = vmul.f32 %v3347_v50, %v3491_v26  ;;  %v589_v31 = vmax.f32 %v581_v37, 0.0  ;;  %v1083_v61 = vmul.f32 %v3351_v7, %v3491_v26  ;;  %v1097_v42 = vmax.f32 %v1089_v47, 0.0 }
 0x139   : > { %2717 = vmatprep.subr.bf16.mxu1 %v2716_v36  ;;  %2733 = vmatprep.subr.bf16.mxu0 %v2732_v35  ;;  %v576_v41 = vmul.f32 %v3339_v48, %v3495_v14  ;;  %v590_v5 = vmax.f32 %v582_v33, 0.0  ;;  %v1084_v40 = vmul.f32 %v3343_v49, %v3495_v14  ;;  %v1098_v21 = vmax.f32 %v1090_v44, 0.0 }
 0x13a   : > { %2719 = vmatpush1.bf16.msra.mxu1 %v2718_v38  ;;  %2735 = vmatpush1.bf16.msra.mxu0 %v2734_v60  ;;  %v583_v12 = vadd.f32 %v575_v32, %v3415_v19  ;;  %v1091_v37 = vadd.f32 %v1083_v61, %v3415_v19  ;;  %v859_v50 = vadd.f32 %v851_v46, %v3409_v16  ;;  %v864_v7 = vmax.f32 %v3442_v28, 0.0 }
 0x13b   : > { %v584_v35 = vadd.f32 %v576_v41, %v3417_v22  ;;  %v1092_v36 = vadd.f32 %v1084_v40, %v3417_v22  ;;  %v1546_v33 = vadd.f32 %v1538_v39, %v3409_v16  ;;  %v850_v48 = vmul.f32 %v3363_v55, %v3447_v34 }
 0x13c   : > { %v591_v49 = vmax.f32 %v583_v12, 0.0  ;;  %v1099_v38 = vmax.f32 %v1091_v37, 0.0  ;;  %v867_v56 = vmax.f32 %v859_v50, 0.0  ;;  %v1537_v32 = vmul.f32 %v3367_v58, %v3447_v34 }
 0x13d   : > { %v592_v15 = vmax.f32 %v584_v35, 0.0  ;;  %v1100_v53 = vmax.f32 %v1092_v36, 0.0  ;;  %v1554_v46 = vmax.f32 %v1546_v33, 0.0  ;;  %v858_v28 = vadd.f32 %v850_v48, %v3407_v13 }
 0x13e   : > { %v2722_v24 = vpack.c.bf16 %v591_v49, %v589_v31  ;;  %v2738_v25 = vpack.c.bf16 %v1099_v38, %v1097_v42  ;;  %v2724_v60 = vpack.c.bf16 %v867_v56, %v865_v27  ;;  %v1545_v47 = vadd.f32 %v1537_v32, %v3407_v13 }
 0x13f   : > { %v2720_v39 = vpack.c.bf16 %v592_v15, %v590_v5  ;;  %v2736_v44 = vpack.c.bf16 %v1100_v53, %v1098_v21  ;;  %v2748_v61 = vpack.c.bf16 %v1554_v46, %v1552_v52  ;;  %v866_v41 = vmax.f32 %v858_v28, 0.0 }
 0x140   : > { %v1551_v40 = vmax.f32 %v3445_v29, 0.0  ;;  %v1553_v12 = vmax.f32 %v1545_v47, 0.0  ;;  %v853_v37 = vmul.f32 %v3355_v6, %v3479_v43  ;;  %v855_v50 = vmul.f32 %v3355_v6, %v3495_v14  ;;  %v3530_v29 = vld [vmem:[%s4911_s3] sm:$0xff] }
 0x141   : > { %2721 = vmatprep.subr.bf16.mxu1 %v2720_v39  ;;  %2737 = vmatprep.subr.bf16.mxu0 %v2736_v44  ;;  %v2726_v31 = vpack.c.bf16 %v866_v41, %v864_v7  ;;  %v1540_v27 = vmul.f32 %v3359_v54, %v3479_v43  ;;  %v1542_v42 = vmul.f32 %v3359_v54, %v3495_v14 }
 0x142   : > { %2723 = vmatpush1.bf16.msra.mxu1 %v2722_v24  ;;  %2739 = vmatpush1.bf16.msra.mxu0 %v2738_v25  ;;  %v2750_v52 = vpack.c.bf16 %v1553_v12, %v1551_v40  ;;  %v861_v6 = vadd.f32 %v853_v37, %v3413_v18  ;;  %v863_v5 = vadd.f32 %v855_v50, %v3417_v22  ;;  %v4982_v24 = vmov 0.0  }
 0x143   : > { %2725 = vmatprep.subr.bf16.mxu1 %v2724_v60  ;;  %2749 = vmatprep.subr.bf16.mxu0 %v2748_v61  ;;  %v1548_v21 = vadd.f32 %v1540_v27, %v3413_v18  ;;  %v1550_v7 = vadd.f32 %v1542_v42, %v3417_v22  ;;  %v852_v54 = vmul.f32 %v3363_v55, %v3472_v45  ;;  %v3580_v42 = vld [vmem:[%s4911_s3 + $0x10] sm:$0xff] }
 0x144   : > { %v869_v35 = vmax.f32 %v861_v6, 0.0  ;;  %v871_v36 = vmax.f32 %v863_v5, 0.0  ;;  %v854_v33 = vmul.f32 %v3363_v55, %v3491_v26  ;;  %v1539_v48 = vmul.f32 %v3367_v58, %v3472_v45  ;;  %v3552_v55 = vld [vmem:[%s4911_s3 + $0x8] sm:$0xff] }
 0x145   : > { %2634 = vmatmul.mubr.msk.f32.vlgmr.msra.gmra.mrb[0].mxu1 %vm618_vm5, %v3530_v29  ;;  %2652 = vmatmul.mubr.msk.f32.vlgmr.msra.gmra.mrb[16].mxu0 %vm618_vm5, %v3530_v29  ;;  %v1556_v49 = vmax.f32 %v1548_v21, 0.0  ;;  %v1558_v38 = vmax.f32 %v1550_v7, 0.0  ;;  %v860_v56 = vadd.f32 %v852_v54, %v3411_v17  ;;  %v1541_v32 = vmul.f32 %v3367_v58, %v3491_v26 }
 0x146   : > { %2727 = vmatpush1.bf16.msra.mxu1 %v2726_v31  ;;  %2751 = vmatpush1.bf16.msra.mxu0 %v2750_v52  ;;  %v2728_v15 = vpack.c.bf16 %v871_v36, %v869_v35  ;;  %v862_v53 = vadd.f32 %v854_v33, %v3415_v19  ;;  %v1547_v46 = vadd.f32 %v1539_v48, %v3411_v17 }
 0x147   : > { %v2752_v28 = vpack.c.bf16 %v1558_v38, %v1556_v49  ;;  %704 = vmatprep.mubr.f32.mxu1 %v4982_v24  ;;  %1171 = vmatprep.mubr.f32.mxu0 %v4982_v24  ;;  %v868_v25 = vmax.f32 %v860_v56, 0.0  ;;  %v1549_v58 = vadd.f32 %v1541_v32, %v3415_v19  ;;  %v1307_v60 = vmul.f32 %v3371_v63, %v3421_v23  ;;  %v3602_v32 = vld [vmem:[%s4911_s3 + $0x18] sm:$0xff] }
 0x148   : > { %2729 = vmatprep.subr.bf16.mxu1 %v2728_v15  ;;  %v870_v47 = vmax.f32 %v862_v53, 0.0  ;;  %v1555_v39 = vmax.f32 %v1547_v46, 0.0  ;;  %v1309_v44 = vmul.f32 %v3371_v63, %v3457_v62  ;;  %v1994_v61 = vmul.f32 %v3375_v0, %v3421_v23 }
 0x149   : > { %2753 = vmatprep.subr.bf16.mxu0 %v2752_v28  ;;  %2635 = vmatmul.mubr.msk.f32.gmra.mrb[2].mxu1 %vm618_vm5, %v3552_v55  ;;  %v1557_v41 = vmax.f32 %v1549_v58, 0.0  ;;  %v1315_v40 = vadd.f32 %v1307_v60, %v3405_v11  ;;  %v1996_v12 = vmul.f32 %v3375_v0, %v3457_v62  ;;  %v1306_v37 = vmul.f32 %v3379_v1, %v3419_v51 }
 0x14a   : > { %2653 = vmatmul.mubr.msk.f32.gmra.mrb[18].mxu0 %vm618_vm5, %v3552_v55  ;;  %v2730_v50 = vpack.c.bf16 %v870_v47, %v868_v25  ;;  %v1317_v31 = vadd.f32 %v1309_v44, %v3409_v16  ;;  %v2002_v27 = vadd.f32 %v1994_v61, %v3405_v11  ;;  %710 = vmatprep.mubr.f32.mxu1 %v4982_v24 }
 0x14b   : > { %v2754_v52 = vpack.c.bf16 %v1557_v41, %v1555_v39  ;;  %v1323_v6 = vmax.f32 %v1315_v40, 0.0  ;;  %v2004_v5 = vadd.f32 %v1996_v12, %v3409_v16  ;;  %1177 = vmatprep.mubr.f32.mxu0 %v4982_v24  ;;  %v1308_v21 = vmul.f32 %v3379_v1, %v3447_v34 }
 0x14c   : > { %2731 = vmatpush1.bf16.msra.mxu1 %v2730_v50  ;;  %v1325_v7 = vmax.f32 %v1317_v31, 0.0  ;;  %v2010_v54 = vmax.f32 %v2002_v27, 0.0  ;;  %v1314_v35 = vadd.f32 %v1306_v37, %v3402_v10  ;;  %v1993_v36 = vmul.f32 %v3383_v2, %v3419_v51  ;;  %v3625_v37 = vld [vmem:[%s4911_s3 + $0x20] sm:$0xf] }
 0x14d   : > { %2755 = vmatpush1.bf16.msra.mxu0 %v2754_v52  ;;  %v2012_v33 = vmax.f32 %v2004_v5, 0.0  ;;  %2636 = vmatmul.mubr.msk.f32.gmra.mrb[4].mxu1 %vm618_vm5, %v3580_v42  ;;  %v1316_v48 = vadd.f32 %v1308_v21, %v3407_v13  ;;  %v1995_v49 = vmul.f32 %v3383_v2, %v3447_v34  ;;  %v1311_v38 = vmul.f32 %v3371_v63, %v3479_v43 }
 0x14e   : > { %v2740_v56 = vpack.c.bf16 %v1325_v7, %v1323_v6  ;;  %2654 = vmatmul.mubr.msk.f32.gmra.mrb[20].mxu0 %vm618_vm5, %v3580_v42  ;;  %716 = vmatprep.mubr.f32.mxu1 %v4982_v24  ;;  %v1322_v15 = vmax.f32 %v1314_v35, 0.0  ;;  %v2001_v53 = vadd.f32 %v1993_v36, %v3402_v10  ;;  %v1313_v46 = vmul.f32 %v3371_v63, %v3495_v14 }
 0x14f   : > { %v2764_v28 = vpack.c.bf16 %v2012_v33, %v2010_v54  ;;  %1183 = vmatprep.mubr.f32.mxu0 %v4982_v24  ;;  %v1324_v25 = vmax.f32 %v1316_v48, 0.0  ;;  %v2003_v58 = vadd.f32 %v1995_v49, %v3407_v13  ;;  %v1319_v60 = vadd.f32 %v1311_v38, %v3413_v18 }
 0x150   : > { %2741 = vmatprep.subr.bf16.mxu1 %v2740_v56  ;;  %v2009_v47 = vmax.f32 %v2001_v53, 0.0  ;;  %v1321_v39 = vadd.f32 %v1313_v46, %v3417_v22  ;;  %v1998_v44 = vmul.f32 %v3375_v0, %v3479_v43  ;;  %v2000_v61 = vmul.f32 %v3375_v0, %v3495_v14 }
 0x151   : > { %2765 = vmatprep.subr.bf16.mxu0 %v2764_v28  ;;  %2637 = vmatmul.mubr.msk.f32.gmra.mrb[6].mxu1 %vm618_vm5, %v3602_v32  ;;  %v2742_v63 = vpack.c.bf16 %v1324_v25, %v1322_v15  ;;  %v2011_v41 = vmax.f32 %v2003_v58, 0.0  ;;  %v1327_v40 = vmax.f32 %v1319_v60, 0.0  ;;  %v1310_v12 = vmul.f32 %v3379_v1, %v3472_v45 }
 0x152   : > { %2655 = vmatmul.mubr.msk.f32.gmra.mrb[22].mxu0 %vm618_vm5, %v3602_v32  ;;  %722 = vmatprep.mubr.f32.mxu1 %v4982_v24  ;;  %v1329_v0 = vmax.f32 %v1321_v39, 0.0  ;;  %v2006_v50 = vadd.f32 %v1998_v44, %v3413_v18  ;;  %v2008_v31 = vadd.f32 %v2000_v61, %v3417_v22  ;;  %v1312_v27 = vmul.f32 %v3379_v1, %v3491_v26 }
 0x153   : > { %1189 = vmatprep.mubr.f32.mxu0 %v4982_v24  ;;  %v2766_v52 = vpack.c.bf16 %v2011_v41, %v2009_v47  ;;  %v1318_v6 = vadd.f32 %v1310_v12, %v3411_v17  ;;  %v1997_v5 = vmul.f32 %v3383_v2, %v3472_v45  ;;  %v1999_v21 = vmul.f32 %v3383_v2, %v3491_v26 }
 0x154   : > { %v2744_v7 = vpack.c.bf16 %v1329_v0, %v1327_v40  ;;  %v2014_v54 = vmax.f32 %v2006_v50, 0.0  ;;  %v2016_v35 = vmax.f32 %v2008_v31, 0.0  ;;  %v1320_v36 = vadd.f32 %v1312_v27, %v3415_v19 }
 0x155   : > { %2638 = vmatmul.mubr.msk.f32.gmra.mrb[8].mxu1 %vm618_vm5, %v3625_v37  ;;  %v1326_v1 = vmax.f32 %v1318_v6, 0.0  ;;  %v2005_v33 = vadd.f32 %v1997_v5, %v3411_v17  ;;  %v2007_v48 = vadd.f32 %v1999_v21, %v3415_v19  ;;  %v1765_v49 = vmul.f32 %v3387_v3, %v3421_v23 }
 0x156   : > { %2656 = vmatmul.mubr.msk.f32.gmra.mrb[24].mxu0 %vm618_vm5, %v3625_v37  ;;  %936 = vmatprep.mubr.f32.mxu1 %v4982_v24  ;;  %v2768_v2 = vpack.c.bf16 %v2016_v35, %v2014_v54  ;;  %v1328_v38 = vmax.f32 %v1320_v36, 0.0  ;;  %v1767_v56 = vmul.f32 %v3387_v3, %v3457_v62  ;;  %v2217_v15 = vmul.f32 %v3391_v4, %v3421_v23 }
 0x157   : > { %1623 = vmatprep.mubr.f32.mxu0 %v4982_v24  ;;  %v2013_v53 = vmax.f32 %v2005_v33, 0.0  ;;  %v2015_v46 = vmax.f32 %v2007_v48, 0.0  ;;  %v1773_v28 = vadd.f32 %v1765_v49, %v3405_v11  ;;  %v2219_v25 = vmul.f32 %v3391_v4, %v3457_v62 }
 0x158   : > { %v2746_v58 = vpack.c.bf16 %v1328_v38, %v1326_v1  ;;  %v1775_v60 = vadd.f32 %v1767_v56, %v3409_v16  ;;  %v2225_v47 = vadd.f32 %v2217_v15, %v3405_v11  ;;  %v1764_v39 = vmul.f32 %v3395_v8, %v3419_v51 }
 0x159   : > { %2643 = vmatmul.mubr.msk.f32.vlgmr.msra.gmra.mrb[10].mxu1 %vm618_vm5, %v3530_v29  ;;  %v2770_v23 = vpack.c.bf16 %v2015_v46, %v2013_v53  ;;  %v1781_v44 = vmax.f32 %v1773_v28, 0.0  ;;  %v2227_v61 = vadd.f32 %v2219_v25, %v3409_v16  ;;  %v1766_v41 = vmul.f32 %v3395_v8, %v3447_v34 }
 0x15a   : > { %2743 = vmatpush1.bf16.msra.mxu1 %v2742_v63  ;;  %2670 = vmatmul.mubr.msk.f32.vlgmr.msra.gmra.mrb[26].mxu0 %vm618_vm5, %v3530_v29  ;;  %v1783_v62 = vmax.f32 %v1775_v60, 0.0  ;;  %v2233_v40 = vmax.f32 %v2225_v47, 0.0  ;;  %v1772_v11 = vadd.f32 %v1764_v39, %v3402_v10  ;;  %v2216_v12 = vmul.f32 %v3399_v9, %v3419_v51 }
 0x15b   : > { %2767 = vmatpush1.bf16.msra.mxu0 %v2766_v52  ;;  %2745 = vmatprep.subr.bf16.mxu1 %v2744_v7  ;;  %v2235_v0 = vmax.f32 %v2227_v61, 0.0  ;;  %v1774_v50 = vadd.f32 %v1766_v41, %v3407_v13  ;;  %v2218_v16 = vmul.f32 %v3399_v9, %v3447_v34  ;;  %v1769_v63 = vmul.f32 %v3387_v3, %v3479_v43 }
 0x15c   : > { %2769 = vmatprep.subr.bf16.mxu0 %v2768_v2  ;;  %942 = vmatprep.mubr.f32.mxu1 %v4982_v24  ;;  %v2756_v31 = vpack.c.bf16 %v1783_v62, %v1781_v44  ;;  %v1780_v27 = vmax.f32 %v1772_v11, 0.0  ;;  %v2224_v6 = vadd.f32 %v2216_v12, %v3402_v10  ;;  %v1771_v51 = vmul.f32 %v3387_v3, %v3495_v14 }
 0x15d   : > { %1629 = vmatprep.mubr.f32.mxu0 %v4982_v24  ;;  %2644 = vmatmul.mubr.msk.f32.gmra.mrb[12].mxu1 %vm618_vm5, %v3552_v55  ;;  %v3681_v52 = vpack.c.bf16 %v2235_v0, %v2233_v40  ;;  %v1782_v34 = vmax.f32 %v1774_v50, 0.0  ;;  %v2226_v5 = vadd.f32 %v2218_v16, %v3407_v13  ;;  %v1777_v21 = vadd.f32 %v1769_v63, %v3413_v18  ;;  %v3789_v40 = vpop.permute.xlu0 %595 }
 0x15e   : > { %2747 = vmatpush1.bf16.msra.mxu1 %v2746_v58  ;;  %2671 = vmatmul.mubr.msk.f32.gmra.mrb[28].mxu0 %vm618_vm5, %v3552_v55  ;;  %v2232_v10 = vmax.f32 %v2224_v6, 0.0  ;;  %v1779_v7 = vadd.f32 %v1771_v51, %v3417_v22  ;;  %v2221_v3 = vmul.f32 %v3391_v4, %v3479_v43  ;;  %v2223_v54 = vmul.f32 %v3391_v4, %v3495_v14 }
 0x15f   : > { %2771 = vmatpush1.bf16.msra.mxu0 %v2770_v23  ;;  %2757 = vmatprep.subr.bf16.mxu1 %v2756_v31  ;;  %v2758_v35 = vpack.c.bf16 %v1782_v34, %v1780_v27  ;;  %v2234_v36 = vmax.f32 %v2226_v5, 0.0  ;;  %v1785_v13 = vmax.f32 %v1777_v21, 0.0  ;;  %v1768_v1 = vmul.f32 %v3395_v8, %v3472_v45  ;;  %4983 = vst [vmem:[#allocation22_spill] sm:$0xff] %v3789_v40 }
 0x160   : > { %2773 = vmatprep.subr.bf16.mxu0 %v3681_v52  ;;  %948 = vmatprep.mubr.f32.mxu1 %v4982_v24  ;;  %v1787_v33 = vmax.f32 %v1779_v7, 0.0  ;;  %v2229_v48 = vadd.f32 %v2221_v3, %v3413_v18  ;;  %v2231_v43 = vadd.f32 %v2223_v54, %v3417_v22  ;;  %v1770_v4 = vmul.f32 %v3395_v8, %v3491_v26 }
 0x161   : > { %1635 = vmatprep.mubr.f32.mxu0 %v4982_v24  ;;  %2645 = vmatmul.mubr.msk.f32.gmra.mrb[14].mxu1 %vm618_vm5, %v3580_v42  ;;  %v2774_v14 = vpack.c.bf16 %v2234_v36, %v2232_v10  ;;  %v1776_v49 = vadd.f32 %v1768_v1, %v3411_v17  ;;  %v2220_v2 = vmul.f32 %v3399_v9, %v3472_v45 }
 0x162   : > { %2672 = vmatmul.mubr.msk.f32.gmra.mrb[30].mxu0 %vm618_vm5, %v3580_v42  ;;  %954 = vmatprep.mubr.f32.mxu1 %v4982_v24  ;;  %v2760_v18 = vpack.c.bf16 %v1787_v33, %v1785_v13  ;;  %v2237_v22 = vmax.f32 %v2229_v48, 0.0  ;;  %v2239_v38 = vmax.f32 %v2231_v43, 0.0  ;;  %v1778_v8 = vadd.f32 %v1770_v4, %v3415_v19 }
 0x163   : > { %1641 = vmatprep.mubr.f32.mxu0 %v4982_v24  ;;  %v2222_v56 = vmul.f32 %v3399_v9, %v3491_v26  ;;  %v2228_v15 = vadd.f32 %v2220_v2, %v3411_v17  ;;  %v1784_v46 = vmax.f32 %v1776_v49, 0.0 }
 0x164   : > { %v2776_v53 = vpack.c.bf16 %v2239_v38, %v2237_v22  ;;  %v1786_v45 = vmax.f32 %v1778_v8, 0.0 }
 0x165   : > { %2646 = vmatmul.mubr.msk.f32.gmra.mrb[16].mxu1 %vm618_vm5, %v3602_v32  ;;  %v2230_v28 = vadd.f32 %v2222_v56, %v3415_v19  ;;  %v2236_v58 = vmax.f32 %v2228_v15, 0.0  ;;  %v2990_v19 = vld [vmem:[%s3165_s19 + $0x8] sm:$0xff] }
 0x166   : > { %2673 = vmatmul.mubr.msk.f32.gmra.mrb[32].mxu0 %vm618_vm5, %v3602_v32  ;;  %960 = vmatprep.mubr.f32.mxu1 %v4982_v24  ;;  %v2762_v25 = vpack.c.bf16 %v1786_v45, %v1784_v46  ;;  %v512_v26 = vmul.f32 %v2990_v19, %v2990_v19 }
 0x167   : > { %1647 = vmatprep.mubr.f32.mxu0 %v4982_v24  ;;  %v2238_v9 = vmax.f32 %v2230_v28, 0.0 }
 0x168   : > { %v522_v23 = vrot.slane %v512_v26, 2 }
 0x169   : > { %2647 = vmatmul.mubr.msk.f32.gmra.mrb[18].mxu1 %vm618_vm5, %v3625_v37  ;;  %v2778_v17 = vpack.c.bf16 %v2238_v9, %v2236_v58 }
 0x16a   : > { %2674 = vmatmul.mubr.msk.f32.gmra.mrb[34].mxu0 %vm618_vm5, %v3625_v37  ;;  %1394 = vmatprep.mubr.f32.mxu1 %v4982_v24 }
 0x16b   : > { %2081 = vmatprep.mubr.f32.mxu0 %v4982_v24 }
 0x16d   : > { %2661 = vmatmul.mubr.msk.f32.vlgmr.msra.gmra.mrb[20].mxu1 %vm618_vm5, %v3530_v29 }
 0x16e   : > { %2759 = vmatpush1.bf16.msra.mxu1 %v2758_v35  ;;  %2688 = vmatmul.mubr.msk.f32.vlgmr.msra.gmra.mrb[36].mxu0 %vm618_vm5, %v3530_v29 }
 0x16f   : > { %2775 = vmatpush1.bf16.msra.mxu0 %v2774_v14  ;;  %2761 = vmatprep.subr.bf16.mxu1 %v2760_v18 }
 0x170   : > { %2777 = vmatprep.subr.bf16.mxu0 %v2776_v53  ;;  %1400 = vmatprep.mubr.f32.mxu1 %v4982_v24 }
 0x171   : > { %2087 = vmatprep.mubr.f32.mxu0 %v4982_v24  ;;  %2662 = vmatmul.mubr.msk.f32.gmra.mrb[22].mxu1 %vm618_vm5, %v3552_v55 }
 0x172   : > { %2763 = vmatpush1.bf16.msra.mxu1 %v2762_v25  ;;  %2689 = vmatmul.mubr.msk.f32.gmra.mrb[38].mxu0 %vm618_vm5, %v3552_v55 }
 0x173   : > { %2779 = vmatpush1.bf16.msra.mxu0 %v2778_v17  ;;  %2780 = vmatprep.subr.bf16.mxu1 %v3681_v52 }
 0x174   : > { %1406 = vmatprep.mubr.f32.mxu1 %v4982_v24  ;;  %2093 = vmatprep.mubr.f32.mxu0 %v4982_v24 }
 0x175   : > { %2663 = vmatmul.mubr.msk.f32.gmra.mrb[24].mxu1 %vm618_vm5, %v3580_v42 }
 0x176   : > { %2690 = vmatmul.mubr.msk.f32.gmra.mrb[40].mxu0 %vm618_vm5, %v3580_v42  ;;  %1412 = vmatprep.mubr.f32.mxu1 %v4982_v24 }
 0x177   : > { %2099 = vmatprep.mubr.f32.mxu0 %v4982_v24 }
 0x179   : > { %2664 = vmatmul.mubr.msk.f32.gmra.mrb[26].mxu1 %vm618_vm5, %v3602_v32 }
 0x17a   : > { %2691 = vmatmul.mubr.msk.f32.gmra.mrb[42].mxu0 %vm618_vm5, %v3602_v32  ;;  %1418 = vmatprep.mubr.f32.mxu1 %v4982_v24 }
 0x17b   : > { %2105 = vmatprep.mubr.f32.mxu0 %v4982_v24 }
 0x17d   : > { %2665 = vmatmul.mubr.msk.f32.gmra.mrb[28].mxu1 %vm618_vm5, %v3625_v37 }
 0x17e   : > { %2692 = vmatmul.mubr.msk.f32.gmra.mrb[44].mxu0 %vm618_vm5, %v3625_v37  ;;  %1852 = vmatprep.mubr.f32.mxu1 %v4982_v24 }
 0x17f   : > { %2304 = vmatprep.mubr.f32.mxu0 %v4982_v24 }
 0x181   : > { %2679 = vmatmul.mubr.msk.f32.vlgmr.msra.gmra.mrb[30].mxu1 %vm618_vm5, %v3530_v29 }
 0x182   : > { %2782 = vmatpush1.bf16.msra.mxu1 %v2774_v14  ;;  %2697 = vmatmul.mubr.msk.f32.vlgmr.msra.gmra.mrb[46].mxu0 %vm618_vm5, %v3530_v29  ;;  %v2991_v29 = vld [vmem:[%s3165_s19] sm:$0xff] }
 0x183   : > { %2781 = vmatprep.subr.bf16.mxu1 %v2776_v53  ;;  %1858 = vmatprep.mubr.f32.mxu1 %v4982_v24  ;;  %v511_v60 = vmul.f32 %v2991_v29, %v2991_v29 }
 0x185   : > { %2680 = vmatmul.mubr.msk.f32.gmra.mrb[32].mxu1 %vm618_vm5, %v3552_v55  ;;  %v515_v47 = vrot.slane %v511_v60, 1 }
 0x186   : > { %2783 = vmatpush1.bf16.msra.mxu1 %v2778_v17  ;;  %1864 = vmatprep.mubr.f32.mxu1 %v4982_v24  ;;  %v3835_v17 = vsub.s32 3, %v3198_v20 }
 0x187   : > { %v519_v44 = vadd.f32 %v515_v47, %v511_v60 }
 0x189   : > { %2681 = vmatmul.mubr.msk.f32.gmra.mrb[34].mxu1 %vm618_vm5, %v3580_v42 }
 0x18a   : > { %1870 = vmatprep.mubr.f32.mxu1 %v4982_v24 }
 0x18d   : > { %2682 = vmatmul.mubr.msk.f32.gmra.mrb[36].mxu1 %vm618_vm5, %v3602_v32 }
 0x18e   : > { %1876 = vmatprep.mubr.f32.mxu1 %v4982_v24 }
 0x191   : > { %2683 = vmatmul.mubr.msk.f32.gmra.mrb[38].mxu1 %vm618_vm5, %v3625_v37 }
 0x192   : > { %2310 = vmatprep.mubr.f32.mxu1 %v4982_v24 }
 0x195   : > { %2698 = vmatmul.mubr.msk.f32.vlgmr.msra.gmra.mrb[40].mxu1 %vm618_vm5, %v3552_v55  ;;  %v516_v55 = vrot.slane %v512_v26, 1 }
 0x196   : > { %2316 = vmatprep.mubr.f32.mxu1 %v4982_v24 }
 0x197   : > { %v520_v39 = vadd.f32 %v516_v55, %v512_v26 }
 0x199   : > { %2699 = vmatmul.mubr.msk.f32.gmra.mrb[42].mxu1 %vm618_vm5, %v3580_v42  ;;  %v521_v42 = vrot.slane %v511_v60, 2  ;;  %v526_v61 = vadd.f32 %v522_v23, %v520_v39 }
 0x19a   : > { %2322 = vmatprep.mubr.f32.mxu1 %v4982_v24 }
 0x19b   : > { %v525_v41 = vadd.f32 %v521_v42, %v519_v44  ;;  %2838 = vrsqrt.f32 %v526_v61  ;;  %vm536_vm6 = vcmp.eq.f32.partialorder %v526_v61, inf  ;;  %vm538_vm8 = vcmp.eq.f32.partialorder %v526_v61, 0.0  ;;  %v4987_v44 = vld [vmem:[#allocation8_spill] sm:$0xff] }
 0x19c   : > { %v539_v63 = vand.u32 2147483648, %v526_v61 }
 0x19d   : > { %2700 = vmatmul.mubr.msk.f32.gmra.mrb[44].mxu1 %vm618_vm5, %v3602_v32  ;;  %2840 = vrsqrt.f32 %v525_v41  ;;  %vm529_vm7 = vcmp.eq.f32.partialorder %v525_v41, inf  ;;  %vm531_vm9 = vcmp.eq.f32.partialorder %v525_v41, 0.0  ;;  %v532_v52 = vand.u32 2147483648, %v525_v41 }
 0x19e   : > { %2328 = vmatprep.mubr.f32.mxu1 %v4982_v24  ;;  %v738_v24 = vsub.s32 0, %v3198_v20 }
 0x1a1   : > { %2701 = vmatmul.mubr.msk.f32.gmra.mrb[46].mxu1 %vm618_vm5, %v3625_v37  ;;  %v734_v37 = vpop.permute.xlu1 %733 }
 0x1a2   : > { %v3791_v0 = vrot.slane %v734_v37, %v738_v24  ;;  %v4991_v37 = vld [vmem:[#allocation12_spill] sm:$0xff] }
 0x1a5   : > { %v2839_v32 = vpop.eup %2838 }
 0x1a6   : > { %v535_v11 = vmul.f32 %v2839_v32, %v526_v61  ;;  %v4989_v32 = vld [vmem:[#allocation10_spill] sm:$0xff] }
 0x1a7   : > { %v2841_v62 = vpop.eup %2840 }
 0x1a8   : > { %v528_v12 = vmul.f32 %v2841_v62, %v525_v41  ;;  %v537_v21 = vsel %vm536_vm6, %v526_v61, %v535_v11 }
 0x1a9   : > { %v540_v33 = vsel %vm538_vm8, %v539_v63, %v537_v21 }
 0x1aa   : > { %v530_v10 = vsel %vm529_vm7, %v525_v41, %v528_v12  ;;  %v546_v56 = vrot.slane %v540_v33, 4 }
 0x1ab   : > { %v533_v48 = vsel %vm531_vm9, %v532_v52, %v530_v10 }
 0x1ac   : > { %v545_v15 = vrot.slane %v533_v48, 4  ;;  %v550_v19 = vmul.f32 %v546_v56, %v3270_v57 }
 0x1ae   : > { %v549_v26 = vmul.f32 %v545_v15, %v3274_v59 }
 0x1b0   : > { %v3860_v52 = vrot.slane %v549_v26, 4 }
 0x218   : > { %v700_v50 = vpop.f32.mrb[0].mxu1  ;;  %v1167_v16 = vpop.f32.mrb[16].mxu0 }
 0x219   : > { %v3794_v31 = vadd.f32 %v700_v50, %v3789_v40  ;;  %v3797_v27 = vadd.f32 %v1167_v16, %v3789_v40  ;;  %v702_v6 = vpop.f32.mrb[1].mxu1  ;;  %v1169_v51 = vpop.f32.mrb[17].mxu0 }
 0x21a   : > { %v3800_v34 = vadd.f32 %v702_v6, %v3789_v40  ;;  %v3803_v5 = vadd.f32 %v1169_v51, %v3789_v40  ;;  %v3858_v51 = vrot.slane %v550_v19, 4  ;;  %v3876_v19 = vpop.permute.xlu0 %600 }
 0x21b   : > { %4984 = vst [vmem:[#allocation23_spill] sm:$0xff] %v3797_v27  ;;  %v729_v7 = vsub.f32 0.0, %v3794_v31  ;;  %v1196_v3 = vsub.f32 0.0, %v3797_v27  ;;  %v2641_v25 = vmul.f32 -1.442695, %v3794_v31  ;;  %5001 = vst [vmem:[#allocation8_spill] sm:$0xff] %v3876_v19 }
 0x21c   : > { %4985 = vst [vmem:[#allocation24_spill] sm:$0xff] %v3803_v5  ;;  %v730_v54 = vsub.f32 0.0, %v3800_v34  ;;  %v3810_v13 = vpop.f32.mrb[2].mxu1  ;;  %v1197_v4 = vsub.f32 0.0, %v3803_v5  ;;  %v2659_v58 = vmul.f32 -1.442695, %v3797_v27 }
 0x21d   : > { %v740_v35 = vmul.f32 %v3791_v0, %v729_v7  ;;  %v1198_v36 = vmul.f32 %v1196_v3, %v3791_v0  ;;  %v3812_v1 = vpop.f32.mrb[18].mxu0  ;;  %v3817_v14 = vpop.f32.mrb[3].mxu1  ;;  %v2642_v29 = vmul.f32 -1.442695, %v3800_v34  ;;  %v2660_v24 = vmul.f32 -1.442695, %v3803_v5 }
 0x21e   : > { %v741_v43 = vmul.f32 %v3791_v0, %v730_v54  ;;  %v3819_v49 = vpop.f32.mrb[19].mxu0  ;;  %v1199_v38 = vmul.f32 %v1197_v4, %v3791_v0  ;;  %v3883_v56 = vadd.f32 %v3810_v13, %v3876_v19  ;;  %v3938_v10 = vpop.permute.xlu0 %610  ;;  %v5011_v12 = vrot.slane %v3794_v31, 3 }
 0x21f   : > { %v2639_v2 = vmul.f32 -1.442695, %v740_v35  ;;  %v2657_v18 = vmul.f32 -1.442695, %v1198_v36  ;;  %5007 = vst [vmem:[#allocation28_spill] sm:$0xff] %v3938_v10 }
 0x220   : > { %v2640_v22 = vmul.f32 -1.442695, %v741_v43  ;;  %v3822_v8 = vpop.f32.mrb[4].mxu1  ;;  %v2658_v45 = vmul.f32 -1.442695, %v1199_v38 }
 0x221   : > { %2842 = vpow2.f32 %v2639_v2  ;;  %v3824_v53 = vpop.f32.mrb[20].mxu0  ;;  %v3826_v46 = vpop.f32.mrb[5].mxu1 }
 0x222   : > { %2844 = vpow2.f32 %v2657_v18  ;;  %v3828_v28 = vpop.f32.mrb[21].mxu0 }
 0x223   : > { %2846 = vpow2.f32 %v2640_v22 }
 0x224   : > { %2848 = vpow2.f32 %v2658_v45  ;;  %v3832_v9 = vpop.f32.mrb[6].mxu1 }
 0x225   : > { %v3840_v60 = vpop.f32.mrb[22].mxu0  ;;  %v3842_v55 = vpop.f32.mrb[7].mxu1  ;;  %2850 = vpow2.f32 %v2641_v25  ;;  %v3946_v21 = vadd.f32 %v3832_v9, %v3938_v10 }
 0x226   : > { %v3848_v20 = vpop.f32.mrb[23].mxu0  ;;  %2852 = vpow2.f32 %v2659_v58 }
 0x227   : > { %2854 = vpow2.f32 %v2642_v29 }
 0x228   : > { %v3856_v6 = vpop.f32.mrb[8].mxu1  ;;  %2856 = vpow2.f32 %v2660_v24  ;;  %v3887_v24 = vadd.f32 %v3812_v1, %v3876_v19 }
 0x229   : > { %v3863_v7 = vpop.f32.mrb[24].mxu0  ;;  %v3865_v3 = vpop.f32.mrb[9].mxu1 }
 0x22a   : > { %v3871_v18 = vpop.f32.mrb[25].mxu0  ;;  %5002 = vst [vmem:[#allocation10_spill] sm:$0xff] %v3887_v24 }
 0x22b   : > { %v2843_v22 = vpop.eup %2842 }
 0x22c   : > { %v2845_v58 = vpop.eup %2844  ;;  %v748_v26 = vadd.f32 1.0, %v2843_v22  ;;  %v938_v43 = vpop.f32.mrb[10].mxu1 }
 0x22d   : > { %v2847_v33 = vpop.eup %2846  ;;  %v1206_v59 = vadd.f32 1.0, %v2845_v58  ;;  %v3890_v45 = vadd.f32 %v938_v43, %v3789_v40  ;;  %v1625_v22 = vpop.f32.mrb[26].mxu0 }
 0x22e   : > { %v940_v63 = vpop.f32.mrb[11].mxu1  ;;  %v2849_v50 = vpop.eup %2848  ;;  %2858 = vrcp.f32 %v748_v26  ;;  %v749_v35 = vadd.f32 1.0, %v2847_v33  ;;  %v3893_v23 = vadd.f32 %v1625_v22, %v3789_v40  ;;  %v3904_v26 = vadd.f32 %v3817_v14, %v3876_v19 }
 0x22f   : > { %v3896_v58 = vadd.f32 %v940_v63, %v3789_v40  ;;  %v1627_v13 = vpop.f32.mrb[27].mxu0  ;;  %2860 = vrcp.f32 %v1206_v59  ;;  %v1207_v41 = vadd.f32 1.0, %v2849_v50  ;;  %v967_v1 = vsub.f32 0.0, %v3890_v45  ;;  %v3900_v43 = vpop.permute.xlu1 %605 }
 0x230   : > { %v2650_v57 = vmul.f32 -1.442695, %v3890_v45  ;;  %5003 = vst [vmem:[#allocation12_spill] sm:$0xff] %v3900_v43  ;;  %2862 = vrcp.f32 %v749_v35  ;;  %v3908_v33 = vadd.f32 %v3819_v49, %v3876_v19  ;;  %v1654_v63 = vsub.f32 0.0, %v3893_v23  ;;  %v3911_v22 = vpop.f32.mrb[12].mxu1  ;;  %v2851_v59 = vpop.eup %2850 }
 0x231   : > { %2864 = vrcp.f32 %v1207_v41  ;;  %v3915_v50 = vadd.f32 %v3822_v8, %v3900_v43  ;;  %v969_v35 = vmul.f32 %v967_v1, %v3791_v0  ;;  %v968_v11 = vsub.f32 0.0, %v3896_v58  ;;  %v3919_v14 = vpop.f32.mrb[28].mxu0  ;;  %v3921_v47 = vpop.f32.mrb[13].mxu1 }
 0x232   : > { %5004 = vst [vmem:[#allocation25_spill] sm:$0xff] %v3908_v33  ;;  %v2853_v49 = vpop.eup %2852  ;;  %v3925_v42 = vadd.f32 %v3824_v53, %v3900_v43  ;;  %v3929_v41 = vadd.f32 %v3826_v46, %v3900_v43  ;;  %v3933_v8 = vadd.f32 %v3828_v28, %v3900_v43  ;;  %v1656_v1 = vmul.f32 %v1654_v63, %v3791_v0  ;;  %v3936_v2 = vpop.f32.mrb[29].mxu0 }
 0x233   : > { %v2855_v29 = vpop.eup %2854  ;;  %v2648_v25 = vmul.f32 -1.442695, %v969_v35  ;;  %2866 = vpow2.f32 %v2650_v57  ;;  %v970_v53 = vmul.f32 %v968_v11, %v3791_v0  ;;  %v3942_v4 = vadd.f32 %v1627_v13, %v3789_v40  ;;  %v3963_v62 = vpop.permute.xlu1 %615 }
 0x234   : > { %5005 = vst [vmem:[#allocation26_spill] sm:$0xff] %v3925_v42  ;;  %5006 = vst [vmem:[#allocation27_spill] sm:$0xff] %v3933_v8  ;;  %v784_v46 = vadd.f32 1.0, %v2851_v59  ;;  %v2482_v28 = vrot.slane %v3890_v45, 2  ;;  %v2675_v63 = vmul.f32 -1.442695, %v1656_v1  ;;  %v2857_v48 = vpop.eup %2856  ;;  %v3956_v59 = vadd.f32 %v3840_v60, %v3938_v10 }
 0x235   : > { %5008 = vst [vmem:[#allocation29_spill] sm:$0xff] %v3942_v4  ;;  %v3949_v15 = vpop.f32.mrb[14].mxu1  ;;  %v1240_v36 = vadd.f32 1.0, %v2853_v49  ;;  %2868 = vpow2.f32 %v2648_v25  ;;  %v2649_v35 = vmul.f32 -1.442695, %v970_v53  ;;  %v1655_v57 = vsub.f32 0.0, %v3942_v4 }
 0x236   : > { %v3952_v11 = vpop.f32.mrb[30].mxu0  ;;  %v785_v13 = vadd.f32 1.0, %v2855_v29  ;;  %5009 = vst [vmem:[#allocation30_spill] sm:$0xff] %v3956_v59  ;;  %2870 = vpow2.f32 %v2675_v63  ;;  %v2483_v9 = vrot.slane %v3896_v58, 2  ;;  %v3959_v38 = vpop.f32.mrb[15].mxu1  ;;  %v3967_v25 = vadd.f32 %v3842_v55, %v3938_v10 }
 0x237   : > { %v3961_v1 = vpop.f32.mrb[31].mxu0  ;;  %v3971_v29 = vadd.f32 %v3848_v20, %v3938_v10  ;;  %2872 = vpow2.f32 %v2649_v35  ;;  %v1657_v60 = vmul.f32 %v1655_v57, %v3791_v0  ;;  %v1241_v53 = vadd.f32 1.0, %v2857_v48 }
 0x238   : > { %v2859_v49 = vpop.eup %2858  ;;  %2874 = vrcp.f32 %v784_v46  ;;  %v3976_v63 = vadd.f32 %v3856_v6, %v3963_v62  ;;  %v3978_v16 = vpop.f32.mrb[16].mxu1  ;;  %v3983_v55 = vsel %vm365_vm1, %v5011_v12, %v2482_v28  ;;  %v2677_v35 = vmul.f32 -1.442695, %v3893_v23 }
 0x239   : > { %5010 = vst [vmem:[#allocation31_spill] sm:$0xff] %v3971_v29  ;;  %v2861_v54 = vpop.eup %2860  ;;  %v754_v20 = vmul.f32 %v2859_v49, %v3791_v0  ;;  %2876 = vrcp.f32 %v1240_v36  ;;  %v2676_v57 = vmul.f32 -1.442695, %v1657_v60  ;;  %v3987_v46 = vpop.f32.mrb[32].mxu0  ;;  %v3994_v12 = vadd.f32 %v3863_v7, %v3963_v62 }
 0x23a   : > { %v3989_v48 = vpop.f32.mrb[17].mxu1  ;;  %v2863_v6 = vpop.eup %2862  ;;  %v1212_v29 = vmul.f32 %v2861_v54, %v3791_v0  ;;  %2878 = vrcp.f32 %v785_v13  ;;  %v5013_v36 = vrot.slane %v3800_v34, 3  ;;  %v2651_v42 = vmul.f32 -1.442695, %v3896_v58 }
 0x23b   : > { %5012 = vst [vmem:[#allocation32_spill] sm:$0xff] %v3994_v12  ;;  %v3996_v28 = vpop.f32.mrb[33].mxu0  ;;  %v2865_v49 = vpop.eup %2864  ;;  %v756_v59 = vsub.f32 0.0, %v754_v20  ;;  %v755_v8 = vmul.f32 %v2863_v6, %v3791_v0  ;;  %2880 = vpow2.f32 %v2676_v57  ;;  %v4008_v7 = vadd.f32 %v3865_v3, %v3963_v62 }
 0x23c   : > { %v4001_v60 = vsel %vm365_vm1, %v5013_v36, %v2483_v9  ;;  %v1214_v54 = vsub.f32 0.0, %v1212_v29  ;;  %v1213_v13 = vmul.f32 %v2865_v49, %v3791_v0  ;;  %2882 = vrcp.f32 %v1241_v53  ;;  %v4010_v12 = vpop.f32.mrb[18].mxu1 }
 0x23d   : > { %v2867_v33 = vpop.eup %2866  ;;  %v764_v9 = vmul.f32 %v3860_v52, %v756_v59  ;;  %v757_v36 = vsub.f32 0.0, %v755_v8  ;;  %v4015_v20 = vadd.f32 %v3871_v18, %v3963_v62  ;;  %2884 = vpow2.f32 %v2677_v35  ;;  %v4017_v57 = vpop.f32.mrb[34].mxu0 }
 0x23e   : > { %v4019_v29 = vpop.f32.mrb[19].mxu1  ;;  %v1216_v53 = vmul.f32 %v1214_v54, %v3860_v52  ;;  %v1215_v6 = vsub.f32 0.0, %v1213_v13  ;;  %v2678_v49 = vmul.f32 -1.442695, %v3942_v4  ;;  %v4024_v24 = vpop.f32.mrb[35].mxu0  ;;  %2886 = vpow2.f32 %v2651_v42 }
 0x23f   : > { %5014 = vst [vmem:[#allocation33_spill] sm:$0xff] %v4015_v20  ;;  %5015 = vst [vmem:[#allocation34_spill] sm:$0xff] %v4024_v24  ;;  %v2869_v59 = vpop.eup %2868  ;;  %v766_v8 = vmul.f32 1.442695, %v764_v9  ;;  %v765_v39 = vmul.f32 %v3858_v51, %v757_v36  ;;  %v4029_v18 = vadd.f32 %v3911_v22, %v3876_v19  ;;  %v1011_v20 = vadd.f32 1.0, %v2867_v33 }
 0x240   : > { %v2871_v35 = vpop.eup %2870  ;;  %v4034_v13 = vadd.f32 %v3919_v14, %v3876_v19  ;;  %v4038_v3 = vadd.f32 %v3921_v47, %v3876_v19  ;;  %v1396_v9 = vpop.f32.mrb[20].mxu1  ;;  %v1218_v42 = vmul.f32 1.442695, %v1216_v53  ;;  %v4042_v22 = vadd.f32 %v3936_v2, %v3876_v19 }
 0x241   : > { %v2873_v24 = vpop.eup %2872  ;;  %2888 = vpow2.f32 %v766_v8  ;;  %v768_v36 = vmul.f32 1.442695, %v765_v39  ;;  %v2083_v33 = vpop.f32.mrb[36].mxu0  ;;  %v1217_v14 = vmul.f32 %v1215_v6, %v3858_v51  ;;  %v4049_v47 = vadd.f32 %v3949_v15, %v3900_v43 }
 0x242   : > { %5016 = vst [vmem:[#allocation35_spill] sm:$0xff] %v4034_v13  ;;  %5017 = vst [vmem:[#allocation36_spill] sm:$0xff] %v4038_v3  ;;  %v1398_v61 = vpop.f32.mrb[21].mxu1  ;;  %v4044_v54 = vpop.eup %2874  ;;  %v977_v13 = vadd.f32 1.0, %v2869_v59  ;;  %2890 = vpow2.f32 %v2678_v49  ;;  %v1664_v39 = vadd.f32 1.0, %v2871_v35  ;;  %v4054_v2 = vadd.f32 %v1396_v9, %v3789_v40 }
 0x243   : > { %5018 = vst [vmem:[#allocation37_spill] sm:$0xff] %v4042_v22  ;;  %v2085_v3 = vpop.f32.mrb[37].mxu0  ;;  %v4051_v8 = vpop.eup %2876  ;;  %2892 = vpow2.f32 %v768_v36  ;;  %v4057_v53 = vadd.f32 %v2083_v33, %v3789_v40  ;;  %v978_v6 = vadd.f32 1.0, %v2873_v24  ;;  %v4063_v49 = vadd.f32 %v3952_v11, %v3900_v43 }
 0x244   : > { %5019 = vst [vmem:[#allocation38_spill] sm:$0xff] %v4051_v8  ;;  %5020 = vst [vmem:[#allocation39_spill] sm:$0xff] %v4054_v2  ;;  %v4059_v22 = vpop.eup %2878  ;;  %2894 = vrcp.f32 %v1011_v20  ;;  %v5023_v15 = vrot.slane %v3797_v27, 1  ;;  %v4069_v35 = vpop.f32.mrb[22].mxu1  ;;  %v1425_v36 = vsub.f32 0.0, %v4054_v2  ;;  %v4077_v24 = vadd.f32 %v1398_v61, %v3789_v40 }
 0x245   : > { %5021 = vst [vmem:[#allocation40_spill] sm:$0xff] %v4057_v53  ;;  %5022 = vst [vmem:[#allocation41_spill] sm:$0xff] %v4063_v49  ;;  %v2881_v9 = vpop.eup %2880  ;;  %2896 = vpow2.f32 %v1218_v42  ;;  %v4079_v11 = vpop.f32.mrb[38].mxu0  ;;  %v2112_v42 = vsub.f32 0.0, %v4057_v53  ;;  %v4094_v61 = vadd.f32 %v3961_v1, %v3900_v43  ;;  %v4107_v1 = vadd.f32 %v2085_v3, %v3789_v40 }
 0x246   : > { %v2519_v59 = vsel %vm2518_vm10, %v3983_v55, %v5023_v15  ;;  %5024 = vst [vmem:[#allocation42_spill] sm:$0xff] %v4077_v24  ;;  %5025 = vst [vmem:[#allocation43_spill] sm:$0xff] %v4079_v11  ;;  %v4081_v20 = vpop.f32.mrb[23].mxu1  ;;  %v4083_v49 = vpop.eup %2882  ;;  %v1220_v55 = vmul.f32 1.442695, %v1217_v14  ;;  %2898 = vrcp.f32 %v977_v13  ;;  %v1665_v15 = vadd.f32 1.0, %v2881_v9 }
 0x247   : > { %v4074_v33 = vsel %vm2419_vm11, %v2519_v59, %v4054_v2  ;;  %5026 = vst [vmem:[#allocation44_spill] sm:$0xff] %v4083_v49  ;;  %v4086_v27 = vpop.f32.mrb[39].mxu0  ;;  %v2885_v8 = vpop.eup %2884  ;;  %2900 = vrcp.f32 %v1664_v39  ;;  %v4090_v59 = vadd.f32 %v3959_v38, %v3900_v43  ;;  %5029 = vst [vmem:[#allocation47_spill] sm:$0xff] %v4094_v61  ;;  %v1427_v11 = vmul.f32 %v1425_v36, %v3791_v0 }
 0x248   : > { %5027 = vst [vmem:[#allocation45_spill] sm:$0xff] %v4086_v27  ;;  %2902 = vrcp.f32 %v978_v6  ;;  %v4099_v13 = vadd.f32 %v3978_v16, %v3938_v10  ;;  %v2668_v14 = vmul.f32 -1.442695, %v4054_v2  ;;  %v2114_v9 = vmul.f32 %v2112_v42, %v3791_v0  ;;  %v4103_v39 = vpop.f32.mrb[24].mxu1  ;;  %v2887_v27 = vpop.eup %2886  ;;  %5031 = vst [vmem:[#allocation49_spill] sm:$0xff] %v4107_v1 }
 0x249   : > { %5028 = vst [vmem:[#allocation46_spill] sm:$0xff] %v4090_v59  ;;  %2904 = vrcp.f32 %v1665_v15  ;;  %v2666_v38 = vmul.f32 -1.442695, %v1427_v11  ;;  %v1426_v49 = vsub.f32 0.0, %v4077_v24  ;;  %v4109_v36 = vpop.f32.mrb[40].mxu0  ;;  %v4111_v6 = vpop.f32.mrb[25].mxu1  ;;  %v4115_v61 = vadd.f32 %v3987_v46, %v3938_v10 }
 0x24a   : > { %5030 = vst [vmem:[#allocation48_spill] sm:$0xff] %v4099_v13  ;;  %5032 = vst [vmem:[#allocation50_spill] sm:$0xff] %v4109_v36  ;;  %2906 = vpow2.f32 %v1220_v55  ;;  %v1698_v16 = vadd.f32 1.0, %v2885_v8  ;;  %v2693_v42 = vmul.f32 -1.442695, %v2114_v9  ;;  %v4117_v2 = vpop.f32.mrb[41].mxu0  ;;  %v4121_v11 = vadd.f32 %v3989_v48, %v3938_v10 }
 0x24b   : > { %5033 = vst [vmem:[#allocation51_spill] sm:$0xff] %v4115_v61  ;;  %5034 = vst [vmem:[#allocation52_spill] sm:$0xff] %v4117_v2  ;;  %v2889_v15 = vpop.eup %2888  ;;  %v4125_v3 = vadd.f32 %v3996_v28, %v3938_v10  ;;  %2908 = vpow2.f32 %v2666_v38  ;;  %v2695_v55 = vmul.f32 -1.442695, %v4057_v53  ;;  %v4132_v46 = vadd.f32 %v4010_v12, %v3963_v62 }
 0x24c   : > { %5035 = vst [vmem:[#allocation53_spill] sm:$0xff] %v4121_v11  ;;  %v2891_v8 = vpop.eup %2890  ;;  %v4128_v36 = vsub.f32 1.0, %v2889_v15  ;;  %2910 = vpow2.f32 %v2668_v14  ;;  %v5038_v9 = vrot.slane %v3803_v5, 1  ;;  %v4140_v2 = vpop.f32.mrb[26].mxu1  ;;  %v4144_v38 = vadd.f32 %v4017_v57, %v3963_v62 }
 0x24d   : > { %5036 = vst [vmem:[#allocation54_spill] sm:$0xff] %v4125_v3  ;;  %5037 = vst [vmem:[#allocation55_spill] sm:$0xff] %v4132_v46  ;;  %v2893_v28 = vpop.eup %2892  ;;  %2912 = vpow2.f32 %v2693_v42  ;;  %v1428_v15 = vmul.f32 %v1426_v49, %v3791_v0  ;;  %v2113_v12 = vsub.f32 0.0, %v4107_v1  ;;  %v4148_v3 = vpop.f32.mrb[42].mxu0  ;;  %v5041_v57 = vrot.slane %v4987_v44, 3 }
 0x24e   : > { %v4138_v48 = vsel %vm2518_vm10, %v4001_v60, %v5038_v9  ;;  %5039 = vst [vmem:[#allocation56_spill] sm:$0xff] %v4144_v38  ;;  %5040 = vst [vmem:[#allocation57_spill] sm:$0xff] %v4148_v3  ;;  %v4150_v14 = vpop.f32.mrb[27].mxu1  ;;  %v4152_v61 = vpop.eup %2894  ;;  %v793_v60 = vrot.slane %v4128_v36, %v3835_v17  ;;  %v4156_v9 = vsub.f32 1.0, %v2893_v28  ;;  %2914 = vrcp.f32 %v1698_v16 }
 0x24f   : > { %v4161_v38 = vmul.f32 %v5041_v57, %v4128_v36  ;;  %v4163_v49 = vpop.f32.mrb[43].mxu0  ;;  %v4165_v42 = vpop.eup %2896  ;;  %v1012_v3 = vadd.f32 1.0, %v2887_v27  ;;  %v1699_v5 = vadd.f32 1.0, %v2891_v8  ;;  %v4169_v46 = vadd.f32 %v4019_v29, %v3963_v62 }
 0x250   : > { %5042 = vst [vmem:[#allocation58_spill] sm:$0xff] %v4163_v49  ;;  %2916 = vpow2.f32 %v2695_v55  ;;  %v2899_v28 = vpop.eup %2898  ;;  %v4172_v11 = vmul.f32 %v4044_v54, %v793_v60  ;;  %v4175_v44 = vmul.f32 %v793_v60, %v3794_v31  ;;  %v797_v16 = vrot.slane %v4156_v9, %v3835_v17  ;;  %v4182_v27 = vpop.f32.mrb[28].mxu1 }
 0x251   : > { %5043 = vst [vmem:[#allocation59_spill] sm:$0xff] %v4169_v46  ;;  %v4180_v57 = vmul.f32 %v793_v60, %v3883_v56  ;;  %v2901_v8 = vpop.eup %2900  ;;  %v4185_v29 = vmul.f32 %v793_v60, %v3915_v50  ;;  %v4188_v55 = vmul.f32 %v793_v60, %v3946_v21  ;;  %v2667_v54 = vmul.f32 -1.442695, %v1428_v15  ;;  %v4191_v31 = vpop.f32.mrb[44].mxu0 }
 0x252   : > { %v2115_v49 = vmul.f32 %v2113_v12, %v3791_v0  ;;  %5046 = vst [vmem:[#allocation62_spill] sm:$0xff] %v4191_v31  ;;  %v4193_v46 = vpop.f32.mrb[29].mxu1  ;;  %v2903_v13 = vpop.eup %2902  ;;  %v4196_v56 = vmul.f32 %v4059_v22, %v797_v16  ;;  %v4199_v59 = vmul.f32 %v797_v16, %v3800_v34  ;;  %v4202_v50 = vmul.f32 %v797_v16, %v3904_v26 }
 0x253   : > { %5044 = vst [vmem:[#allocation60_spill] sm:$0xff] %v4185_v29  ;;  %5045 = vst [vmem:[#allocation61_spill] sm:$0xff] %v4188_v55  ;;  %v4205_v21 = vmul.f32 %v797_v16, %v3929_v41  ;;  %v4207_v15 = vpop.f32.mrb[45].mxu0  ;;  %v2905_v12 = vpop.eup %2904  ;;  %v4210_v31 = vmul.f32 %v797_v16, %v3967_v25  ;;  %v4216_v22 = vmul.f32 %v797_v16, %v4008_v7  ;;  %v2669_v34 = vmul.f32 -1.442695, %v4077_v24 }
 0x254   : > { %5047 = vst [vmem:[#allocation63_spill] sm:$0xff] %v4193_v46  ;;  %5048 = vst [vmem:[#allocation64_spill] sm:$0xff] %v4196_v56  ;;  %v4213_v46 = vmul.f32 %v793_v60, %v3976_v63  ;;  %v4219_v55 = vpop.eup %2906  ;;  %v983_v41 = vmul.f32 %v2899_v28, %v3791_v0  ;;  %2918 = vrcp.f32 %v1012_v3  ;;  %v5056_v63 = vrot.slane %v3290_v30, 3 }
 0x255   : > { %5049 = vst [vmem:[#allocation65_spill] sm:$0xff] %v4199_v59  ;;  %5050 = vst [vmem:[#allocation66_spill] sm:$0xff] %v4202_v50  ;;  %v2909_v25 = vpop.eup %2908  ;;  %v984_v7 = vmul.f32 %v2903_v13, %v3791_v0  ;;  %v1671_v16 = vmul.f32 %v2905_v12, %v3791_v0  ;;  %2920 = vpow2.f32 %v2667_v54  ;;  %v2694_v3 = vmul.f32 -1.442695, %v2115_v49 }
 0x256   : > { %5051 = vst [vmem:[#allocation67_spill] sm:$0xff] %v4205_v21  ;;  %5052 = vst [vmem:[#allocation68_spill] sm:$0xff] %v4207_v15  ;;  %v1670_v15 = vmul.f32 %v2901_v8, %v3791_v0  ;;  %v1854_v21 = vpop.f32.mrb[30].mxu1  ;;  %v4227_v60 = vmul.f32 %v5056_v63, %v4156_v9  ;;  %v2911_v26 = vpop.eup %2910  ;;  %v985_v28 = vsub.f32 0.0, %v983_v41  ;;  %v1435_v8 = vadd.f32 1.0, %v2909_v25 }
 0x257   : > { %5053 = vst [vmem:[#allocation69_spill] sm:$0xff] %v4210_v31  ;;  %5054 = vst [vmem:[#allocation70_spill] sm:$0xff] %v4213_v46  ;;  %v4231_v46 = vpop.f32.mrb[31].mxu1  ;;  %v2913_v50 = vpop.eup %2912  ;;  %v986_v59 = vsub.f32 0.0, %v984_v7  ;;  %v1673_v30 = vsub.f32 0.0, %v1671_v16  ;;  %v1469_v63 = vadd.f32 1.0, %v2911_v26  ;;  %2922 = vpow2.f32 %v2669_v34 }
 0x258   : > { %5055 = vst [vmem:[#allocation71_spill] sm:$0xff] %v4216_v22  ;;  %v2306_v22 = vpop.f32.mrb[46].mxu0  ;;  %v1672_v31 = vsub.f32 0.0, %v1670_v15  ;;  %v4235_v56 = vpop.eup %2914  ;;  %v987_v13 = vmul.f32 %v985_v28, %v3860_v52  ;;  %2924 = vrcp.f32 %v1435_v8  ;;  %v2522_v15 = vsel %vm2419_vm11, %v4138_v48, %v4077_v24 }
 0x259   : > { %v4233_v29 = vpop.f32.mrb[47].mxu0  ;;  %v4242_v49 = vpop.f32.mrb[32].mxu1  ;;  %v988_v41 = vmul.f32 %v986_v59, %v3858_v51  ;;  %v1675_v26 = vmul.f32 %v1673_v30, %v3858_v51  ;;  %2926 = vrcp.f32 %v1699_v5  ;;  %v2122_v34 = vadd.f32 1.0, %v2913_v50 }
 0x25a   : > { %5057 = vst [vmem:[#allocation72_spill] sm:$0xff] %v4233_v29  ;;  %v1674_v54 = vmul.f32 %v1672_v31, %v3860_v52  ;;  %5058 = vst [vmem:[#allocation73_spill] sm:$0xff] %v4242_v49  ;;  %v2917_v12 = vpop.eup %2916  ;;  %v4246_v25 = vpop.f32.mrb[33].mxu1  ;;  %v4950_v7 = vsub.f32 1.0, %v4219_v55  ;;  %v989_v31 = vmul.f32 1.442695, %v987_v13  ;;  %2928 = vrcp.f32 %v1469_v63 }
 0x25b   : > { %5059 = vst [vmem:[#allocation74_spill] sm:$0xff] %v4246_v25  ;;  %v5060_v16 = vrot.slane %v3893_v23, 7  ;;  %v5061_v28 = vsub.f32 1.0, %v4165_v42  ;;  %v991_v59 = vmul.f32 1.442695, %v988_v41  ;;  %2930 = vpow2.f32 %v2694_v3 }
 0x25c   : > { %v1676_v49 = vmul.f32 1.442695, %v1674_v54  ;;  %2932 = vpow2.f32 %v989_v31  ;;  %v1678_v5 = vmul.f32 1.442695, %v1675_v26  ;;  %v2506_v50 = vrot.slane %v4057_v53, 5  ;;  %v4261_v13 = vpop.f32.mrb[34].mxu1 }
 0x25d   : > { %v2523_v48 = vsel %vm2422_vm12, %v4074_v33, %v5060_v16  ;;  %v1226_v8 = vsub.f32 1.0, %v5061_v28  ;;  %v5062_v30 = vrot.slane %v3942_v4, 7  ;;  %5063 = vst [vmem:[#allocation75_spill] sm:$0xff] %v4261_v13  ;;  %2934 = vrcp.f32 %v2122_v34  ;;  %v4265_v3 = vpop.f32.mrb[35].mxu1 }
 0x25e   : > { %v2150_v33 = vadd.f32 1.0, %v2917_v12  ;;  %v2696_v16 = vmul.f32 -1.442695, %v4107_v1  ;;  %5064 = vst [vmem:[#allocation76_spill] sm:$0xff] %v4265_v3  ;;  %v4267_v41 = vpop.eup %2918  ;;  %v1227_v26 = vsub.f32 1.0, %v4950_v7  ;;  %v772_v31 = vsub.f32 1.0, %v4128_v36 }
 0x25f   : > { %v4259_v63 = vsel %vm2422_vm12, %v2522_v15, %v5062_v30  ;;  %2936 = vpow2.f32 %v991_v59  ;;  %v4274_v15 = vadd.f32 %v4069_v35, %v3876_v19  ;;  %v2921_v34 = vpop.eup %2920  ;;  %v4276_v12 = vadd.f32 1e-10, %v1226_v8  ;;  %v5100_v24 = vld [vmem:[#allocation70_spill] sm:$0xff] }
 0x260   : > { %2938 = vpow2.f32 %v1676_v49  ;;  %v4280_v28 = vadd.f32 %v4081_v20, %v3876_v19  ;;  %v4283_v30 = vadd.f32 %v1854_v21, %v3789_v40  ;;  %v773_v54 = vsub.f32 1.0, %v4156_v9  ;;  %v4290_v35 = vpop.f32.mrb[36].mxu1 }
 0x261   : > { %2940 = vpow2.f32 %v1678_v5  ;;  %v1436_v59 = vadd.f32 1.0, %v2921_v34  ;;  %v4288_v7 = vadd.f32 %v2306_v22, %v3789_v40  ;;  %5068 = vst [vmem:[#allocation80_spill] sm:$0xff] %v4290_v35  ;;  %v2923_v8 = vpop.eup %2922  ;;  %v4295_v21 = vpop.f32.mrb[37].mxu1  ;;  %v4297_v13 = vadd.f32 1e-10, %v1227_v26 }
 0x262   : > { %5065 = vst [vmem:[#allocation77_spill] sm:$0xff] %v4280_v28  ;;  %5066 = vst [vmem:[#allocation78_spill] sm:$0xff] %v4283_v30  ;;  %2942 = vrcp.f32 %v2150_v33  ;;  %v1883_v49 = vsub.f32 0.0, %v4283_v30  ;;  %v2686_v20 = vmul.f32 -1.442695, %v4283_v30  ;;  %v2500_v53 = vrot.slane %v4283_v30, 6  ;;  %v2925_v3 = vpop.eup %2924 }
 0x263   : > { %5067 = vst [vmem:[#allocation79_spill] sm:$0xff] %v4288_v7  ;;  %5069 = vst [vmem:[#allocation81_spill] sm:$0xff] %v4295_v21  ;;  %v4299_v5 = vadd.f32 1e-10, %v772_v31  ;;  %2944 = vpow2.f32 %v2696_v16  ;;  %v4303_v22 = vadd.f32 %v4231_v46, %v3789_v40  ;;  %v4305_v34 = vpop.eup %2926  ;;  %v1441_v33 = vmul.f32 %v2925_v3, %v3791_v0 }
 0x264   : > { %5070 = vst [vmem:[#allocation82_spill] sm:$0xff] %v4305_v34  ;;  %v1470_v35 = vadd.f32 1.0, %v2923_v8  ;;  %v1885_v25 = vmul.f32 %v1883_v49, %v3791_v0  ;;  %v2526_v30 = vsel %vm2525_vm13, %v2523_v48, %v2500_v53  ;;  %v4310_v21 = vpop.eup %2928  ;;  %v4312_v26 = vadd.f32 1e-10, %v773_v54  ;;  %v4316_v46 = vpop.f32.mrb[38].mxu1 }
 0x265   : > { %2946 = vrcp.f32 %v1436_v59  ;;  %v2512_v16 = vrot.slane %v4288_v7, 4  ;;  %v2528_v31 = vsel %vm329_vm0, %v2526_v30, %v2506_v50  ;;  %5071 = vst [vmem:[#allocation83_spill] sm:$0xff] %v4316_v46  ;;  %v2931_v4 = vpop.eup %2930  ;;  %v1443_v34 = vsub.f32 0.0, %v1441_v33  ;;  %v4323_v48 = vpop.f32.mrb[39].mxu1 }
 0x266   : > { %v4320_v3 = vadd.f32 %v4103_v39, %v3900_v43  ;;  %2948 = vpow2.f32 %v2686_v20  ;;  %v2702_v53 = vmul.f32 -1.442695, %v4288_v7  ;;  %5072 = vst [vmem:[#allocation84_spill] sm:$0xff] %v4323_v48  ;;  %v2933_v54 = vpop.eup %2932  ;;  %v2123_v59 = vadd.f32 1.0, %v2931_v4 }
 0x267   : > { %v2530_v8 = vsel %vm2425_vm14, %v2528_v31, %v2512_v16  ;;  %v1884_v50 = vsub.f32 0.0, %v4303_v22  ;;  %v2687_v30 = vmul.f32 -1.442695, %v4303_v22  ;;  %v2935_v49 = vpop.eup %2934  ;;  %v993_v46 = vsub.f32 1.0, %v2933_v54 }
 0x268   : > { %v1445_v33 = vmul.f32 %v1443_v34, %v3860_v52  ;;  %2950 = vrcp.f32 %v1470_v35  ;;  %v2684_v39 = vmul.f32 -1.442695, %v1885_v25  ;;  %2532 = vst [vmem:[%s4331_s27 + $0x50] sm:$0xff] %v2530_v8  ;;  %v4336_v4 = vadd.f32 %v4111_v6, %v3900_v43  ;;  %v4346_v25 = vpop.f32.mrb[40].mxu1 }
 0x269   : > { %v2937_v20 = vpop.eup %2936  ;;  %2952 = vrcp.f32 %v2123_v59  ;;  %v4340_v16 = vadd.f32 %v4140_v2, %v3938_v10  ;;  %v4344_v34 = vadd.f32 %v4150_v14, %v3938_v10  ;;  %5075 = vst [vmem:[#allocation87_spill] sm:$0xff] %v4346_v25  ;;  %v995_v31 = vmul.f32 %v993_v46, %v4299_v5  ;;  %v4355_v6 = vpop.f32.mrb[41].mxu1 }
 0x26a   : > { %5073 = vst [vmem:[#allocation85_spill] sm:$0xff] %v4336_v4  ;;  %v4348_v35 = vpop.eup %2938  ;;  %v994_v54 = vsub.f32 1.0, %v2937_v20  ;;  %v4353_v59 = vadd.f32 %v4182_v27, %v3963_v62  ;;  %2954 = vpow2.f32 %v2702_v53  ;;  %5076 = vst [vmem:[#allocation88_spill] sm:$0xff] %v4355_v6  ;;  %v997_v8 = vsub.f32 1.0, %v993_v46 }
 0x26b   : > { %5074 = vst [vmem:[#allocation86_spill] sm:$0xff] %v4344_v34  ;;  %v4357_v2 = vpop.eup %2940  ;;  %v4360_v14 = vmul.f32 %v2935_v49, %v3791_v0  ;;  %v1886_v7 = vmul.f32 %v1884_v50, %v3791_v0  ;;  %2956 = vpow2.f32 %v2687_v30  ;;  %v4366_v20 = vadd.f32 %v995_v31, %v4128_v36 }
 0x26c   : > { %v4363_v25 = vpop.eup %2942  ;;  %v1020_v27 = vrot.slane %v995_v31, %v3835_v17  ;;  %v5078_v53 = vrot.slane %v4991_v37, 3  ;;  %2958 = vpow2.f32 %v2684_v39  ;;  %v996_v49 = vmul.f32 %v994_v54, %v4312_v26  ;;  %v4375_v30 = vpop.f32.mrb[42].mxu1 }
 0x26d   : > { %5077 = vst [vmem:[#allocation89_spill] sm:$0xff] %v4363_v25  ;;  %v4371_v6 = vpop.eup %2944  ;;  %v998_v10 = vsub.f32 1.0, %v994_v54  ;;  %v1447_v50 = vmul.f32 1.442695, %v1445_v33  ;;  %5080 = vst [vmem:[#allocation91_spill] sm:$0xff] %v4375_v30  ;;  %v4383_v39 = vpop.f32.mrb[43].mxu1 }
 0x26e   : > { %v1055_v48 = vmul.f32 %v5078_v53, %v995_v31  ;;  %5079 = vst [vmem:[#allocation90_spill] sm:$0xff] %v4371_v6  ;;  %v1025_v25 = vmul.f32 %v4152_v61, %v1020_v27  ;;  %v1029_v36 = vmul.f32 %v1020_v27, %v3890_v45  ;;  %v1031_v37 = vmul.f32 %v1020_v27, %v4029_v18  ;;  %v5085_v6 = vld [vmem:[#allocation36_spill] sm:$0xff] }
 0x26f   : > { %5081 = vst [vmem:[#allocation92_spill] sm:$0xff] %v4383_v39  ;;  %v2947_v31 = vpop.eup %2946  ;;  %v999_v53 = vadd.f32 1e-10, %v997_v8  ;;  %v4386_v46 = vadd.f32 %v996_v49, %v4156_v9  ;;  %v1024_v33 = vrot.slane %v996_v49, %v3835_v17  ;;  %v5083_v54 = vrot.slane %v4989_v32, 3 }
 0x270   : > { %v4380_v43 = vadd.f32 %v1055_v48, %v4161_v38  ;;  %v4391_v61 = vpop.eup %2948  ;;  %v1027_v45 = vadd.f32 %v1025_v25, %v4172_v11  ;;  %v1039_v38 = vadd.f32 %v1029_v36, %v4175_v44  ;;  %v1000_v48 = vadd.f32 1e-10, %v998_v10  ;;  %v4402_v32 = vpop.f32.mrb[44].mxu1  ;;  %v5087_v25 = vld [vmem:[#allocation46_spill] sm:$0xff]  ;;  %v5088_v10 = vld [vmem:[#allocation48_spill] sm:$0xff] }
 0x271   : > { %5082 = vst [vmem:[#allocation93_spill] sm:$0xff] %v4386_v46  ;;  %v1056_v30 = vmul.f32 %v5083_v54, %v996_v49  ;;  %5084 = vst [vmem:[#allocation94_spill] sm:$0xff] %v4391_v61  ;;  %v4396_v18 = vadd.f32 %v1031_v37, %v4180_v57  ;;  %v1026_v8 = vmul.f32 %v4267_v41, %v1024_v33  ;;  %v5089_v57 = vld [vmem:[#allocation53_spill] sm:$0xff]  ;;  %v4410_v54 = vpop.f32.mrb[45].mxu1  ;;  %2960 = vpow2.f32 %v1447_v50 }
 0x272   : > { %v1030_v9 = vmul.f32 %v1024_v33, %v3896_v58  ;;  %v1032_v19 = vmul.f32 %v1024_v33, %v5085_v6  ;;  %5086 = vst [vmem:[#allocation36_spill] sm:$0xff] %v4402_v32  ;;  %v4404_v49 = vpop.eup %2950  ;;  %v1033_v11 = vmul.f32 %v1020_v27, %v4049_v47  ;;  %v1034_v44 = vmul.f32 %v1024_v33, %v5087_v25  ;;  %v5091_v58 = vld [vmem:[#allocation64_spill] sm:$0xff]  ;;  %v5093_v6 = vld [vmem:[#allocation66_spill] sm:$0xff]  ;;  %v5094_v32 = vld [vmem:[#allocation55_spill] sm:$0xff] }
 0x273   : > { %v1058_v39 = vadd.f32 %v1056_v30, %v4227_v60  ;;  %v1035_v36 = vmul.f32 %v1020_v27, %v5088_v10  ;;  %v1036_v37 = vmul.f32 %v1024_v33, %v5089_v57  ;;  %5090 = vst [vmem:[#allocation46_spill] sm:$0xff] %v4410_v54  ;;  %v2953_v41 = vpop.eup %2952  ;;  %v1028_v61 = vadd.f32 %v1026_v8, %v5091_v58  ;;  %v5092_v60 = vld [vmem:[#allocation65_spill] sm:$0xff]  ;;  %v5095_v47 = vld [vmem:[#allocation60_spill] sm:$0xff]  ;;  %v5096_v25 = vld [vmem:[#allocation67_spill] sm:$0xff] }
 0x274   : > { %v1040_v30 = vadd.f32 %v1030_v9, %v5092_v60  ;;  %v1042_v1 = vadd.f32 %v1032_v19, %v5093_v6  ;;  %v1037_v29 = vmul.f32 %v1020_v27, %v5094_v32  ;;  %v4416_v40 = vpop.eup %2954  ;;  %v1043_v46 = vadd.f32 %v1033_v11, %v5095_v47  ;;  %v5097_v10 = vld [vmem:[#allocation61_spill] sm:$0xff]  ;;  %v5101_v58 = vld [vmem:[#allocation59_spill] sm:$0xff]  ;;  %v4427_v27 = vpop.f32.mrb[46].mxu1 }
 0x275   : > { %v1044_v34 = vadd.f32 %v1034_v44, %v5096_v25  ;;  %v1045_v4 = vadd.f32 %v1035_v36, %v5097_v10  ;;  %v5098_v57 = vld [vmem:[#allocation69_spill] sm:$0xff]  ;;  %v4422_v54 = vpop.eup %2956  ;;  %v1038_v9 = vmul.f32 %v1024_v33, %v5101_v58  ;;  %v1001_v19 = vmul.f32 %v999_v53, %v4299_v5  ;;  %5102 = vst [vmem:[#allocation53_spill] sm:$0xff] %v4427_v27  ;;  %v5104_v6 = vld [vmem:[#allocation71_spill] sm:$0xff] }
 0x276   : > { %v1046_v28 = vadd.f32 %v1036_v37, %v5098_v57  ;;  %5099 = vst [vmem:[#allocation48_spill] sm:$0xff] %v4422_v54  ;;  %v1047_v8 = vadd.f32 %v1037_v29, %v5100_v24  ;;  %v2959_v32 = vpop.eup %2958  ;;  %v1002_v11 = vmul.f32 %v1000_v48, %v4312_v26  ;;  %v1442_v44 = vmul.f32 %v2947_v31, %v3791_v0  ;;  %v4432_v37 = vpop.f32.mrb[47].mxu1  ;;  %v5108_v25 = vld [vmem:[#allocation9_spill] sm:$0xff]  ;;  %v5110_v58 = vld [vmem:[#allocation7_spill] sm:$0xff] }
 0x277   : > { %v2129_v36 = vmul.f32 %v2953_v41, %v3791_v0  ;;  %v2685_v60 = vmul.f32 -1.442695, %v1886_v7  ;;  %5103 = vst [vmem:[#allocation64_spill] sm:$0xff] %v4432_v37  ;;  %v1048_v47 = vadd.f32 %v1038_v9, %v5104_v6  ;;  %v5105_v24 = vsub.f32 1.0, %v4165_v42 }
 0x278   : > { %v4438_v5 = vmul.f32 %v4276_v12, %v1001_v19  ;;  %v2130_v50 = vsub.f32 0.0, %v4360_v14  ;;  %v5106_v53 = vsub.f32 1.0, %v4348_v35  ;;  %v5107_v31 = vsub.f32 1.0, %v4219_v55 }
 0x279   : > { %v1224_v29 = vmul.f32 %v5105_v24, %v1001_v19  ;;  %v4448_v7 = vmul.f32 %v4297_v13, %v1002_v11  ;;  %v1444_v48 = vsub.f32 0.0, %v1442_v44  ;;  %v5109_v12 = vrot.slane %v5108_v25, 3  ;;  %v5112_v13 = vld [vmem:[#allocation38_spill] sm:$0xff]  ;;  %v5113_v44 = vld [vmem:[#allocation23_spill] sm:$0xff]  ;;  %v5115_v25 = vld [vmem:[#allocation24_spill] sm:$0xff] }
 0x27a   : > { %v1684_v26 = vsub.f32 1.0, %v5106_v53  ;;  %v4445_v33 = vmul.f32 %v5107_v31, %v1002_v11  ;;  %v2131_v57 = vsub.f32 0.0, %v2129_v36  ;;  %v5111_v55 = vrot.slane %v5110_v58, 3  ;;  %v5114_v36 = vld [vmem:[#allocation44_spill] sm:$0xff] }
 0x27b   : > { %v1249_v42 = vrot.slane %v1224_v29, %v3835_v17  ;;  %v1284_v10 = vmul.f32 %v5109_v12, %v1224_v29  ;;  %v1446_v19 = vmul.f32 %v1444_v48, %v3858_v51  ;;  %2962 = vpow2.f32 %v2685_v60  ;;  %v5116_v48 = vld [vmem:[#allocation10_spill] sm:$0xff] }
 0x27c   : > { %v1253_v14 = vrot.slane %v4445_v33, %v3835_v17  ;;  %v1285_v9 = vmul.f32 %v5111_v55, %v4445_v33  ;;  %v4464_v53 = vmul.f32 %v2131_v57, %v3858_v51  ;;  %v2132_v60 = vmul.f32 %v2130_v50, %v3860_v52  ;;  %v2961_v57 = vpop.eup %2960  ;;  %v5120_v50 = vld [vmem:[#allocation30_spill] sm:$0xff] }
 0x27d   : > { %v1254_v11 = vmul.f32 %v5112_v13, %v1249_v42  ;;  %v1258_v6 = vmul.f32 %v1249_v42, %v5113_v44  ;;  %v1286_v24 = vadd.f32 %v1284_v10, %v4380_v43  ;;  %v1449_v58 = vmul.f32 1.442695, %v1446_v19  ;;  %v5117_v43 = vld [vmem:[#allocation25_spill] sm:$0xff] }
 0x27e   : > { %v1255_v31 = vmul.f32 %v5114_v36, %v1253_v14  ;;  %v1259_v12 = vmul.f32 %v1253_v14, %v5115_v25  ;;  %v4468_v41 = vadd.f32 %v1285_v9, %v1058_v39  ;;  %v1260_v13 = vmul.f32 %v1249_v42, %v5116_v48  ;;  %v5118_v25 = vld [vmem:[#allocation26_spill] sm:$0xff]  ;;  %v5119_v9 = vld [vmem:[#allocation27_spill] sm:$0xff] }
 0x27f   : > { %v1256_v55 = vadd.f32 %v1254_v11, %v1027_v45  ;;  %v1268_v37 = vadd.f32 %v1258_v6, %v1039_v38  ;;  %2964 = vpow2.f32 %v1449_v58  ;;  %v1261_v10 = vmul.f32 %v1253_v14, %v5117_v43  ;;  %v5122_v58 = vld [vmem:[#allocation32_spill] sm:$0xff]  ;;  %v5123_v43 = vld [vmem:[#allocation33_spill] sm:$0xff] }
 0x280   : > { %v4472_v27 = vadd.f32 %v1255_v31, %v1028_v61  ;;  %v4474_v44 = vadd.f32 %v1259_v12, %v1040_v30  ;;  %v1270_v36 = vadd.f32 %v1260_v13, %v4396_v18  ;;  %v1262_v39 = vmul.f32 %v1249_v42, %v5118_v25  ;;  %v5121_v61 = vld [vmem:[#allocation31_spill] sm:$0xff] }
 0x281   : > { %v1263_v19 = vmul.f32 %v1253_v14, %v5119_v9  ;;  %v1893_v45 = vadd.f32 1.0, %v2959_v32  ;;  %v1451_v38 = vsub.f32 1.0, %v2961_v57  ;;  %v4480_v11 = vadd.f32 %v1261_v10, %v1042_v1  ;;  %v5124_v10 = vld [vmem:[#allocation63_spill] sm:$0xff] }
 0x282   : > { %v1264_v6 = vmul.f32 %v1249_v42, %v5120_v50  ;;  %v1265_v31 = vmul.f32 %v1253_v14, %v5121_v61  ;;  %v1272_v30 = vadd.f32 %v1262_v39, %v1043_v46  ;;  %v1266_v48 = vmul.f32 %v1249_v42, %v5122_v58  ;;  %v5125_v42 = vld [vmem:[#allocation16_spill] sm:$0xff] }
 0x283   : > { %v4484_v12 = vadd.f32 %v1263_v19, %v1044_v34  ;;  %v1267_v54 = vmul.f32 %v1253_v14, %v5123_v43  ;;  %v1453_v18 = vmul.f32 %v1451_v38, %v4438_v5  ;;  %v1455_v13 = vsub.f32 1.0, %v1451_v38 }
 0x284   : > { %v1274_v25 = vadd.f32 %v1264_v6, %v1045_v4  ;;  %v4489_v9 = vadd.f32 %v1265_v31, %v1046_v28  ;;  %v1276_v32 = vadd.f32 %v1266_v48, %v1047_v8  ;;  %v1423_v57 = vadd.f32 %v5124_v10, %v3963_v62  ;;  %v5128_v6 = vld [vmem:[#allocation39_spill] sm:$0xff] }
 0x285   : > { %v4491_v1 = vadd.f32 %v1267_v54, %v1048_v47  ;;  %2966 = vrcp.f32 %v1893_v45  ;;  %v2963_v46 = vpop.eup %2962  ;;  %v1457_v34 = vadd.f32 1e-10, %v1455_v13  ;;  %v1478_v39 = vrot.slane %v1453_v18, %v3835_v17 }
 0x286   : > { %v5126_v19 = vrot.slane %v5125_v42, 3  ;;  %v2501_v50 = vrot.slane %v4303_v22, 6  ;;  %v1686_v38 = vadd.f32 1e-10, %v1684_v26  ;;  %v5127_v28 = vsub.f32 1.0, %v4357_v2 }
 0x287   : > { %v2134_v8 = vmul.f32 1.442695, %v2132_v60  ;;  %v1232_v54 = vadd.f32 %v1224_v29, %v4366_v20  ;;  %v1483_v47 = vmul.f32 %v4310_v21, %v1478_v39  ;;  %v1487_v45 = vmul.f32 %v1478_v39, %v5128_v6 }
 0x288   : > { %v1513_v14 = vmul.f32 %v5126_v19, %v1453_v18  ;;  %v1685_v4 = vsub.f32 1.0, %v5127_v28  ;;  %v1489_v31 = vmul.f32 %v1478_v39, %v4274_v15  ;;  %v1491_v58 = vmul.f32 %v1478_v39, %v4320_v3 }
 0x289   : > { %v1493_v48 = vmul.f32 %v1478_v39, %v4340_v16  ;;  %v1495_v43 = vmul.f32 %v1478_v39, %v4353_v59  ;;  %v1459_v26 = vmul.f32 %v1457_v34, %v4438_v5  ;;  %v2965_v13 = vpop.eup %2964  ;;  %v1485_v10 = vadd.f32 %v1483_v47, %v1256_v55 }
 0x28a   : > { %v1515_v61 = vadd.f32 %v1513_v14, %v1286_v24  ;;  %v1497_v60 = vadd.f32 %v1487_v45, %v1268_v37  ;;  %v1499_v42 = vadd.f32 %v1489_v31, %v1270_v36  ;;  %v1894_v20 = vadd.f32 1.0, %v2963_v46  ;;  %v5134_v45 = vld [vmem:[#allocation42_spill] sm:$0xff] }
 0x28b   : > { %v1452_v29 = vsub.f32 1.0, %v2965_v13  ;;  %v4509_v21 = vadd.f32 %v1491_v58, %v1272_v30  ;;  %v4511_v19 = vadd.f32 %v1493_v48, %v1274_v25  ;;  %v4513_v24 = vadd.f32 %v1495_v43, %v1276_v32  ;;  %v5130_v25 = vld [vmem:[#allocation13_spill] sm:$0xff] }
 0x28c   : > { %v1687_v15 = vadd.f32 1e-10, %v1685_v4  ;;  %v5129_v3 = vsub.f32 1.0, %v4348_v35  ;;  %v4517_v14 = vmul.f32 %v1686_v38, %v1459_v26  ;;  %v1461_v59 = vadd.f32 %v1453_v18, %v1232_v54  ;;  %v5132_v18 = vld [vmem:[#allocation14_spill] sm:$0xff]  ;;  %v5135_v48 = vld [vmem:[#allocation77_spill] sm:$0xff] }
 0x28d   : > { %2968 = vpow2.f32 %v2134_v8  ;;  %v1454_v5 = vmul.f32 %v1452_v29, %v4448_v7  ;;  %v1456_v37 = vsub.f32 1.0, %v1452_v29  ;;  %v2136_v55 = vmul.f32 1.442695, %v4464_v53 }
 0x28e   : > { %v1682_v16 = vmul.f32 %v5129_v3, %v1459_v26  ;;  %v5131_v32 = vrot.slane %v5130_v25, 3  ;;  %2970 = vrcp.f32 %v1894_v20  ;;  %v5133_v38 = vrot.slane %v5132_v18, 3  ;;  %v5136_v26 = vld [vmem:[#allocation85_spill] sm:$0xff]  ;;  %v5139_v25 = vld [vmem:[#allocation22_spill] sm:$0xff] }
 0x28f   : > { %v2967_v35 = vpop.eup %2966  ;;  %v1458_v34 = vadd.f32 1e-10, %v1456_v37  ;;  %v1482_v39 = vrot.slane %v1454_v5, %v3835_v17  ;;  %v2527_v4 = vsel %vm2525_vm13, %v4259_v63, %v2501_v50  ;;  %v5137_v50 = vld [vmem:[#allocation86_spill] sm:$0xff]  ;;  %2972 = vpow2.f32 %v2136_v55 }
 0x290   : > { %v4522_v36 = vrot.slane %v1682_v16, %v3835_v17  ;;  %v4524_v30 = vadd.f32 %v1682_v16, %v1461_v59  ;;  %v1742_v46 = vmul.f32 %v5131_v32, %v1682_v16  ;;  %v1514_v28 = vmul.f32 %v5133_v38, %v1454_v5 }
 0x291   : > { %v1899_v54 = vmul.f32 %v2967_v35, %v3791_v0  ;;  %v1484_v6 = vmul.f32 %v4404_v49, %v1482_v39  ;;  %v1488_v31 = vmul.f32 %v1482_v39, %v5134_v45  ;;  %v1490_v43 = vmul.f32 %v1482_v39, %v5135_v48  ;;  %v5150_v48 = vld [vmem:[#allocation43_spill] sm:$0xff] }
 0x292   : > { %v1712_v53 = vmul.f32 %v4235_v56, %v4522_v36  ;;  %v1716_v8 = vmul.f32 %v4522_v36, %v3893_v23  ;;  %v4538_v47 = vadd.f32 %v1742_v46, %v1515_v61  ;;  %v1516_v58 = vadd.f32 %v1514_v28, %v4468_v41 }
 0x293   : > { %v1492_v63 = vmul.f32 %v1482_v39, %v5136_v26  ;;  %v1494_v13 = vmul.f32 %v1482_v39, %v5137_v50  ;;  %v1496_v56 = vmul.f32 %v1482_v39, %v1423_v57  ;;  %v1486_v23 = vadd.f32 %v1484_v6, %v4472_v27  ;;  %v5138_v57 = vld [vmem:[#allocation93_spill] sm:$0xff]  ;;  %v5140_v27 = vld [vmem:[#allocation72_spill] sm:$0xff]  ;;  %v5147_v6 = vld [vmem:[#allocation11_spill] sm:$0xff] }
 0x294   : > { %v4546_v20 = vadd.f32 %v1712_v53, %v1485_v10  ;;  %v1498_v61 = vadd.f32 %v1488_v31, %v4474_v44  ;;  %v1500_v29 = vadd.f32 %v1490_v43, %v4480_v11  ;;  %v4551_v49 = vadd.f32 %v1716_v8, %v1497_v60  ;;  %v5141_v44 = vld [vmem:[#allocation49_spill] sm:$0xff]  ;;  %v5149_v31 = vld [vmem:[#allocation8_spill] sm:$0xff] }
 0x295   : > { %v1502_v3 = vadd.f32 %v1492_v63, %v4484_v12  ;;  %v1504_v41 = vadd.f32 %v1494_v13, %v4489_v9  ;;  %v1506_v16 = vadd.f32 %v1496_v56, %v4491_v1  ;;  %v1901_v59 = vsub.f32 0.0, %v1899_v54  ;;  %v5143_v12 = vld [vmem:[#allocation34_spill] sm:$0xff]  ;;  %v5144_v1 = vld [vmem:[#allocation35_spill] sm:$0xff]  ;;  %v5152_v13 = vld [vmem:[#allocation29_spill] sm:$0xff] }
 0x296   : > { %v1460_v37 = vmul.f32 %v1458_v34, %v4448_v7  ;;  %v1233_v10 = vadd.f32 %v4445_v33, %v5138_v57  ;;  %v4561_v32 = vadd.f32 %v5140_v27, %v5139_v25  ;;  %v5142_v11 = vrot.slane %v5141_v44, 5  ;;  %v5151_v63 = vld [vmem:[#allocation82_spill] sm:$0xff]  ;;  %v5155_v27 = vld [vmem:[#allocation47_spill] sm:$0xff] }
 0x297   : > { %v1652_v46 = vadd.f32 %v5143_v12, %v3963_v62  ;;  %v1903_v9 = vmul.f32 %v1901_v59, %v3860_v52  ;;  %v1718_v7 = vmul.f32 %v4522_v36, %v5144_v1  ;;  %v4571_v35 = vpop.eup %2968  ;;  %v5145_v33 = vsub.f32 1.0, %v4357_v2  ;;  %v5146_v52 = vld [vmem:[#allocation41_spill] sm:$0xff] }
 0x298   : > { %v2529_v60 = vsel %vm329_vm0, %v2527_v4, %v5142_v11  ;;  %v4575_v39 = vmul.f32 %v1687_v15, %v1460_v37  ;;  %v1462_v18 = vadd.f32 %v1454_v5, %v1233_v10  ;;  %v2703_v38 = vmul.f32 -1.442695, %v4561_v32  ;;  %v2971_v28 = vpop.eup %2970  ;;  %v5154_v10 = vld [vmem:[#allocation37_spill] sm:$0xff] }
 0x299   : > { %v1683_v34 = vmul.f32 %v5145_v33, %v1460_v37  ;;  %v1905_v4 = vmul.f32 1.442695, %v1903_v9  ;;  %v2513_v55 = vrot.slane %v4561_v32, 4  ;;  %v4579_v53 = vadd.f32 %v1718_v7, %v1499_v42  ;;  %v5156_v9 = vld [vmem:[#allocation51_spill] sm:$0xff] }
 0x29a   : > { %v1720_v8 = vmul.f32 %v4522_v36, %v5146_v52  ;;  %v5148_v2 = vrot.slane %v5147_v6, 3  ;;  %v1900_v15 = vmul.f32 %v2971_v28, %v3791_v0  ;;  %v4591_v43 = vadd.f32 %v5150_v48, %v5149_v31  ;;  %v5153_v0 = vld [vmem:[#allocation94_spill] sm:$0xff]  ;;  %v5160_v52 = vld [vmem:[#allocation48_spill] sm:$0xff]  ;;  %v5161_v6 = vld [vmem:[#allocation45_spill] sm:$0xff] }
 0x29b   : > { %v1711_v54 = vrot.slane %v1683_v34, %v3835_v17  ;;  %v4587_v5 = vadd.f32 %v1683_v34, %v1462_v18  ;;  %2974 = vpow2.f32 %v1905_v4  ;;  %v2531_v42 = vsel %vm2425_vm14, %v2529_v60, %v2513_v55  ;;  %v5158_v18 = vld [vmem:[#allocation54_spill] sm:$0xff]  ;;  %v4624_v55 = vpop.eup %2972 }
 0x29c   : > { %v1743_v45 = vmul.f32 %v5148_v2, %v1683_v34  ;;  %v4595_v26 = vadd.f32 %v1720_v8, %v4509_v21  ;;  %v1902_v37 = vsub.f32 0.0, %v1900_v15  ;;  %2533 = vst [vmem:[%s4331_s27 + $0x58] sm:$0xff] %v2531_v42  ;;  %v1927_v57 = vadd.f32 1.0, %v5153_v0  ;;  %v5166_v42 = vld [vmem:[#allocation57_spill] sm:$0xff] }
 0x29d   : > { %v1713_v50 = vmul.f32 %v5151_v63, %v1711_v54  ;;  %v1717_v56 = vmul.f32 %v1711_v54, %v5152_v13  ;;  %2976 = vpow2.f32 %v2703_v38  ;;  %v1719_v25 = vmul.f32 %v1711_v54, %v5154_v10  ;;  %v5167_v63 = vld [vmem:[#allocation58_spill] sm:$0xff] }
 0x29e   : > { %v4599_v59 = vadd.f32 %v1743_v45, %v1516_v58  ;;  %v1721_v11 = vmul.f32 %v1711_v54, %v5155_v27  ;;  %v1904_v21 = vmul.f32 %v1902_v37, %v3858_v51  ;;  %v1722_v1 = vmul.f32 %v4522_v36, %v5156_v9  ;;  %v5157_v58 = vld [vmem:[#allocation90_spill] sm:$0xff]  ;;  %v5174_v9 = vld [vmem:[#allocation75_spill] sm:$0xff] }
 0x29f   : > { %v4605_v12 = vadd.f32 %v1713_v50, %v1486_v23  ;;  %v4607_v60 = vadd.f32 %v1717_v56, %v1498_v61  ;;  %v2151_v7 = vadd.f32 1.0, %v5157_v58  ;;  %v4613_v33 = vadd.f32 %v1719_v25, %v1500_v29  ;;  %v5159_v61 = vld [vmem:[#allocation56_spill] sm:$0xff]  ;;  %v5163_v45 = vld [vmem:[#allocation50_spill] sm:$0xff] }
 0x2a0   : > { %v4615_v34 = vadd.f32 %v1721_v11, %v1502_v3  ;;  %v1723_v38 = vmul.f32 %v1711_v54, %v5158_v18  ;;  %v2343_v28 = vadd.f32 1.0, %v4416_v40  ;;  %v1907_v4 = vmul.f32 1.442695, %v1904_v21  ;;  %v5162_v40 = vld [vmem:[#allocation12_spill] sm:$0xff]  ;;  %v5168_v13 = vld [vmem:[#allocation62_spill] sm:$0xff] }
 0x2a1   : > { %v4620_v23 = vadd.f32 %v1722_v1, %v4511_v19  ;;  %v1724_v51 = vmul.f32 %v4522_v36, %v5159_v61  ;;  %2978 = vrcp.f32 %v1927_v57  ;;  %v1928_v8 = vadd.f32 1.0, %v5160_v52  ;;  %v5164_v36 = vld [vmem:[#allocation52_spill] sm:$0xff]  ;;  %v5173_v11 = vld [vmem:[#allocation74_spill] sm:$0xff]  ;;  %v5178_v61 = vld [vmem:[#allocation83_spill] sm:$0xff] }
 0x2a2   : > { %v4627_v29 = vadd.f32 %v1723_v38, %v1504_v41  ;;  %v1725_v3 = vmul.f32 %v1711_v54, %v1652_v46  ;;  %v4631_v2 = vadd.f32 %v5161_v6, %v5149_v31  ;;  %v4635_v15 = vadd.f32 %v5163_v45, %v5162_v40  ;;  %v5165_v41 = vld [vmem:[#allocation28_spill] sm:$0xff] }
 0x2a3   : > { %2980 = vpow2.f32 %v1907_v4  ;;  %v4638_v19 = vadd.f32 %v1724_v51, %v4513_v24  ;;  %v4642_v48 = vadd.f32 %v5164_v36, %v5162_v40  ;;  %v4646_v46 = vadd.f32 %v5166_v42, %v5165_v41  ;;  %v5170_v24 = vld [vmem:[#allocation68_spill] sm:$0xff]  ;;  %v5180_v36 = vld [vmem:[#allocation87_spill] sm:$0xff] }
 0x2a4   : > { %2982 = vrcp.f32 %v2151_v7  ;;  %v4648_v54 = vadd.f32 %v1725_v3, %v1506_v16  ;;  %v4652_v50 = vadd.f32 %v5167_v63, %v5165_v41  ;;  %v4656_v56 = vadd.f32 %v5168_v13, %v3963_v62  ;;  %v5172_v16 = vld [vmem:[#allocation73_spill] sm:$0xff]  ;;  %v5175_v58 = vld [vmem:[#allocation76_spill] sm:$0xff] }
 0x2a5   : > { %v4660_v37 = vadd.f32 %v5170_v24, %v3963_v62  ;;  %2984 = vrcp.f32 %v2343_v28  ;;  %v2975_v0 = vpop.eup %2974  ;;  %v2138_v57 = vsub.f32 1.0, %v4571_v35  ;;  %v1861_v25 = vadd.f32 %v5172_v16, %v5149_v31  ;;  %v5176_v35 = vld [vmem:[#allocation80_spill] sm:$0xff]  ;;  %v5177_v28 = vld [vmem:[#allocation81_spill] sm:$0xff]  ;;  %v5182_v24 = vld [vmem:[#allocation91_spill] sm:$0xff] }
 0x2a6   : > { %5169 = vst [vmem:[#allocation65_spill] sm:$0xff] %v4656_v56  ;;  %2986 = vrcp.f32 %v1928_v8  ;;  %v1909_v27 = vsub.f32 1.0, %v2975_v0  ;;  %v4668_v21 = vadd.f32 %v5173_v11, %v5149_v31  ;;  %v1867_v1 = vadd.f32 %v5174_v9, %v5162_v40  ;;  %v5179_v52 = vld [vmem:[#allocation84_spill] sm:$0xff] }
 0x2a7   : > { %5171 = vst [vmem:[#allocation66_spill] sm:$0xff] %v4660_v37  ;;  %v4674_v7 = vadd.f32 %v5175_v58, %v5162_v40  ;;  %v2977_v18 = vpop.eup %2976  ;;  %v1873_v38 = vadd.f32 %v5176_v35, %v5165_v41  ;;  %v4680_v4 = vadd.f32 %v5177_v28, %v5165_v41  ;;  %v1879_v51 = vadd.f32 %v5178_v61, %v3963_v62  ;;  %v5181_v63 = vld [vmem:[#allocation88_spill] sm:$0xff] }
 0x2a8   : > { %v4686_v8 = vadd.f32 %v5179_v52, %v3963_v62  ;;  %v1911_v3 = vmul.f32 %v1909_v27, %v4517_v14  ;;  %v1913_v6 = vsub.f32 1.0, %v1909_v27  ;;  %v2344_v45 = vadd.f32 1.0, %v2977_v18  ;;  %v5183_v16 = vld [vmem:[#allocation92_spill] sm:$0xff] }
 0x2a9   : > { %v4691_v42 = vadd.f32 %v5180_v36, %v5149_v31  ;;  %v4695_v13 = vadd.f32 %v5181_v63, %v5149_v31  ;;  %v4699_v0 = vadd.f32 %v5182_v24, %v5162_v40  ;;  %v4703_v11 = vadd.f32 %v5183_v16, %v5162_v40  ;;  %v5184_v9 = vld [vmem:[#allocation36_spill] sm:$0xff]  ;;  %v5187_v36 = vld [vmem:[#allocation46_spill] sm:$0xff]  ;;  %v5189_v40 = vld [vmem:[#allocation53_spill] sm:$0xff] }
 0x2aa   : > { %v4707_v27 = vadd.f32 %v5184_v9, %v5165_v41  ;;  %v1936_v58 = vrot.slane %v1911_v3, %v3835_v17  ;;  %v5185_v18 = vld [vmem:[#allocation20_spill] sm:$0xff]  ;;  %v1915_v61 = vadd.f32 1e-10, %v1913_v6  ;;  %v1919_v31 = vadd.f32 %v1911_v3, %v4524_v30 }
 0x2ab   : > { %v5186_v35 = vrot.slane %v5185_v18, 3  ;;  %v2979_v52 = vpop.eup %2978  ;;  %2988 = vrcp.f32 %v2344_v45  ;;  %v4715_v63 = vadd.f32 %v5187_v36, %v5165_v41  ;;  %v4719_v24 = vadd.f32 %v5189_v40, %v3963_v62  ;;  %v5191_v16 = vld [vmem:[#allocation64_spill] sm:$0xff] }
 0x2ac   : > { %v4723_v9 = vadd.f32 %v5191_v16, %v3963_v62  ;;  %v1941_v18 = vmul.f32 %v2979_v52, %v1936_v58  ;;  %v1917_v30 = vmul.f32 %v1915_v61, %v4517_v14  ;;  %v1947_v41 = vmul.f32 %v1936_v58, %v1861_v25 }
 0x2ad   : > { %v1971_v28 = vmul.f32 %v5186_v35, %v1911_v3  ;;  %5188 = vst [vmem:[#allocation55_spill] sm:$0xff] %v4715_v63  ;;  %5190 = vst [vmem:[#allocation60_spill] sm:$0xff] %v4719_v24  ;;  %v2981_v10 = vpop.eup %2980  ;;  %v5193_v35 = vld [vmem:[#allocation78_spill] sm:$0xff]  ;;  %v1949_v36 = vmul.f32 %v1936_v58, %v1867_v1  ;;  %v1951_v56 = vmul.f32 %v1936_v58, %v1873_v38  ;;  %v5194_v1 = vld [vmem:[#allocation17_spill] sm:$0xff] }
 0x2ae   : > { %5192 = vst [vmem:[#allocation67_spill] sm:$0xff] %v4723_v9  ;;  %v1945_v6 = vmul.f32 %v1936_v58, %v5193_v35  ;;  %v2983_v45 = vpop.eup %2982  ;;  %v1910_v37 = vsub.f32 1.0, %v2981_v10  ;;  %v1943_v40 = vadd.f32 %v1941_v18, %v4546_v20  ;;  %v2140_v62 = vmul.f32 %v2138_v57, %v1917_v30 }
 0x2af   : > { %v1973_v3 = vadd.f32 %v1971_v28, %v4538_v47  ;;  %v2985_v63 = vpop.eup %2984  ;;  %v1953_v16 = vmul.f32 %v1936_v58, %v1879_v51  ;;  %v4732_v14 = vadd.f32 %v1947_v41, %v4579_v53  ;;  %v4735_v47 = vadd.f32 %v1949_v36, %v4595_v26  ;;  %v5198_v26 = vld [vmem:[#allocation89_spill] sm:$0xff] }
 0x2b0   : > { %v1955_v24 = vadd.f32 %v1945_v6, %v4551_v49  ;;  %v2987_v9 = vpop.eup %2986  ;;  %v1912_v52 = vmul.f32 %v1910_v37, %v4575_v39  ;;  %v1914_v35 = vsub.f32 1.0, %v1910_v37  ;;  %v2142_v10 = vadd.f32 %v2140_v62, %v1919_v31  ;;  %v5196_v37 = vld [vmem:[#allocation18_spill] sm:$0xff]  ;;  %v5199_v31 = vld [vmem:[#allocation40_spill] sm:$0xff] }
 0x2b1   : > { %v4738_v25 = vrot.slane %v2140_v62, %v3835_v17  ;;  %v5195_v20 = vrot.slane %v5194_v1, 3  ;;  %v4743_v49 = vadd.f32 %v1951_v56, %v4620_v23  ;;  %v5197_v58 = vrot.slane %v5196_v37, 3 }
 0x2b2   : > { %v1916_v57 = vadd.f32 1e-10, %v1914_v35  ;;  %v1940_v51 = vrot.slane %v1912_v52, %v3835_v17  ;;  %v1920_v28 = vadd.f32 %v1912_v52, %v4587_v5  ;;  %v2335_v30 = vsub.f32 1.0, %v2142_v10  ;;  %v5200_v5 = vld [vmem:[#allocation21_spill] sm:$0xff] }
 0x2b3   : > { %v2194_v38 = vmul.f32 %v5195_v20, %v2140_v62  ;;  %v1972_v53 = vmul.f32 %v5197_v58, %v1912_v52  ;;  %v2164_v61 = vmul.f32 %v5198_v26, %v4738_v25  ;;  %v2168_v18 = vmul.f32 %v4738_v25, %v5199_v31 }
 0x2b4   : > { %v1942_v41 = vmul.f32 %v2987_v9, %v1940_v51  ;;  %v1946_v23 = vmul.f32 %v1940_v51, %v4303_v22  ;;  %v1918_v36 = vmul.f32 %v1916_v57, %v4575_v39  ;;  %v4757_v1 = vrot.slane %v2335_v30, %v3835_v17 }
 0x2b5   : > { %v2196_v6 = vadd.f32 %v2194_v38, %v1973_v3  ;;  %v1974_v56 = vadd.f32 %v1972_v53, %v4599_v59  ;;  %v2166_v62 = vadd.f32 %v2164_v61, %v1943_v40  ;;  %v2178_v35 = vadd.f32 %v2168_v18, %v1955_v24  ;;  %v2989_v37 = vpop.eup %2988  ;;  %v5203_v40 = vld [vmem:[#allocation79_spill] sm:$0xff] }
 0x2b6   : > { %v5201_v52 = vrot.slane %v5200_v5, 3  ;;  %v1944_v58 = vadd.f32 %v1942_v41, %v4605_v12  ;;  %v1956_v3 = vadd.f32 %v1946_v23, %v4607_v60  ;;  %v5202_v9 = vsub.f32 1.0, %v4624_v55  ;;  %v5204_v12 = vld [vmem:[#allocation15_spill] sm:$0xff] }
 0x2b7   : > { %v1948_v59 = vmul.f32 %v1940_v51, %v4668_v21  ;;  %v2357_v39 = vmul.f32 %v2985_v63, %v4757_v1  ;;  %v2361_v24 = vmul.f32 %v4757_v1, %v5203_v40  ;;  %v1950_v38 = vmul.f32 %v1940_v51, %v4674_v7  ;;  %v2992_v23 = vld [vmem:[%s3165_s19] sm:$0xff] }
 0x2b8   : > { %v2387_v20 = vmul.f32 %v5201_v52, %v2335_v30  ;;  %v2141_v22 = vmul.f32 %v5202_v9, %v1918_v36  ;;  %v5205_v60 = vrot.slane %v5204_v12, 3  ;;  %v1952_v52 = vmul.f32 %v1940_v51, %v4680_v4 }
 0x2b9   : > { %v1958_v55 = vadd.f32 %v1948_v59, %v4613_v33  ;;  %v2359_v61 = vadd.f32 %v2357_v39, %v2166_v62  ;;  %v2371_v21 = vadd.f32 %v2361_v24, %v2178_v35  ;;  %v1960_v31 = vadd.f32 %v1950_v38, %v4615_v34 }
 0x2ba   : > { %v2389_v10 = vadd.f32 %v2387_v20, %v2196_v6  ;;  %v2143_v57 = vadd.f32 %v2141_v22, %v1920_v28  ;;  %v4771_v53 = vrot.slane %v2141_v22, %v3835_v17  ;;  %v2195_v26 = vmul.f32 %v5205_v60, %v2141_v22  ;;  %v5206_v20 = vld [vmem:[#allocation19_spill] sm:$0xff] }
 0x2bb   : > { %v2391_v41 = vmul.f32 2.0, %v2359_v61  ;;  %v2440_v5 = vrot.slane %v2371_v21, 4  ;;  %v5207_v34 = vrot.slane %v5206_v20, 3  ;;  %v2170_v24 = vmul.f32 %v4738_v25, %v4591_v43 }
 0x2bc   : > { %v2398_v63 = vrot.slane %v2389_v10, %v3835_v17  ;;  %v2165_v18 = vmul.f32 %v2983_v45, %v4771_v53  ;;  %v2169_v7 = vmul.f32 %v4771_v53, %v5141_v44  ;;  %v2197_v28 = vadd.f32 %v2195_v26, %v1974_v56 }
 0x2bd   : > { %v2336_v6 = vsub.f32 1.0, %v2143_v57  ;;  %v2393_v45 = vadd.f32 -1.0, %v2391_v41  ;;  %v1962_v44 = vadd.f32 %v1952_v52, %v4627_v29  ;;  %v1963_v56 = vadd.f32 %v1953_v16, %v4638_v19 }
 0x2be   : > { %v2403_v36 = vmul.f32 %v2992_v23, %v2398_v63  ;;  %v2167_v33 = vadd.f32 %v2165_v18, %v1944_v58  ;;  %v2179_v62 = vadd.f32 %v2169_v7, %v1956_v3  ;;  %v1954_v58 = vmul.f32 %v1940_v51, %v4686_v8 }
 0x2bf   : > { %v4784_v35 = vrot.slane %v2336_v6, %v3835_v17  ;;  %v2388_v9 = vmul.f32 %v5207_v34, %v2336_v6  ;;  %v2420_v40 = vsel %vm2419_vm11, %v2393_v45, %v2335_v30  ;;  %v2363_v29 = vmul.f32 %v4757_v1, %v4691_v42  ;;  %v2993_v30 = vld [vmem:[%s3165_s19 + $0x8] sm:$0xff]  ;;  %s2548_s19 = sshll.u32 %s4331_s27, 4  ;;  %s4854_s19 = int_to_ptr.vmem [resolvable:$true] %s2548_s19 }
 0x2c0   : > { %v2407_v22 = vrot.slane %v2403_v36, 3  ;;  %v2180_v38 = vadd.f32 %v2170_v24, %v4732_v14  ;;  %v2171_v8 = vmul.f32 %v4771_v53, %v4631_v2  ;;  %v2172_v12 = vmul.f32 %v4738_v25, %v4635_v15  ;;  %s2994_s12 = scalar_lea.vmem %s4854_s19, 1536  ;;  %p3001_p2 = scmp.lt.s32.totalorder %s4854_s19, %s2999_s14 }
 0x2c1   : > { %v2358_v59 = vmul.f32 %v2989_v37, %v4784_v35  ;;  %v2362_v39 = vmul.f32 %v4784_v35, %v4561_v32  ;;  %v2390_v4 = vadd.f32 %v2388_v9, %v2197_v28  ;;  %v1964_v37 = vadd.f32 %v1954_v58, %v4648_v54  ;;  %v5211_v58 = vld [vmem:[#allocation66_spill] sm:$0xff]  ;;  %p2995_p13 = scmp.ne.s32.totalorder %s4854_s19, %s2994_s12  ;;  %p3002_p3 = scmp.lt.s32.totalorder %s3000_s15, %s2994_s12 }
 0x2c2   : > { %v2411_v3 = vadd.f32 %v2992_v23, %v2407_v22  ;;  %v2364_v51 = vmul.f32 %v4784_v35, %v4695_v13  ;;  %v2373_v54 = vadd.f32 %v2363_v29, %v2180_v38  ;;  %v2181_v60 = vadd.f32 %v2171_v8, %v1958_v55 }
 0x2c3   : > { %v2360_v10 = vadd.f32 %v2358_v59, %v2167_v33  ;;  %v2372_v19 = vadd.f32 %v2362_v39, %v2179_v62  ;;  %v2402_v16 = vrot.slane %v2390_v4, %v3835_v17  ;;  %v2365_v14 = vmul.f32 %v4757_v1, %v4699_v0  ;;  %v5208_v62 = vld [vmem:[#allocation55_spill] sm:$0xff]  ;;  %v5210_v59 = vld [vmem:[#allocation60_spill] sm:$0xff]  ;;  %p2996_p0 = pnand %p2995_p13, %p3141_p6  ;;  %p3003_p4 = por %p3002_p3, %p3001_p2 }
 0x2c4   : > { %v2415_v32 = vrot.slane %v2411_v3, 4  ;;  %v2182_v13 = vadd.f32 %v2172_v12, %v4735_v47  ;;  %v2441_v21 = vrot.slane %v2373_v54, 4  ;;  %v2374_v63 = vadd.f32 %v2364_v51, %v2181_v60 }
 0x2c5   : > { %v2392_v43 = vmul.f32 2.0, %v2360_v10  ;;  %v2404_v57 = vmul.f32 %v2993_v30, %v2402_v16  ;;  %v2443_v42 = vrot.slane %v2372_v19, 4  ;;  %v2173_v15 = vmul.f32 %v4771_v53, %v4642_v48  ;;  %p2997_p1 = pneg %p2996_p0 }
 0x2c6   : > { %v2423_v17 = vsel %vm2422_vm12, %v2420_v40, %v2415_v32  ;;  %v2366_v18 = vmul.f32 %v4784_v35, %v4703_v11  ;;  %v2375_v0 = vadd.f32 %v2365_v14, %v2182_v13  ;;  %v2174_v28 = vmul.f32 %v4738_v25, %v4646_v46  ;;  %v5212_v40 = vld [vmem:[#allocation67_spill] sm:$0xff] }
 0x2c7   : > { %v2426_v26 = vsel %vm2425_vm14, %v2423_v17, 0.0  ;;  %v2394_v2 = vadd.f32 -1.0, %v2392_v43  ;;  %v2408_v61 = vrot.slane %v2404_v57, 3  ;;  %v2442_v41 = vsel %vm2422_vm12, %v2440_v5, %v2441_v21  ;;  %p3004_p5 = pnand %p3003_p4, %p2997_p1 }
 0x2c8   : > { %2428 = vst [vmem:[%s4331_s27] sm:$0xff] %v2426_v26  ;;  %v2444_v47 = vrot.slane %v2374_v63, 4  ;;  %v2183_v23 = vadd.f32 %v2173_v15, %v1960_v31  ;;  %v2367_v36 = vmul.f32 %v4757_v1, %v4707_v27  ;;  %2466 = vst [vmem:[%s4331_s27 + $0x10] sm:$0xff] %v2442_v41  ;;  %v2446_v52 = vrot.slane %v2375_v0, 4  ;;  %v5209_v31 = vld [vmem:[#allocation65_spill] sm:$0xff] }
 0x2c9   : > { %v2412_v55 = vadd.f32 %v2993_v30, %v2408_v61  ;;  %v2421_v7 = vsel %vm2419_vm11, %v2394_v2, %v2336_v6  ;;  %v2184_v11 = vadd.f32 %v2174_v28, %v4743_v49  ;;  %v2175_v6 = vmul.f32 %v4771_v53, %v4652_v50 }
 0x2ca   : > { %v2445_v33 = vsel %vm2422_vm12, %v2443_v42, %v2444_v47  ;;  %v2376_v46 = vadd.f32 %v2366_v18, %v2183_v23  ;;  %v2368_v5 = vmul.f32 %v4784_v35, %v5208_v62  ;;  %v2176_v20 = vmul.f32 %v4738_v25, %v5209_v31 }
 0x2cb   : > { %v2416_v48 = vrot.slane %v2412_v55, 4  ;;  %2467 = vst [vmem:[%s4331_s27 + $0x18] sm:$0xff] %v2445_v33  ;;  %v2447_v34 = vsel %vm2422_vm12, %v2441_v21, %v2446_v52  ;;  %v2377_v49 = vadd.f32 %v2367_v36, %v2184_v11  ;;  %v2185_v9 = vadd.f32 %v2175_v6, %v1962_v44 }
 0x2cc   : > { %2468 = vst [vmem:[%s4331_s27 + $0x20] sm:$0xff] %v2447_v34  ;;  %v2448_v45 = vrot.slane %v2376_v46, 4  ;;  %v2186_v22 = vadd.f32 %v2176_v20, %v1963_v56  ;;  %v2369_v39 = vmul.f32 %v4757_v1, %v5210_v59  ;;  %v2177_v3 = vmul.f32 %v4771_v53, %v5211_v58 }
 0x2cd   : > { %v2424_v27 = vsel %vm2422_vm12, %v2421_v7, %v2416_v48  ;;  %v2450_v25 = vrot.slane %v2377_v49, 4  ;;  %v2378_v4 = vadd.f32 %v2368_v5, %v2185_v9  ;;  %v2370_v44 = vmul.f32 %v4784_v35, %v5212_v40 }
 0x2ce   : > { %v2427_v50 = vsel %vm2425_vm14, %v2424_v27, 0.0  ;;  %v2449_v24 = vsel %vm2422_vm12, %v2444_v47, %v2448_v45  ;;  %v2379_v29 = vadd.f32 %v2369_v39, %v2186_v22  ;;  %v2187_v10 = vadd.f32 %v2177_v3, %v1964_v37 }
 0x2cf   : > { %2429 = vst [vmem:[%s4331_s27 + $0x8] sm:$0xff] %v2427_v50  ;;  %2469 = vst [vmem:[%s4331_s27 + $0x28] sm:$0xff] %v2449_v24  ;;  %v2451_v56 = vsel %vm2422_vm12, %v2446_v52, %v2450_v25  ;;  %v2452_v1 = vrot.slane %v2378_v4, 4 }
 0x2d0   : > { %2470 = vst [vmem:[%s4331_s27 + $0x30] sm:$0xff] %v2451_v56  ;;  %v2454_v19 = vrot.slane %v2379_v29, 4  ;;  %v2380_v35 = vadd.f32 %v2370_v44, %v2187_v10 }
 0x2d1   : > { %v2453_v53 = vsel %vm2422_vm12, %v2448_v45, %v2452_v1 }
 0x2d2   : > { %2471 = vst [vmem:[%s4331_s27 + $0x38] sm:$0xff] %v2453_v53  ;;  %v2455_v16 = vsel %vm2422_vm12, %v2450_v25, %v2454_v19  ;;  %v2456_v32 = vrot.slane %v2380_v35, 4 }
 0x2d3   : > { %2472 = vst [vmem:[%s4331_s27 + $0x40] sm:$0xff] %v2455_v16 }
 0x2d4   : > { %v2457_v37 = vsel %vm2422_vm12, %v2452_v1, %v2456_v32 }
 0x2d5   : > { %2473 = vst [vmem:[%s4331_s27 + $0x48] sm:$0xff] %v2457_v37 }
 0x2d6   : > { %3007 = shalt.err (!%p3004_p5)
}
 0x2d7   : > { %s3008_s16 = scalar_lea.hbm %s4862_s11, 1536  ;;  %s3012_s21 = scalar_lea.hbm %s4914_s6, 3072 }
 0x2d8   : > { %p3009_p7 = scmp.ne.s32.totalorder %s4862_s11, %s3008_s16  ;;  %p3013_p12 = scmp.lt.u32.totalorder %s4862_s11, %s4914_s6 }
 0x2d9   : > { %p3014_p13 = scmp.lt.u32.totalorder %s3012_s21, %s3008_s16  ;;  %p3016_p1 = scmp.lt.u32.totalorder %s3008_s16, %s4862_s11 }
 0x2da   : > { %p3010_p10 = pnand %p3009_p7, %p3141_p6 }
 0x2db   : > { %p3015_p0 = por %p3014_p13, %p3013_p12 }
 0x2dc   : > { %p3011_p11 = pneg %p3010_p10 }
 0x2dd   : > { %p3017_p2 = por %p3016_p1, %p3015_p0 }
 0x2df   : > { %p3018_p3 = pnand %p3017_p2, %p3011_p11 }
 0x2e1   : > { %3021 = shalt.err (!%p3018_p3)
}
 0x2e2   : > { %s3062_s29 = smov 256   ;;  %s3063_s30 = smov 512  }
 0x2e3   : > { %s3064_s10 = smov 16  }
 0x2e4   : > { %2785 = dma.vmem_to_hbm [thread:$0]  (%p3141_p6), %s4854_s19, 1536, %s4862_s11, %s2535_s5, %s3062_s29, %s3063_s30, %s3064_s10  }
 0x2e5 PF: > { %s2563_s12 = sand.u32 1, %s3044_s23   ;;  %p2788_p4 = pnand %p2618_p9, %p3145_p8 }
 0x2e6   : > { %s2564_s13 = scalar_lea.sflag [#allocation5], %s2563_s12 }
 0x2e7   : > { %3039 = dma.done.wait (!%p2788_p4), %s2564_s13, 1536  }
 0x2e8   : > { %3041 = vsyncadd (!%p2788_p4), %s2564_s13, 4294965760  ;;  %p18_p5 = scmp.ge.s32.totalorder %s3126_s28, 4   ;;  %s5213_s23 = smov %s3048_s24 }
 0x2e9   : > { %s5214_s24 = smov %s3052_s25  ;;  %s5215_s25 = smov %s3139_s7 }
 0x2ea   : > { %s5216_s26 = smov %s3126_s28  ;;  %20 = sbr.rel (!%p18_p5) target bundleno = 6 (0x6), region = 107 }
 0x2f1   :  { %2569 = vsyncpa [#allocation5], 1 }
 0x2f2   :  { %2571 = vsyncpa [#allocation5 + $0x1], 1 }

</bundles_post_ra>
